<compile_context>
chip_gen: v7x
topology: tpu7x:2x2x1
jax: 0.10.0
libtpu: 0.0.40
codegen_flags: <defaults>
</compile_context>

<pallas_src>
import functools
import math

import jax
import jax.numpy as jnp
from jax.experimental import pallas as pl
from jax.experimental.pallas import tpu as pltpu


# ----------------------------------------------------------------------------
# Small helpers
# ----------------------------------------------------------------------------

def _round_up(x, m):
    return (x + m - 1) // m * m


def _vmem_limit_bytes():
    """Per-generation scoped-VMEM budget (perf feedback: re-derive per chip)."""
    try:
        kind = jax.devices()[0].device_kind.lower()
    except Exception:
        return None
    if any(v in kind for v in ("v4", "v5", "v6")):
        return 64 * 1024 * 1024      # these parts have 128 MiB physical VMEM
    return None                      # v7x (64 MiB / TC) & others: keep compiler default


_VMEM_LIMIT = _vmem_limit_bytes()


def _padded_vocab(vocab_size):
    """Vocab padded to a multiple of the lane-dense output tile (done once, at init)."""
    tn = min(512, _round_up(vocab_size, 128))
    return _round_up(vocab_size, tn)


# ----------------------------------------------------------------------------
# In-kernel helpers (operate on values / refs inside the kernel trace)
# ----------------------------------------------------------------------------

def _layer_norm(x, g, b, eps):
    # x: (L, D) f32; g, b: (1, D) f32 — statistics stay f32 (torch-style biased var)
    mean = jnp.mean(x, axis=-1, keepdims=True)
    var = jnp.mean(jnp.square(x - mean), axis=-1, keepdims=True)
    return (x - mean) * jax.lax.rsqrt(var + eps) * g + b


def _mha_into(ctx_ref, q, k, v, mask, num_heads):
    """Masked multi-head attention.

    q: (Lq, D) f32, k/v: (Lk, D) f32, mask: (mq, Lk) bool (mq broadcasts over Lq).
    Each head's context is written into ctx_ref (Lq, D) bf16 VMEM scratch so the
    caller can run the output projection as a single lane-dense K=D matmul
    (no per-head K=Dh projection folds).
    """
    _, D = q.shape
    Dh = D // num_heads
    scale = 1.0 / math.sqrt(Dh)

    qb = q.astype(jnp.bfloat16)
    kb = k.astype(jnp.bfloat16)
    vb = v.astype(jnp.bfloat16)

    for h in range(num_heads):                       # static unroll over small H
        sl = slice(h * Dh, (h + 1) * Dh)
        s = jax.lax.dot_general(qb[:, sl], kb[:, sl], (((1,), (1,)), ((), ())),
                                preferred_element_type=jnp.float32) * scale
        s = jnp.where(mask, s, -1e9)                 # mask compared once by the caller
        m = jnp.max(s, axis=-1, keepdims=True)
        p = jnp.exp(s - m)
        p = p * pl.reciprocal(jnp.sum(p, axis=-1, keepdims=True), approx=True)  # EUP
        ctx_ref[:, sl] = jnp.dot(p.astype(jnp.bfloat16), vb[:, sl],
                                 preferred_element_type=jnp.float32
                                 ).astype(jnp.bfloat16)
    return ctx_ref[...]                              # (Lq, D) bf16


# ----------------------------------------------------------------------------
# Fused per-layer kernel (grid over batch)
# ----------------------------------------------------------------------------

def _decoder_layer_kernel(
        # activations / masks
        x_ref, enc_ref, tmask_ref, smask_ref,
        # self-attention params
        wqkv_ref, bqkv_ref, wo1_ref, bo1_ref, g1_ref, b1_ref,
        # cross-attention params
        wq_ref, bq_ref, wkv_ref, bkv_ref, wo2_ref, bo2_ref, g2_ref, b2_ref,
        # feed-forward params
        w1_ref, bf1_ref, w2_ref, bf2_ref, g3_ref, b3_ref,
        # output + scratch
        o_ref, ctx_ref,
        *, num_heads):
    xb = x_ref[0]                                    # (Lt, D) bf16
    x = xb.astype(jnp.float32)
    D = x.shape[-1]
    tmask = tmask_ref[0, 0] > 0.0                    # (Lt, Lt) bool — compared once
    smask = smask_ref[0, 0] > 0.0                    # (ms, Ls) bool — compared once

    # ---- self-attention + residual + ln1 (eps 1e-6) ----
    qkv = jnp.dot(xb, wqkv_ref[...], preferred_element_type=jnp.float32) + bqkv_ref[...]
    ctx = _mha_into(ctx_ref, qkv[:, :D], qkv[:, D:2 * D], qkv[:, 2 * D:], tmask, num_heads)
    sa = jnp.dot(ctx, wo1_ref[...], preferred_element_type=jnp.float32) + bo1_ref[...]
    h1 = _layer_norm(x + sa, g1_ref[...], b1_ref[...], 1e-6)

    # ---- cross-attention on encoder output + residual + norm1 (eps 1e-5) ----
    encb = enc_ref[0]                                # (Ls, D) bf16
    q = jnp.dot(h1.astype(jnp.bfloat16), wq_ref[...],
                preferred_element_type=jnp.float32) + bq_ref[...]
    kv = jnp.dot(encb, wkv_ref[...], preferred_element_type=jnp.float32) + bkv_ref[...]
    ctx2 = _mha_into(ctx_ref, q, kv[:, :D], kv[:, D:], smask, num_heads)
    ca = jnp.dot(ctx2, wo2_ref[...], preferred_element_type=jnp.float32) + bo2_ref[...]
    h2 = _layer_norm(ca + h1, g2_ref[...], b2_ref[...], 1e-5)

    # ---- FFN + residual + norm2 (eps 1e-5) ----
    f = jnp.dot(h2.astype(jnp.bfloat16), w1_ref[...],
                preferred_element_type=jnp.float32) + bf1_ref[...]
    f = jnp.maximum(f, 0.0)
    f = jnp.dot(f.astype(jnp.bfloat16), w2_ref[...],
                preferred_element_type=jnp.float32) + bf2_ref[...]
    h3 = _layer_norm(f + h2, g3_ref[...], b3_ref[...], 1e-5)

    o_ref[0] = h3.astype(o_ref.dtype)                # single bf16 writeback


def _rep(shape):
    """Grid-invariant (replicated) BlockSpec for weights / biases."""
    nd = len(shape)
    return pl.BlockSpec(shape, lambda b: (0,) * nd)


def _mask_spec(mask, batch):
    mq, mk = mask.shape[-2], mask.shape[-1]
    if mask.shape[0] == batch:
        return pl.BlockSpec((1, 1, mq, mk), lambda b: (b, 0, 0, 0))
    return pl.BlockSpec((1, 1, mq, mk), lambda b: (0, 0, 0, 0))


def decoder_layer(x, enc, tgt_mask, src_mask, lp, num_heads):
    B, Lt, D = x.shape
    Ls = enc.shape[1]
    weight_args = (
        lp["self_wqkv"], lp["self_bqkv"], lp["self_wo"], lp["self_bo"],
        lp["ln1_g"], lp["ln1_b"],
        lp["cross_wq"], lp["cross_bq"], lp["cross_wkv"], lp["cross_bkv"],
        lp["cross_wo"], lp["cross_bo"], lp["norm1_g"], lp["norm1_b"],
        lp["ff1_w"], lp["ff1_b"], lp["ff2_w"], lp["ff2_b"],
        lp["norm2_g"], lp["norm2_b"],
    )
    in_specs = [
        pl.BlockSpec((1, Lt, D), lambda b: (b, 0, 0)),
        pl.BlockSpec((1, Ls, D), lambda b: (b, 0, 0)),
        _mask_spec(tgt_mask, B),
        _mask_spec(src_mask, B),
    ] + [_rep(a.shape) for a in weight_args]

    return pl.pallas_call(
        functools.partial(_decoder_layer_kernel, num_heads=num_heads),
        out_shape=jax.ShapeDtypeStruct((B, Lt, D), jnp.bfloat16),
        grid=(B,),
        in_specs=in_specs,
        out_specs=pl.BlockSpec((1, Lt, D), lambda b: (b, 0, 0)),
        scratch_shapes=[pltpu.VMEM((Lt, D), jnp.bfloat16)],   # per-head context staging
        compiler_params=pltpu.CompilerParams(
            dimension_semantics=("parallel",),
            vmem_limit_bytes=_VMEM_LIMIT),
    )(x, enc, tgt_mask, src_mask, *weight_args)


# ----------------------------------------------------------------------------
# Tiled vocab projection (lane-dense (M, N) grid; weight padded/bf16 at init)
# ----------------------------------------------------------------------------

def _vocab_proj_kernel(x_ref, w_ref, b_ref, o_ref):
    # Single K = emb_dim matmul per (i, j) tile; no K grid / accumulator needed for
    # transformer-sized emb_dim (perf feedback: drop the K loop + epilogue).
    o_ref[...] = (jnp.dot(x_ref[...], w_ref[...], preferred_element_type=jnp.float32)
                  + b_ref[...]).astype(o_ref.dtype)


def vocab_projection(x2d, w_pad, b_pad):
    """x2d: (M, D) bf16, w_pad: (D, Np) bf16 (padded at init), b_pad: (1, Np) f32."""
    M, K = x2d.shape
    Np = w_pad.shape[1]
    Mp = _round_up(M, 8)
    tm = Mp if Mp <= 256 else 256
    Mp = _round_up(Mp, tm)
    tn = min(512, Np)                     # Np is a multiple of tn by construction
    xp = x2d if Mp == M else jnp.pad(x2d, ((0, Mp - M), (0, 0)))

    out = pl.pallas_call(
        _vocab_proj_kernel,
        out_shape=jax.ShapeDtypeStruct((Mp, Np), jnp.float32),
        grid=(Mp // tm, Np // tn),
        in_specs=[pl.BlockSpec((tm, K), lambda i, j: (i, 0)),
                  pl.BlockSpec((K, tn), lambda i, j: (0, j)),
                  pl.BlockSpec((1, tn), lambda i, j: (0, j))],
        out_specs=pl.BlockSpec((tm, tn), lambda i, j: (i, j)),
        compiler_params=pltpu.CompilerParams(
            dimension_semantics=("parallel", "parallel"),
            vmem_limit_bytes=_VMEM_LIMIT),
    )(xp, w_pad, b_pad)
    return out[:M]


# ----------------------------------------------------------------------------
# Decoder forward (1 fused pallas_call per layer + tiled vocab projection)
# ----------------------------------------------------------------------------

def decoder_forward(params, tokens, encoder_out, src_mask, tgt_mask, *,
                    num_heads, vocab_size):
    B, Lt = tokens.shape
    # Embedding gathers stay in plain JAX (indexing glue, not the hot path).
    tok = jnp.take(params["token_emb"], tokens, axis=0)            # (B, Lt, D)
    pos = params["pos_emb"][:Lt][None]                             # (1, Lt, D)
    h = (tok + pos).astype(jnp.bfloat16)                           # dropout == identity
    enc = encoder_out.astype(jnp.bfloat16)

    for lp in params["layers"]:
        h = decoder_layer(h, enc, tgt_mask, src_mask, lp, num_heads)

    D = h.shape[-1]
    logits = vocab_projection(h.reshape(B * Lt, D), params["fc1_w"], params["fc1_b"])
    return logits[:, :vocab_size].reshape(B, Lt, vocab_size)


# ----------------------------------------------------------------------------
# Deterministic parameter init (weights bf16, QKV / KV pre-fused, vocab pre-padded)
# ----------------------------------------------------------------------------

def _init_layer(key, emb_dim, forward_dim):
    ks = jax.random.split(key, 7)
    s = 0.02

    def w(k, shape):
        return (jax.random.normal(k, shape, jnp.float32) * s).astype(jnp.bfloat16)

    zrow = lambda n: jnp.zeros((1, n), jnp.float32)
    orow = lambda n: jnp.ones((1, n), jnp.float32)

    return {
        # self-attention (fused QKV projection)
        "self_wqkv": w(ks[0], (emb_dim, 3 * emb_dim)),
        "self_bqkv": zrow(3 * emb_dim),
        "self_wo": w(ks[1], (emb_dim, emb_dim)),
        "self_bo": zrow(emb_dim),
        "ln1_g": orow(emb_dim), "ln1_b": zrow(emb_dim),
        # cross-attention (Q on decoder stream, fused KV on encoder output)
        "cross_wq": w(ks[2], (emb_dim, emb_dim)),
        "cross_bq": zrow(emb_dim),
        "cross_wkv": w(ks[3], (emb_dim, 2 * emb_dim)),
        "cross_bkv": zrow(2 * emb_dim),
        "cross_wo": w(ks[4], (emb_dim, emb_dim)),
        "cross_bo": zrow(emb_dim),
        "norm1_g": orow(emb_dim), "norm1_b": zrow(emb_dim),
        # feed-forward
        "ff1_w": w(ks[5], (emb_dim, forward_dim)),
        "ff1_b": zrow(forward_dim),
        "ff2_w": w(ks[6], (forward_dim, emb_dim)),
        "ff2_b": zrow(emb_dim),
        "norm2_g": orow(emb_dim), "norm2_b": zrow(emb_dim),
    }


def init_decoder(key, vocab_size, emb_dim, num_layers, forward_dim, max_len):
    keys = jax.random.split(key, num_layers + 3)
    npad = _padded_vocab(vocab_size)
    fc1_w = jax.random.normal(keys[-1], (emb_dim, vocab_size), jnp.float32) * 0.02
    fc1_w = jnp.pad(fc1_w, ((0, 0), (0, npad - vocab_size))).astype(jnp.bfloat16)
    return {
        "token_emb": jax.random.normal(keys[0], (vocab_size, emb_dim), jnp.float32) * 0.02,
        "pos_emb": jax.random.normal(keys[1], (max_len, emb_dim), jnp.float32) * 0.02,
        "layers": [_init_layer(keys[2 + i], emb_dim, forward_dim)
                   for i in range(num_layers)],
        "fc1_w": fc1_w,                               # (D, Np) bf16, padded once at init
        "fc1_b": jnp.zeros((1, npad), jnp.float32),
    }


# ----------------------------------------------------------------------------
# Pure-JAX f32 reference (tolerance check against the bf16 Pallas path)
# ----------------------------------------------------------------------------

def _reference_forward(params, tokens, encoder_out, src_mask, tgt_mask, *,
                       num_heads, vocab_size):
    f32 = lambda a: a.astype(jnp.float32)

    def ln(x, g, b, eps):
        mu = jnp.mean(x, axis=-1, keepdims=True)
        var = jnp.mean(jnp.square(x - mu), axis=-1, keepdims=True)
        return (x - mu) / jnp.sqrt(var + eps) * g + b

    def mha(q, k, v, mask, wo, bo):
        B, Lq, D = q.shape
        Lk = k.shape[1]
        Dh = D // num_heads
        qh = q.reshape(B, Lq, num_heads, Dh).transpose(0, 2, 1, 3)
        kh = k.reshape(B, Lk, num_heads, Dh).transpose(0, 2, 1, 3)
        vh = v.reshape(B, Lk, num_heads, Dh).transpose(0, 2, 1, 3)
        s = jnp.einsum("bhqd,bhkd->bhqk", qh, kh) / math.sqrt(Dh)
        s = jnp.where(mask > 0, s, -1e9)
        p = jax.nn.softmax(s, axis=-1)
        o = jnp.einsum("bhqk,bhkd->bhqd", p, vh).transpose(0, 2, 1, 3).reshape(B, Lq, D)
        return o @ wo + bo

    tok = jnp.take(params["token_emb"], tokens, axis=0)
    h = tok + params["pos_emb"][: tokens.shape[1]][None]
    enc = encoder_out
    D = h.shape[-1]
    for lp in params["layers"]:
        qkv = h @ f32(lp["self_wqkv"]) + lp["self_bqkv"]
        sa = mha(qkv[..., :D], qkv[..., D:2 * D], qkv[..., 2 * D:], tgt_mask,
                 f32(lp["self_wo"]), lp["self_bo"])
        h1 = ln(h + sa, lp["ln1_g"], lp["ln1_b"], 1e-6)
        q = h1 @ f32(lp["cross_wq"]) + lp["cross_bq"]
        kv = enc @ f32(lp["cross_wkv"]) + lp["cross_bkv"]
        ca = mha(q, kv[..., :D], kv[..., D:], src_mask,
                 f32(lp["cross_wo"]), lp["cross_bo"])
        h2 = ln(ca + h1, lp["norm1_g"], lp["norm1_b"], 1e-5)
        ff = jnp.maximum(h2 @ f32(lp["ff1_w"]) + lp["ff1_b"], 0.0)
        ff = ff @ f32(lp["ff2_w"]) + lp["ff2_b"]
        h = ln(ff + h2, lp["norm2_g"], lp["norm2_b"], 1e-5)
    return h @ f32(params["fc1_w"])[:, :vocab_size] + params["fc1_b"][:, :vocab_size]


# ----------------------------------------------------------------------------
# Demo
# ----------------------------------------------------------------------------

if __name__ == "__main__":
    vocab_size, emb_dim, num_layers, num_heads = 500, 128, 2, 4
    forward_dim, max_len = 256, 32
    B, Lt, Ls = 2, 8, 8

    root = jax.random.PRNGKey(0)
    k_params, k_tok, k_enc = jax.random.split(root, 3)

    params = init_decoder(k_params, vocab_size, emb_dim, num_layers,
                          forward_dim, max_len)

    tokens = jax.random.randint(k_tok, (B, Lt), 0, vocab_size, dtype=jnp.int32)
    encoder_out = jax.random.normal(k_enc, (B, Ls, emb_dim), jnp.float32)
    src_mask = jnp.ones((B, 1, 1, Ls), jnp.float32)
    tgt_mask = jnp.broadcast_to(
        jnp.tril(jnp.ones((Lt, Lt), jnp.float32))[None, None], (B, 1, Lt, Lt))

    fwd = jax.jit(functools.partial(decoder_forward, num_heads=num_heads,
                                    vocab_size=vocab_size))
    out = jax.block_until_ready(fwd(params, tokens, encoder_out, src_mask, tgt_mask))

    assert out.shape == (B, Lt, vocab_size), out.shape
    assert bool(jnp.all(jnp.isfinite(out)))

    ref = _reference_forward(params, tokens, encoder_out, src_mask, tgt_mask,
                             num_heads=num_heads, vocab_size=vocab_size)
    max_err = float(jnp.max(jnp.abs(out - ref)))
    assert max_err < 0.15, max_err

    print("KERNEL_OK")
</pallas_src>

<mosaic_0001>
module attributes {stable_mosaic.version = 11 : i64} {
  func.func @_vocab_proj_kernel(%arg0: i32, %arg1: i32, %arg2: memref<16x128xbf16, #tpu.memory_space<vmem>>, %arg3: memref<128x512xbf16, #tpu.memory_space<vmem>>, %arg4: memref<1x512xf32, #tpu.memory_space<vmem>>, %arg5: memref<16x512xf32, #tpu.memory_space<vmem>>) attributes {dimension_semantics = [#tpu.dimension_semantics<parallel>, #tpu.dimension_semantics<parallel>], iteration_bounds = array<i64: 1, 1>, scalar_prefetch = 0 : i64, scratch_operands = 0 : i64, tpu.core_type = #tpu.core_type<tc>, window_params = [{transform_indices = @transform_0, window_bounds = array<i64: 16, 128>}, {transform_indices = @transform_1, window_bounds = array<i64: 128, 512>}, {transform_indices = @transform_2, window_bounds = array<i64: 1, 512>}, {transform_indices = @transform_3, window_bounds = array<i64: 16, 512>}]} {
    %c0 = arith.constant 0 : index
    %c0_0 = arith.constant 0 : index
    %0 = vector.load %arg2[%c0, %c0_0] : memref<16x128xbf16, #tpu.memory_space<vmem>>, vector<16x128xbf16>
    %c0_1 = arith.constant 0 : index
    %c0_2 = arith.constant 0 : index
    %1 = vector.load %arg3[%c0_1, %c0_2] : memref<128x512xbf16, #tpu.memory_space<vmem>>, vector<128x512xbf16>
    %cst = arith.constant dense<0.000000e+00> : vector<16x512xf32>
    %2 = tpu.matmul %0, %1, %cst {dimension_numbers = #tpu.dot_dimension_numbers<[1], [0], [0], [1], [0, 0, 1, 1], [], []>} : vector<16x128xbf16>, vector<128x512xbf16>, vector<16x512xf32> -> vector<16x512xf32>
    %c0_3 = arith.constant 0 : index
    %c0_4 = arith.constant 0 : index
    %3 = vector.load %arg4[%c0_3, %c0_4] : memref<1x512xf32, #tpu.memory_space<vmem>>, vector<1x512xf32>
    %4 = vector.broadcast %3 : vector<1x512xf32> to vector<16x512xf32>
    %5 = arith.addf %2, %4 : vector<16x512xf32>
    %c0_5 = arith.constant 0 : index
    %c0_6 = arith.constant 0 : index
    %6 = vector.load %arg5[%c0_5, %c0_6] : memref<16x512xf32, #tpu.memory_space<vmem>>, vector<16x512xf32>
    tpu.vector_store %arg5[%c0_5, %c0_6], %5 {strides = array<i32>} : memref<16x512xf32, #tpu.memory_space<vmem>>, vector<16x512xf32>,
    return
  }
  func.func @transform_0(%arg0: i32, %arg1: i32) -> (i32, i32) {
    %c0_i32 = arith.constant 0 : i32
    %c0_i32_0 = arith.constant 0 : i32
    return %arg0, %c0_i32 : i32, i32
  }
  func.func @transform_1(%arg0: i32, %arg1: i32) -> (i32, i32) {
    %c0_i32 = arith.constant 0 : i32
    %c0_i32_0 = arith.constant 0 : i32
    return %c0_i32, %arg1 : i32, i32
  }
  func.func @transform_2(%arg0: i32, %arg1: i32) -> (i32, i32) {
    %c0_i32 = arith.constant 0 : i32
    %c0_i32_0 = arith.constant 0 : i32
    return %c0_i32, %arg1 : i32, i32
  }
  func.func @transform_3(%arg0: i32, %arg1: i32) -> (i32, i32) {
    %c0_i32 = arith.constant 0 : i32
    return %arg0, %arg1 : i32, i32
  }
}

module attributes {stable_mosaic.version = 11 : i64} {
  func.func @_decoder_layer_kernel(%arg0: i32, %arg1: memref<1x8x128xbf16, #tpu.memory_space<vmem>>, %arg2: memref<1x8x128xbf16, #tpu.memory_space<vmem>>, %arg3: memref<1x1x8x8xf32, #tpu.memory_space<vmem>>, %arg4: memref<1x1x1x8xf32, #tpu.memory_space<vmem>>, %arg5: memref<128x384xbf16, #tpu.memory_space<vmem>>, %arg6: memref<1x384xf32, #tpu.memory_space<vmem>>, %arg7: memref<128x128xbf16, #tpu.memory_space<vmem>>, %arg8: memref<1x128xf32, #tpu.memory_space<vmem>>, %arg9: memref<1x128xf32, #tpu.memory_space<vmem>>, %arg10: memref<1x128xf32, #tpu.memory_space<vmem>>, %arg11: memref<128x128xbf16, #tpu.memory_space<vmem>>, %arg12: memref<1x128xf32, #tpu.memory_space<vmem>>, %arg13: memref<128x256xbf16, #tpu.memory_space<vmem>>, %arg14: memref<1x256xf32, #tpu.memory_space<vmem>>, %arg15: memref<128x128xbf16, #tpu.memory_space<vmem>>, %arg16: memref<1x128xf32, #tpu.memory_space<vmem>>, %arg17: memref<1x128xf32, #tpu.memory_space<vmem>>, %arg18: memref<1x128xf32, #tpu.memory_space<vmem>>, %arg19: memref<128x256xbf16, #tpu.memory_space<vmem>>, %arg20: memref<1x256xf32, #tpu.memory_space<vmem>>, %arg21: memref<256x128xbf16, #tpu.memory_space<vmem>>, %arg22: memref<1x128xf32, #tpu.memory_space<vmem>>, %arg23: memref<1x128xf32, #tpu.memory_space<vmem>>, %arg24: memref<1x128xf32, #tpu.memory_space<vmem>>, %arg25: memref<1x8x128xbf16, #tpu.memory_space<vmem>>, %arg26: memref<8x128xbf16, #tpu.memory_space<vmem>>) attributes {dimension_semantics = [#tpu.dimension_semantics<parallel>], iteration_bounds = array<i64: 2>, scalar_prefetch = 0 : i64, scratch_operands = 1 : i64, tpu.core_type = #tpu.core_type<tc>, window_params = [{transform_indices = @transform_0, window_bounds = array<i64: 1, 8, 128>}, {transform_indices = @transform_1, window_bounds = array<i64: 1, 8, 128>}, {transform_indices = @transform_2, window_bounds = array<i64: 1, 1, 8, 8>}, {transform_indices = @transform_3, window_bounds = array<i64: 1, 1, 1, 8>}, {pipeline_mode = #tpu.pipeline_mode<synchronous>, transform_indices = @transform_4, window_bounds = array<i64: 128, 384>}, {pipeline_mode = #tpu.pipeline_mode<synchronous>, transform_indices = @transform_5, window_bounds = array<i64: 1, 384>}, {pipeline_mode = #tpu.pipeline_mode<synchronous>, transform_indices = @transform_6, window_bounds = array<i64: 128, 128>}, {pipeline_mode = #tpu.pipeline_mode<synchronous>, transform_indices = @transform_7, window_bounds = array<i64: 1, 128>}, {pipeline_mode = #tpu.pipeline_mode<synchronous>, transform_indices = @transform_8, window_bounds = array<i64: 1, 128>}, {pipeline_mode = #tpu.pipeline_mode<synchronous>, transform_indices = @transform_9, window_bounds = array<i64: 1, 128>}, {pipeline_mode = #tpu.pipeline_mode<synchronous>, transform_indices = @transform_10, window_bounds = array<i64: 128, 128>}, {pipeline_mode = #tpu.pipeline_mode<synchronous>, transform_indices = @transform_11, window_bounds = array<i64: 1, 128>}, {pipeline_mode = #tpu.pipeline_mode<synchronous>, transform_indices = @transform_12, window_bounds = array<i64: 128, 256>}, {pipeline_mode = #tpu.pipeline_mode<synchronous>, transform_indices = @transform_13, window_bounds = array<i64: 1, 256>}, {pipeline_mode = #tpu.pipeline_mode<synchronous>, transform_indices = @transform_14, window_bounds = array<i64: 128, 128>}, {pipeline_mode = #tpu.pipeline_mode<synchronous>, transform_indices = @transform_15, window_bounds = array<i64: 1, 128>}, {pipeline_mode = #tpu.pipeline_mode<synchronous>, transform_indices = @transform_16, window_bounds = array<i64: 1, 128>}, {pipeline_mode = #tpu.pipeline_mode<synchronous>, transform_indices = @transform_17, window_bounds = array<i64: 1, 128>}, {pipeline_mode = #tpu.pipeline_mode<synchronous>, transform_indices = @transform_18, window_bounds = array<i64: 128, 256>}, {pipeline_mode = #tpu.pipeline_mode<synchronous>, transform_indices = @transform_19, window_bounds = array<i64: 1, 256>}, {pipeline_mode = #tpu.pipeline_mode<synchronous>, transform_indices = @transform_20, window_bounds = array<i64: 256, 128>}, {pipeline_mode = #tpu.pipeline_mode<synchronous>, transform_indices = @transform_21, window_bounds = array<i64: 1, 128>}, {pipeline_mode = #tpu.pipeline_mode<synchronous>, transform_indices = @transform_22, window_bounds = array<i64: 1, 128>}, {pipeline_mode = #tpu.pipeline_mode<synchronous>, transform_indices = @transform_23, window_bounds = array<i64: 1, 128>}, {transform_indices = @transform_24, window_bounds = array<i64: 1, 8, 128>}]} {
    %c0 = arith.constant 0 : index
    %c0_0 = arith.constant 0 : index
    %c0_1 = arith.constant 0 : index
    %0 = vector.load %arg1[%c0, %c0_0, %c0_1] : memref<1x8x128xbf16, #tpu.memory_space<vmem>>, vector<1x8x128xbf16>
    %1 = vector.shape_cast %0 : vector<1x8x128xbf16> to vector<8x128xbf16>
    %2 = arith.extf %1 : vector<8x128xbf16> to vector<8x128xf32>
    %c0_2 = arith.constant 0 : index
    %c0_3 = arith.constant 0 : index
    %c0_4 = arith.constant 0 : index
    %c0_5 = arith.constant 0 : index
    %3 = vector.load %arg3[%c0_2, %c0_3, %c0_4, %c0_5] : memref<1x1x8x8xf32, #tpu.memory_space<vmem>>, vector<1x1x8x8xf32>
    %4 = vector.shape_cast %3 : vector<1x1x8x8xf32> to vector<8x8xf32>
    %cst = arith.constant 0.000000e+00 : f32
    %5 = vector.broadcast %cst : f32 to vector<8x8xf32>
    %6 = arith.cmpf ogt, %4, %5 : vector<8x8xf32>
    %c0_6 = arith.constant 0 : index
    %c0_7 = arith.constant 0 : index
    %c0_8 = arith.constant 0 : index
    %c0_9 = arith.constant 0 : index
    %7 = vector.load %arg4[%c0_6, %c0_7, %c0_8, %c0_9] : memref<1x1x1x8xf32, #tpu.memory_space<vmem>>, vector<1x1x1x8xf32>
    %8 = vector.shape_cast %7 : vector<1x1x1x8xf32> to vector<1x8xf32>
    %cst_10 = arith.constant 0.000000e+00 : f32
    %9 = vector.broadcast %cst_10 : f32 to vector<1x8xf32>
    %10 = arith.cmpf ogt, %8, %9 : vector<1x8xf32>
    %c0_11 = arith.constant 0 : index
    %c0_12 = arith.constant 0 : index
    %11 = vector.load %arg5[%c0_11, %c0_12] : memref<128x384xbf16, #tpu.memory_space<vmem>>, vector<128x384xbf16>
    %cst_13 = arith.constant dense<0.000000e+00> : vector<8x384xf32>
    %12 = tpu.matmul %1, %11, %cst_13 {dimension_numbers = #tpu.dot_dimension_numbers<[1], [0], [0], [1], [0, 0, 1, 1], [], []>} : vector<8x128xbf16>, vector<128x384xbf16>, vector<8x384xf32> -> vector<8x384xf32>
    %c0_14 = arith.constant 0 : index
    %c0_15 = arith.constant 0 : index
    %13 = vector.load %arg6[%c0_14, %c0_15] : memref<1x384xf32, #tpu.memory_space<vmem>>, vector<1x384xf32>
    %14 = vector.broadcast %13 : vector<1x384xf32> to vector<8x384xf32>
    %15 = arith.addf %12, %14 : vector<8x384xf32>
    %16 = vector.extract_strided_slice %15 {offsets = [0, 0], sizes = [8, 128], strides = [1, 1]} : vector<8x384xf32> to vector<8x128xf32>
    %17 = vector.extract_strided_slice %15 {offsets = [0, 128], sizes = [8, 128], strides = [1, 1]} : vector<8x384xf32> to vector<8x128xf32>
    %18 = vector.extract_strided_slice %15 {offsets = [0, 256], sizes = [8, 128], strides = [1, 1]} : vector<8x384xf32> to vector<8x128xf32>
    %19 = arith.truncf %16 : vector<8x128xf32> to vector<8x128xbf16>
    %20 = arith.truncf %17 : vector<8x128xf32> to vector<8x128xbf16>
    %21 = arith.truncf %18 : vector<8x128xf32> to vector<8x128xbf16>
    %22 = vector.extract_strided_slice %19 {offsets = [0, 0], sizes = [8, 32], strides = [1, 1]} : vector<8x128xbf16> to vector<8x32xbf16>
    %23 = vector.extract_strided_slice %20 {offsets = [0, 0], sizes = [8, 32], strides = [1, 1]} : vector<8x128xbf16> to vector<8x32xbf16>
    %cst_16 = arith.constant dense<0.000000e+00> : vector<8x8xf32>
    %24 = tpu.matmul %22, %23, %cst_16 {dimension_numbers = #tpu.dot_dimension_numbers<[1], [1], [0], [0], [0, 0, 1, 0], [], []>} : vector<8x32xbf16>, vector<8x32xbf16>, vector<8x8xf32> -> vector<8x8xf32>
    %cst_17 = arith.constant 0.176776692 : f32
    %25 = vector.broadcast %cst_17 : f32 to vector<8x8xf32>
    %26 = arith.mulf %24, %25 : vector<8x8xf32>
    %cst_18 = arith.constant -1.000000e+09 : f32
    %27 = vector.broadcast %cst_18 : f32 to vector<8x8xf32>
    %28 = arith.select %6, %26, %27 : vector<8x8xi1>, vector<8x8xf32>
    %cst_19 = arith.constant dense<0xFF800000> : vector<8xf32>
    %29 = vector.multi_reduction <maximumf>, %28, %cst_19 [1] : vector<8x8xf32> to vector<8xf32>
    %30 = vector.shape_cast %29 : vector<8xf32> to vector<8x1xf32>
    %31 = vector.broadcast %30 : vector<8x1xf32> to vector<8x8xf32>
    %32 = arith.subf %28, %31 : vector<8x8xf32>
    %33 = math.exp %32 : vector<8x8xf32>
    %cst_20 = arith.constant dense<0.000000e+00> : vector<8xf32>
    %34 = vector.multi_reduction <add>, %33, %cst_20 [1] : vector<8x8xf32> to vector<8xf32>
    %35 = vector.shape_cast %34 : vector<8xf32> to vector<8x1xf32>
    %36 = tpu.reciprocal %35 {approx = true} : vector<8x1xf32> -> vector<8x1xf32>
    %37 = vector.broadcast %36 : vector<8x1xf32> to vector<8x8xf32>
    %38 = arith.mulf %33, %37 : vector<8x8xf32>
    %39 = arith.truncf %38 : vector<8x8xf32> to vector<8x8xbf16>
    %40 = vector.extract_strided_slice %21 {offsets = [0, 0], sizes = [8, 32], strides = [1, 1]} : vector<8x128xbf16> to vector<8x32xbf16>
    %cst_21 = arith.constant dense<0.000000e+00> : vector<8x32xf32>
    %41 = tpu.matmul %39, %40, %cst_21 {dimension_numbers = #tpu.dot_dimension_numbers<[1], [0], [0], [1], [0, 0, 1, 1], [], []>} : vector<8x8xbf16>, vector<8x32xbf16>, vector<8x32xf32> -> vector<8x32xf32>
    %42 = arith.truncf %41 : vector<8x32xf32> to vector<8x32xbf16>
    %c0_22 = arith.constant 0 : index
    %c0_23 = arith.constant 0 : index
    %43 = vector.load %arg26[%c0_22, %c0_23] : memref<8x128xbf16, #tpu.memory_space<vmem>>, vector<8x32xbf16>
    tpu.vector_store %arg26[%c0_22, %c0_23], %42 {strides = array<i32>} : memref<8x128xbf16, #tpu.memory_space<vmem>>, vector<8x32xbf16>,
    %44 = vector.extract_strided_slice %19 {offsets = [0, 32], sizes = [8, 32], strides = [1, 1]} : vector<8x128xbf16> to vector<8x32xbf16>
    %45 = vector.extract_strided_slice %20 {offsets = [0, 32], sizes = [8, 32], strides = [1, 1]} : vector<8x128xbf16> to vector<8x32xbf16>
    %cst_24 = arith.constant dense<0.000000e+00> : vector<8x8xf32>
    %46 = tpu.matmul %44, %45, %cst_24 {dimension_numbers = #tpu.dot_dimension_numbers<[1], [1], [0], [0], [0, 0, 1, 0], [], []>} : vector<8x32xbf16>, vector<8x32xbf16>, vector<8x8xf32> -> vector<8x8xf32>
    %cst_25 = arith.constant 0.176776692 : f32
    %47 = vector.broadcast %cst_25 : f32 to vector<8x8xf32>
    %48 = arith.mulf %46, %47 : vector<8x8xf32>
    %cst_26 = arith.constant -1.000000e+09 : f32
    %49 = vector.broadcast %cst_26 : f32 to vector<8x8xf32>
    %50 = arith.select %6, %48, %49 : vector<8x8xi1>, vector<8x8xf32>
    %cst_27 = arith.constant dense<0xFF800000> : vector<8xf32>
    %51 = vector.multi_reduction <maximumf>, %50, %cst_27 [1] : vector<8x8xf32> to vector<8xf32>
    %52 = vector.shape_cast %51 : vector<8xf32> to vector<8x1xf32>
    %53 = vector.broadcast %52 : vector<8x1xf32> to vector<8x8xf32>
    %54 = arith.subf %50, %53 : vector<8x8xf32>
    %55 = math.exp %54 : vector<8x8xf32>
    %cst_28 = arith.constant dense<0.000000e+00> : vector<8xf32>
    %56 = vector.multi_reduction <add>, %55, %cst_28 [1] : vector<8x8xf32> to vector<8xf32>
    %57 = vector.shape_cast %56 : vector<8xf32> to vector<8x1xf32>
    %58 = tpu.reciprocal %57 {approx = true} : vector<8x1xf32> -> vector<8x1xf32>
    %59 = vector.broadcast %58 : vector<8x1xf32> to vector<8x8xf32>
    %60 = arith.mulf %55, %59 : vector<8x8xf32>
    %61 = arith.truncf %60 : vector<8x8xf32> to vector<8x8xbf16>
    %62 = vector.extract_strided_slice %21 {offsets = [0, 32], sizes = [8, 32], strides = [1, 1]} : vector<8x128xbf16> to vector<8x32xbf16>
    %cst_29 = arith.constant dense<0.000000e+00> : vector<8x32xf32>
    %63 = tpu.matmul %61, %62, %cst_29 {dimension_numbers = #tpu.dot_dimension_numbers<[1], [0], [0], [1], [0, 0, 1, 1], [], []>} : vector<8x8xbf16>, vector<8x32xbf16>, vector<8x32xf32> -> vector<8x32xf32>
    %64 = arith.truncf %63 : vector<8x32xf32> to vector<8x32xbf16>
    %c0_30 = arith.constant 0 : index
    %c32 = arith.constant 32 : index
    %65 = vector.load %arg26[%c0_30, %c32] : memref<8x128xbf16, #tpu.memory_space<vmem>>, vector<8x32xbf16>
    tpu.vector_store %arg26[%c0_30, %c32], %64 {strides = array<i32>} : memref<8x128xbf16, #tpu.memory_space<vmem>>, vector<8x32xbf16>,
    %66 = vector.extract_strided_slice %19 {offsets = [0, 64], sizes = [8, 32], strides = [1, 1]} : vector<8x128xbf16> to vector<8x32xbf16>
    %67 = vector.extract_strided_slice %20 {offsets = [0, 64], sizes = [8, 32], strides = [1, 1]} : vector<8x128xbf16> to vector<8x32xbf16>
    %cst_31 = arith.constant dense<0.000000e+00> : vector<8x8xf32>
    %68 = tpu.matmul %66, %67, %cst_31 {dimension_numbers = #tpu.dot_dimension_numbers<[1], [1], [0], [0], [0, 0, 1, 0], [], []>} : vector<8x32xbf16>, vector<8x32xbf16>, vector<8x8xf32> -> vector<8x8xf32>
    %cst_32 = arith.constant 0.176776692 : f32
    %69 = vector.broadcast %cst_32 : f32 to vector<8x8xf32>
    %70 = arith.mulf %68, %69 : vector<8x8xf32>
    %cst_33 = arith.constant -1.000000e+09 : f32
    %71 = vector.broadcast %cst_33 : f32 to vector<8x8xf32>
    %72 = arith.select %6, %70, %71 : vector<8x8xi1>, vector<8x8xf32>
    %cst_34 = arith.constant dense<0xFF800000> : vector<8xf32>
    %73 = vector.multi_reduction <maximumf>, %72, %cst_34 [1] : vector<8x8xf32> to vector<8xf32>
    %74 = vector.shape_cast %73 : vector<8xf32> to vector<8x1xf32>
    %75 = vector.broadcast %74 : vector<8x1xf32> to vector<8x8xf32>
    %76 = arith.subf %72, %75 : vector<8x8xf32>
    %77 = math.exp %76 : vector<8x8xf32>
    %cst_35 = arith.constant dense<0.000000e+00> : vector<8xf32>
    %78 = vector.multi_reduction <add>, %77, %cst_35 [1] : vector<8x8xf32> to vector<8xf32>
    %79 = vector.shape_cast %78 : vector<8xf32> to vector<8x1xf32>
    %80 = tpu.reciprocal %79 {approx = true} : vector<8x1xf32> -> vector<8x1xf32>
    %81 = vector.broadcast %80 : vector<8x1xf32> to vector<8x8xf32>
    %82 = arith.mulf %77, %81 : vector<8x8xf32>
    %83 = arith.truncf %82 : vector<8x8xf32> to vector<8x8xbf16>
    %84 = vector.extract_strided_slice %21 {offsets = [0, 64], sizes = [8, 32], strides = [1, 1]} : vector<8x128xbf16> to vector<8x32xbf16>
    %cst_36 = arith.constant dense<0.000000e+00> : vector<8x32xf32>
    %85 = tpu.matmul %83, %84, %cst_36 {dimension_numbers = #tpu.dot_dimension_numbers<[1], [0], [0], [1], [0, 0, 1, 1], [], []>} : vector<8x8xbf16>, vector<8x32xbf16>, vector<8x32xf32> -> vector<8x32xf32>
    %86 = arith.truncf %85 : vector<8x32xf32> to vector<8x32xbf16>
    %c0_37 = arith.constant 0 : index
    %c64 = arith.constant 64 : index
    %87 = vector.load %arg26[%c0_37, %c64] : memref<8x128xbf16, #tpu.memory_space<vmem>>, vector<8x32xbf16>
    tpu.vector_store %arg26[%c0_37, %c64], %86 {strides = array<i32>} : memref<8x128xbf16, #tpu.memory_space<vmem>>, vector<8x32xbf16>,
    %88 = vector.extract_strided_slice %19 {offsets = [0, 96], sizes = [8, 32], strides = [1, 1]} : vector<8x128xbf16> to vector<8x32xbf16>
    %89 = vector.extract_strided_slice %20 {offsets = [0, 96], sizes = [8, 32], strides = [1, 1]} : vector<8x128xbf16> to vector<8x32xbf16>
    %cst_38 = arith.constant dense<0.000000e+00> : vector<8x8xf32>
    %90 = tpu.matmul %88, %89, %cst_38 {dimension_numbers = #tpu.dot_dimension_numbers<[1], [1], [0], [0], [0, 0, 1, 0], [], []>} : vector<8x32xbf16>, vector<8x32xbf16>, vector<8x8xf32> -> vector<8x8xf32>
    %cst_39 = arith.constant 0.176776692 : f32
    %91 = vector.broadcast %cst_39 : f32 to vector<8x8xf32>
    %92 = arith.mulf %90, %91 : vector<8x8xf32>
    %cst_40 = arith.constant -1.000000e+09 : f32
    %93 = vector.broadcast %cst_40 : f32 to vector<8x8xf32>
    %94 = arith.select %6, %92, %93 : vector<8x8xi1>, vector<8x8xf32>
    %cst_41 = arith.constant dense<0xFF800000> : vector<8xf32>
    %95 = vector.multi_reduction <maximumf>, %94, %cst_41 [1] : vector<8x8xf32> to vector<8xf32>
    %96 = vector.shape_cast %95 : vector<8xf32> to vector<8x1xf32>
    %97 = vector.broadcast %96 : vector<8x1xf32> to vector<8x8xf32>
    %98 = arith.subf %94, %97 : vector<8x8xf32>
    %99 = math.exp %98 : vector<8x8xf32>
    %cst_42 = arith.constant dense<0.000000e+00> : vector<8xf32>
    %100 = vector.multi_reduction <add>, %99, %cst_42 [1] : vector<8x8xf32> to vector<8xf32>
    %101 = vector.shape_cast %100 : vector<8xf32> to vector<8x1xf32>
    %102 = tpu.reciprocal %101 {approx = true} : vector<8x1xf32> -> vector<8x1xf32>
    %103 = vector.broadcast %102 : vector<8x1xf32> to vector<8x8xf32>
    %104 = arith.mulf %99, %103 : vector<8x8xf32>
    %105 = arith.truncf %104 : vector<8x8xf32> to vector<8x8xbf16>
    %106 = vector.extract_strided_slice %21 {offsets = [0, 96], sizes = [8, 32], strides = [1, 1]} : vector<8x128xbf16> to vector<8x32xbf16>
    %cst_43 = arith.constant dense<0.000000e+00> : vector<8x32xf32>
    %107 = tpu.matmul %105, %106, %cst_43 {dimension_numbers = #tpu.dot_dimension_numbers<[1], [0], [0], [1], [0, 0, 1, 1], [], []>} : vector<8x8xbf16>, vector<8x32xbf16>, vector<8x32xf32> -> vector<8x32xf32>
    %108 = arith.truncf %107 : vector<8x32xf32> to vector<8x32xbf16>
    %c0_44 = arith.constant 0 : index
    %c96 = arith.constant 96 : index
    %109 = vector.load %arg26[%c0_44, %c96] : memref<8x128xbf16, #tpu.memory_space<vmem>>, vector<8x32xbf16>
    tpu.vector_store %arg26[%c0_44, %c96], %108 {strides = array<i32>} : memref<8x128xbf16, #tpu.memory_space<vmem>>, vector<8x32xbf16>,
    %c0_45 = arith.constant 0 : index
    %c0_46 = arith.constant 0 : index
    %110 = vector.load %arg26[%c0_45, %c0_46] : memref<8x128xbf16, #tpu.memory_space<vmem>>, vector<8x128xbf16>
    %c0_47 = arith.constant 0 : index
    %c0_48 = arith.constant 0 : index
    %111 = vector.load %arg7[%c0_47, %c0_48] : memref<128x128xbf16, #tpu.memory_space<vmem>>, vector<128x128xbf16>
    %cst_49 = arith.constant dense<0.000000e+00> : vector<8x128xf32>
    %112 = tpu.matmul %110, %111, %cst_49 {dimension_numbers = #tpu.dot_dimension_numbers<[1], [0], [0], [1], [0, 0, 1, 1], [], []>} : vector<8x128xbf16>, vector<128x128xbf16>, vector<8x128xf32> -> vector<8x128xf32>
    %c0_50 = arith.constant 0 : index
    %c0_51 = arith.constant 0 : index
    %113 = vector.load %arg8[%c0_50, %c0_51] : memref<1x128xf32, #tpu.memory_space<vmem>>, vector<1x128xf32>
    %114 = vector.broadcast %113 : vector<1x128xf32> to vector<8x128xf32>
    %115 = arith.addf %112, %114 : vector<8x128xf32>
    %116 = arith.addf %2, %115 : vector<8x128xf32>
    %c0_52 = arith.constant 0 : index
    %c0_53 = arith.constant 0 : index
    %117 = vector.load %arg9[%c0_52, %c0_53] : memref<1x128xf32, #tpu.memory_space<vmem>>, vector<1x128xf32>
    %c0_54 = arith.constant 0 : index
    %c0_55 = arith.constant 0 : index
    %118 = vector.load %arg10[%c0_54, %c0_55] : memref<1x128xf32, #tpu.memory_space<vmem>>, vector<1x128xf32>
    %cst_56 = arith.constant dense<0.000000e+00> : vector<8xf32>
    %119 = vector.multi_reduction <add>, %116, %cst_56 [1] : vector<8x128xf32> to vector<8xf32>
    %120 = vector.shape_cast %119 : vector<8xf32> to vector<8x1xf32>
    %cst_57 = arith.constant 1.280000e+02 : f32
    %121 = vector.broadcast %cst_57 : f32 to vector<8x1xf32>
    %122 = arith.divf %120, %121 : vector<8x1xf32>
    %123 = vector.broadcast %122 : vector<8x1xf32> to vector<8x128xf32>
    %124 = arith.subf %116, %123 : vector<8x128xf32>
    %125 = arith.mulf %124, %124 : vector<8x128xf32>
    %cst_58 = arith.constant dense<0.000000e+00> : vector<8xf32>
    %126 = vector.multi_reduction <add>, %125, %cst_58 [1] : vector<8x128xf32> to vector<8xf32>
    %127 = vector.shape_cast %126 : vector<8xf32> to vector<8x1xf32>
    %cst_59 = arith.constant 1.280000e+02 : f32
    %128 = vector.broadcast %cst_59 : f32 to vector<8x1xf32>
    %129 = arith.divf %127, %128 : vector<8x1xf32>
    %130 = vector.broadcast %122 : vector<8x1xf32> to vector<8x128xf32>
    %131 = arith.subf %116, %130 : vector<8x128xf32>
    %cst_60 = arith.constant 9.99999997E-7 : f32
    %132 = vector.broadcast %cst_60 : f32 to vector<8x1xf32>
    %133 = arith.addf %129, %132 : vector<8x1xf32>
    %134 = math.rsqrt %133 : vector<8x1xf32>
    %135 = vector.broadcast %134 : vector<8x1xf32> to vector<8x128xf32>
    %136 = arith.mulf %131, %135 : vector<8x128xf32>
    %137 = vector.broadcast %117 : vector<1x128xf32> to vector<8x128xf32>
    %138 = arith.mulf %136, %137 : vector<8x128xf32>
    %139 = vector.broadcast %118 : vector<1x128xf32> to vector<8x128xf32>
    %140 = arith.addf %138, %139 : vector<8x128xf32>
    %c0_61 = arith.constant 0 : index
    %c0_62 = arith.constant 0 : index
    %c0_63 = arith.constant 0 : index
    %141 = vector.load %arg2[%c0_61, %c0_62, %c0_63] : memref<1x8x128xbf16, #tpu.memory_space<vmem>>, vector<1x8x128xbf16>
    %142 = vector.shape_cast %141 : vector<1x8x128xbf16> to vector<8x128xbf16>
    %143 = arith.truncf %140 : vector<8x128xf32> to vector<8x128xbf16>
    %c0_64 = arith.constant 0 : index
    %c0_65 = arith.constant 0 : index
    %144 = vector.load %arg11[%c0_64, %c0_65] : memref<128x128xbf16, #tpu.memory_space<vmem>>, vector<128x128xbf16>
    %cst_66 = arith.constant dense<0.000000e+00> : vector<8x128xf32>
    %145 = tpu.matmul %143, %144, %cst_66 {dimension_numbers = #tpu.dot_dimension_numbers<[1], [0], [0], [1], [0, 0, 1, 1], [], []>} : vector<8x128xbf16>, vector<128x128xbf16>, vector<8x128xf32> -> vector<8x128xf32>
    %c0_67 = arith.constant 0 : index
    %c0_68 = arith.constant 0 : index
    %146 = vector.load %arg12[%c0_67, %c0_68] : memref<1x128xf32, #tpu.memory_space<vmem>>, vector<1x128xf32>
    %147 = vector.broadcast %146 : vector<1x128xf32> to vector<8x128xf32>
    %148 = arith.addf %145, %147 : vector<8x128xf32>
    %c0_69 = arith.constant 0 : index
    %c0_70 = arith.constant 0 : index
    %149 = vector.load %arg13[%c0_69, %c0_70] : memref<128x256xbf16, #tpu.memory_space<vmem>>, vector<128x256xbf16>
    %cst_71 = arith.constant dense<0.000000e+00> : vector<8x256xf32>
    %150 = tpu.matmul %142, %149, %cst_71 {dimension_numbers = #tpu.dot_dimension_numbers<[1], [0], [0], [1], [0, 0, 1, 1], [], []>} : vector<8x128xbf16>, vector<128x256xbf16>, vector<8x256xf32> -> vector<8x256xf32>
    %c0_72 = arith.constant 0 : index
    %c0_73 = arith.constant 0 : index
    %151 = vector.load %arg14[%c0_72, %c0_73] : memref<1x256xf32, #tpu.memory_space<vmem>>, vector<1x256xf32>
    %152 = vector.broadcast %151 : vector<1x256xf32> to vector<8x256xf32>
    %153 = arith.addf %150, %152 : vector<8x256xf32>
    %154 = vector.extract_strided_slice %153 {offsets = [0, 0], sizes = [8, 128], strides = [1, 1]} : vector<8x256xf32> to vector<8x128xf32>
    %155 = vector.extract_strided_slice %153 {offsets = [0, 128], sizes = [8, 128], strides = [1, 1]} : vector<8x256xf32> to vector<8x128xf32>
    %156 = arith.truncf %148 : vector<8x128xf32> to vector<8x128xbf16>
    %157 = arith.truncf %154 : vector<8x128xf32> to vector<8x128xbf16>
    %158 = arith.truncf %155 : vector<8x128xf32> to vector<8x128xbf16>
    %159 = vector.extract_strided_slice %156 {offsets = [0, 0], sizes = [8, 32], strides = [1, 1]} : vector<8x128xbf16> to vector<8x32xbf16>
    %160 = vector.extract_strided_slice %157 {offsets = [0, 0], sizes = [8, 32], strides = [1, 1]} : vector<8x128xbf16> to vector<8x32xbf16>
    %cst_74 = arith.constant dense<0.000000e+00> : vector<8x8xf32>
    %161 = tpu.matmul %159, %160, %cst_74 {dimension_numbers = #tpu.dot_dimension_numbers<[1], [1], [0], [0], [0, 0, 1, 0], [], []>} : vector<8x32xbf16>, vector<8x32xbf16>, vector<8x8xf32> -> vector<8x8xf32>
    %cst_75 = arith.constant 0.176776692 : f32
    %162 = vector.broadcast %cst_75 : f32 to vector<8x8xf32>
    %163 = arith.mulf %161, %162 : vector<8x8xf32>
    %cst_76 = arith.constant -1.000000e+09 : f32
    %164 = vector.shape_cast %10 : vector<1x8xi1> to vector<1x8xi1>
    %165 = vector.broadcast %164 : vector<1x8xi1> to vector<8x8xi1>
    %166 = vector.broadcast %cst_76 : f32 to vector<8x8xf32>
    %167 = arith.select %165, %163, %166 : vector<8x8xi1>, vector<8x8xf32>
    %cst_77 = arith.constant dense<0xFF800000> : vector<8xf32>
    %168 = vector.multi_reduction <maximumf>, %167, %cst_77 [1] : vector<8x8xf32> to vector<8xf32>
    %169 = vector.shape_cast %168 : vector<8xf32> to vector<8x1xf32>
    %170 = vector.broadcast %169 : vector<8x1xf32> to vector<8x8xf32>
    %171 = arith.subf %167, %170 : vector<8x8xf32>
    %172 = math.exp %171 : vector<8x8xf32>
    %cst_78 = arith.constant dense<0.000000e+00> : vector<8xf32>
    %173 = vector.multi_reduction <add>, %172, %cst_78 [1] : vector<8x8xf32> to vector<8xf32>
    %174 = vector.shape_cast %173 : vector<8xf32> to vector<8x1xf32>
    %175 = tpu.reciprocal %174 {approx = true} : vector<8x1xf32> -> vector<8x1xf32>
    %176 = vector.broadcast %175 : vector<8x1xf32> to vector<8x8xf32>
    %177 = arith.mulf %172, %176 : vector<8x8xf32>
    %178 = arith.truncf %177 : vector<8x8xf32> to vector<8x8xbf16>
    %179 = vector.extract_strided_slice %158 {offsets = [0, 0], sizes = [8, 32], strides = [1, 1]} : vector<8x128xbf16> to vector<8x32xbf16>
    %cst_79 = arith.constant dense<0.000000e+00> : vector<8x32xf32>
    %180 = tpu.matmul %178, %179, %cst_79 {dimension_numbers = #tpu.dot_dimension_numbers<[1], [0], [0], [1], [0, 0, 1, 1], [], []>} : vector<8x8xbf16>, vector<8x32xbf16>, vector<8x32xf32> -> vector<8x32xf32>
    %181 = arith.truncf %180 : vector<8x32xf32> to vector<8x32xbf16>
    %c0_80 = arith.constant 0 : index
    %c0_81 = arith.constant 0 : index
    %182 = vector.load %arg26[%c0_80, %c0_81] : memref<8x128xbf16, #tpu.memory_space<vmem>>, vector<8x32xbf16>
    tpu.vector_store %arg26[%c0_80, %c0_81], %181 {strides = array<i32>} : memref<8x128xbf16, #tpu.memory_space<vmem>>, vector<8x32xbf16>,
    %183 = vector.extract_strided_slice %156 {offsets = [0, 32], sizes = [8, 32], strides = [1, 1]} : vector<8x128xbf16> to vector<8x32xbf16>
    %184 = vector.extract_strided_slice %157 {offsets = [0, 32], sizes = [8, 32], strides = [1, 1]} : vector<8x128xbf16> to vector<8x32xbf16>
    %cst_82 = arith.constant dense<0.000000e+00> : vector<8x8xf32>
    %185 = tpu.matmul %183, %184, %cst_82 {dimension_numbers = #tpu.dot_dimension_numbers<[1], [1], [0], [0], [0, 0, 1, 0], [], []>} : vector<8x32xbf16>, vector<8x32xbf16>, vector<8x8xf32> -> vector<8x8xf32>
    %cst_83 = arith.constant 0.176776692 : f32
    %186 = vector.broadcast %cst_83 : f32 to vector<8x8xf32>
    %187 = arith.mulf %185, %186 : vector<8x8xf32>
    %cst_84 = arith.constant -1.000000e+09 : f32
    %188 = vector.shape_cast %10 : vector<1x8xi1> to vector<1x8xi1>
    %189 = vector.broadcast %188 : vector<1x8xi1> to vector<8x8xi1>
    %190 = vector.broadcast %cst_84 : f32 to vector<8x8xf32>
    %191 = arith.select %189, %187, %190 : vector<8x8xi1>, vector<8x8xf32>
    %cst_85 = arith.constant dense<0xFF800000> : vector<8xf32>
    %192 = vector.multi_reduction <maximumf>, %191, %cst_85 [1] : vector<8x8xf32> to vector<8xf32>
    %193 = vector.shape_cast %192 : vector<8xf32> to vector<8x1xf32>
    %194 = vector.broadcast %193 : vector<8x1xf32> to vector<8x8xf32>
    %195 = arith.subf %191, %194 : vector<8x8xf32>
    %196 = math.exp %195 : vector<8x8xf32>
    %cst_86 = arith.constant dense<0.000000e+00> : vector<8xf32>
    %197 = vector.multi_reduction <add>, %196, %cst_86 [1] : vector<8x8xf32> to vector<8xf32>
    %198 = vector.shape_cast %197 : vector<8xf32> to vector<8x1xf32>
    %199 = tpu.reciprocal %198 {approx = true} : vector<8x1xf32> -> vector<8x1xf32>
    %200 = vector.broadcast %199 : vector<8x1xf32> to vector<8x8xf32>
    %201 = arith.mulf %196, %200 : vector<8x8xf32>
    %202 = arith.truncf %201 : vector<8x8xf32> to vector<8x8xbf16>
    %203 = vector.extract_strided_slice %158 {offsets = [0, 32], sizes = [8, 32], strides = [1, 1]} : vector<8x128xbf16> to vector<8x32xbf16>
    %cst_87 = arith.constant dense<0.000000e+00> : vector<8x32xf32>
    %204 = tpu.matmul %202, %203, %cst_87 {dimension_numbers = #tpu.dot_dimension_numbers<[1], [0], [0], [1], [0, 0, 1, 1], [], []>} : vector<8x8xbf16>, vector<8x32xbf16>, vector<8x32xf32> -> vector<8x32xf32>
    %205 = arith.truncf %204 : vector<8x32xf32> to vector<8x32xbf16>
    %c0_88 = arith.constant 0 : index
    %c32_89 = arith.constant 32 : index
    %206 = vector.load %arg26[%c0_88, %c32_89] : memref<8x128xbf16, #tpu.memory_space<vmem>>, vector<8x32xbf16>
    tpu.vector_store %arg26[%c0_88, %c32_89], %205 {strides = array<i32>} : memref<8x128xbf16, #tpu.memory_space<vmem>>, vector<8x32xbf16>,
    %207 = vector.extract_strided_slice %156 {offsets = [0, 64], sizes = [8, 32], strides = [1, 1]} : vector<8x128xbf16> to vector<8x32xbf16>
    %208 = vector.extract_strided_slice %157 {offsets = [0, 64], sizes = [8, 32], strides = [1, 1]} : vector<8x128xbf16> to vector<8x32xbf16>
    %cst_90 = arith.constant dense<0.000000e+00> : vector<8x8xf32>
    %209 = tpu.matmul %207, %208, %cst_90 {dimension_numbers = #tpu.dot_dimension_numbers<[1], [1], [0], [0], [0, 0, 1, 0], [], []>} : vector<8x32xbf16>, vector<8x32xbf16>, vector<8x8xf32> -> vector<8x8xf32>
    %cst_91 = arith.constant 0.176776692 : f32
    %210 = vector.broadcast %cst_91 : f32 to vector<8x8xf32>
    %211 = arith.mulf %209, %210 : vector<8x8xf32>
    %cst_92 = arith.constant -1.000000e+09 : f32
    %212 = vector.shape_cast %10 : vector<1x8xi1> to vector<1x8xi1>
    %213 = vector.broadcast %212 : vector<1x8xi1> to vector<8x8xi1>
    %214 = vector.broadcast %cst_92 : f32 to vector<8x8xf32>
    %215 = arith.select %213, %211, %214 : vector<8x8xi1>, vector<8x8xf32>
    %cst_93 = arith.constant dense<0xFF800000> : vector<8xf32>
    %216 = vector.multi_reduction <maximumf>, %215, %cst_93 [1] : vector<8x8xf32> to vector<8xf32>
    %217 = vector.shape_cast %216 : vector<8xf32> to vector<8x1xf32>
    %218 = vector.broadcast %217 : vector<8x1xf32> to vector<8x8xf32>
    %219 = arith.subf %215, %218 : vector<8x8xf32>
    %220 = math.exp %219 : vector<8x8xf32>
    %cst_94 = arith.constant dense<0.000000e+00> : vector<8xf32>
    %221 = vector.multi_reduction <add>, %220, %cst_94 [1] : vector<8x8xf32> to vector<8xf32>
    %222 = vector.shape_cast %221 : vector<8xf32> to vector<8x1xf32>
    %223 = tpu.reciprocal %222 {approx = true} : vector<8x1xf32> -> vector<8x1xf32>
    %224 = vector.broadcast %223 : vector<8x1xf32> to vector<8x8xf32>
    %225 = arith.mulf %220, %224 : vector<8x8xf32>
    %226 = arith.truncf %225 : vector<8x8xf32> to vector<8x8xbf16>
    %227 = vector.extract_strided_slice %158 {offsets = [0, 64], sizes = [8, 32], strides = [1, 1]} : vector<8x128xbf16> to vector<8x32xbf16>
    %cst_95 = arith.constant dense<0.000000e+00> : vector<8x32xf32>
    %228 = tpu.matmul %226, %227, %cst_95 {dimension_numbers = #tpu.dot_dimension_numbers<[1], [0], [0], [1], [0, 0, 1, 1], [], []>} : vector<8x8xbf16>, vector<8x32xbf16>, vector<8x32xf32> -> vector<8x32xf32>
    %229 = arith.truncf %228 : vector<8x32xf32> to vector<8x32xbf16>
    %c0_96 = arith.constant 0 : index
    %c64_97 = arith.constant 64 : index
    %230 = vector.load %arg26[%c0_96, %c64_97] : memref<8x128xbf16, #tpu.memory_space<vmem>>, vector<8x32xbf16>
    tpu.vector_store %arg26[%c0_96, %c64_97], %229 {strides = array<i32>} : memref<8x128xbf16, #tpu.memory_space<vmem>>, vector<8x32xbf16>,
    %231 = vector.extract_strided_slice %156 {offsets = [0, 96], sizes = [8, 32], strides = [1, 1]} : vector<8x128xbf16> to vector<8x32xbf16>
    %232 = vector.extract_strided_slice %157 {offsets = [0, 96], sizes = [8, 32], strides = [1, 1]} : vector<8x128xbf16> to vector<8x32xbf16>
    %cst_98 = arith.constant dense<0.000000e+00> : vector<8x8xf32>
    %233 = tpu.matmul %231, %232, %cst_98 {dimension_numbers = #tpu.dot_dimension_numbers<[1], [1], [0], [0], [0, 0, 1, 0], [], []>} : vector<8x32xbf16>, vector<8x32xbf16>, vector<8x8xf32> -> vector<8x8xf32>
    %cst_99 = arith.constant 0.176776692 : f32
    %234 = vector.broadcast %cst_99 : f32 to vector<8x8xf32>
    %235 = arith.mulf %233, %234 : vector<8x8xf32>
    %cst_100 = arith.constant -1.000000e+09 : f32
    %236 = vector.shape_cast %10 : vector<1x8xi1> to vector<1x8xi1>
    %237 = vector.broadcast %236 : vector<1x8xi1> to vector<8x8xi1>
    %238 = vector.broadcast %cst_100 : f32 to vector<8x8xf32>
    %239 = arith.select %237, %235, %238 : vector<8x8xi1>, vector<8x8xf32>
    %cst_101 = arith.constant dense<0xFF800000> : vector<8xf32>
    %240 = vector.multi_reduction <maximumf>, %239, %cst_101 [1] : vector<8x8xf32> to vector<8xf32>
    %241 = vector.shape_cast %240 : vector<8xf32> to vector<8x1xf32>
    %242 = vector.broadcast %241 : vector<8x1xf32> to vector<8x8xf32>
    %243 = arith.subf %239, %242 : vector<8x8xf32>
    %244 = math.exp %243 : vector<8x8xf32>
    %cst_102 = arith.constant dense<0.000000e+00> : vector<8xf32>
    %245 = vector.multi_reduction <add>, %244, %cst_102 [1] : vector<8x8xf32> to vector<8xf32>
    %246 = vector.shape_cast %245 : vector<8xf32> to vector<8x1xf32>
    %247 = tpu.reciprocal %246 {approx = true} : vector<8x1xf32> -> vector<8x1xf32>
    %248 = vector.broadcast %247 : vector<8x1xf32> to vector<8x8xf32>
    %249 = arith.mulf %244, %248 : vector<8x8xf32>
    %250 = arith.truncf %249 : vector<8x8xf32> to vector<8x8xbf16>
    %251 = vector.extract_strided_slice %158 {offsets = [0, 96], sizes = [8, 32], strides = [1, 1]} : vector<8x128xbf16> to vector<8x32xbf16>
    %cst_103 = arith.constant dense<0.000000e+00> : vector<8x32xf32>
    %252 = tpu.matmul %250, %251, %cst_103 {dimension_numbers = #tpu.dot_dimension_numbers<[1], [0], [0], [1], [0, 0, 1, 1], [], []>} : vector<8x8xbf16>, vector<8x32xbf16>, vector<8x32xf32> -> vector<8x32xf32>
    %253 = arith.truncf %252 : vector<8x32xf32> to vector<8x32xbf16>
    %c0_104 = arith.constant 0 : index
    %c96_105 = arith.constant 96 : index
    %254 = vector.load %arg26[%c0_104, %c96_105] : memref<8x128xbf16, #tpu.memory_space<vmem>>, vector<8x32xbf16>
    tpu.vector_store %arg26[%c0_104, %c96_105], %253 {strides = array<i32>} : memref<8x128xbf16, #tpu.memory_space<vmem>>, vector<8x32xbf16>,
    %c0_106 = arith.constant 0 : index
    %c0_107 = arith.constant 0 : index
    %255 = vector.load %arg26[%c0_106, %c0_107] : memref<8x128xbf16, #tpu.memory_space<vmem>>, vector<8x128xbf16>
    %c0_108 = arith.constant 0 : index
    %c0_109 = arith.constant 0 : index
    %256 = vector.load %arg15[%c0_108, %c0_109] : memref<128x128xbf16, #tpu.memory_space<vmem>>, vector<128x128xbf16>
    %cst_110 = arith.constant dense<0.000000e+00> : vector<8x128xf32>
    %257 = tpu.matmul %255, %256, %cst_110 {dimension_numbers = #tpu.dot_dimension_numbers<[1], [0], [0], [1], [0, 0, 1, 1], [], []>} : vector<8x128xbf16>, vector<128x128xbf16>, vector<8x128xf32> -> vector<8x128xf32>
    %c0_111 = arith.constant 0 : index
    %c0_112 = arith.constant 0 : index
    %258 = vector.load %arg16[%c0_111, %c0_112] : memref<1x128xf32, #tpu.memory_space<vmem>>, vector<1x128xf32>
    %259 = vector.broadcast %258 : vector<1x128xf32> to vector<8x128xf32>
    %260 = arith.addf %257, %259 : vector<8x128xf32>
    %261 = arith.addf %260, %140 : vector<8x128xf32>
    %c0_113 = arith.constant 0 : index
    %c0_114 = arith.constant 0 : index
    %262 = vector.load %arg17[%c0_113, %c0_114] : memref<1x128xf32, #tpu.memory_space<vmem>>, vector<1x128xf32>
    %c0_115 = arith.constant 0 : index
    %c0_116 = arith.constant 0 : index
    %263 = vector.load %arg18[%c0_115, %c0_116] : memref<1x128xf32, #tpu.memory_space<vmem>>, vector<1x128xf32>
    %cst_117 = arith.constant dense<0.000000e+00> : vector<8xf32>
    %264 = vector.multi_reduction <add>, %261, %cst_117 [1] : vector<8x128xf32> to vector<8xf32>
    %265 = vector.shape_cast %264 : vector<8xf32> to vector<8x1xf32>
    %cst_118 = arith.constant 1.280000e+02 : f32
    %266 = vector.broadcast %cst_118 : f32 to vector<8x1xf32>
    %267 = arith.divf %265, %266 : vector<8x1xf32>
    %268 = vector.broadcast %267 : vector<8x1xf32> to vector<8x128xf32>
    %269 = arith.subf %261, %268 : vector<8x128xf32>
    %270 = arith.mulf %269, %269 : vector<8x128xf32>
    %cst_119 = arith.constant dense<0.000000e+00> : vector<8xf32>
    %271 = vector.multi_reduction <add>, %270, %cst_119 [1] : vector<8x128xf32> to vector<8xf32>
    %272 = vector.shape_cast %271 : vector<8xf32> to vector<8x1xf32>
    %cst_120 = arith.constant 1.280000e+02 : f32
    %273 = vector.broadcast %cst_120 : f32 to vector<8x1xf32>
    %274 = arith.divf %272, %273 : vector<8x1xf32>
    %275 = vector.broadcast %267 : vector<8x1xf32> to vector<8x128xf32>
    %276 = arith.subf %261, %275 : vector<8x128xf32>
    %cst_121 = arith.constant 9.99999974E-6 : f32
    %277 = vector.broadcast %cst_121 : f32 to vector<8x1xf32>
    %278 = arith.addf %274, %277 : vector<8x1xf32>
    %279 = math.rsqrt %278 : vector<8x1xf32>
    %280 = vector.broadcast %279 : vector<8x1xf32> to vector<8x128xf32>
    %281 = arith.mulf %276, %280 : vector<8x128xf32>
    %282 = vector.broadcast %262 : vector<1x128xf32> to vector<8x128xf32>
    %283 = arith.mulf %281, %282 : vector<8x128xf32>
    %284 = vector.broadcast %263 : vector<1x128xf32> to vector<8x128xf32>
    %285 = arith.addf %283, %284 : vector<8x128xf32>
    %286 = arith.truncf %285 : vector<8x128xf32> to vector<8x128xbf16>
    %c0_122 = arith.constant 0 : index
    %c0_123 = arith.constant 0 : index
    %287 = vector.load %arg19[%c0_122, %c0_123] : memref<128x256xbf16, #tpu.memory_space<vmem>>, vector<128x256xbf16>
    %cst_124 = arith.constant dense<0.000000e+00> : vector<8x256xf32>
    %288 = tpu.matmul %286, %287, %cst_124 {dimension_numbers = #tpu.dot_dimension_numbers<[1], [0], [0], [1], [0, 0, 1, 1], [], []>} : vector<8x128xbf16>, vector<128x256xbf16>, vector<8x256xf32> -> vector<8x256xf32>
    %c0_125 = arith.constant 0 : index
    %c0_126 = arith.constant 0 : index
    %289 = vector.load %arg20[%c0_125, %c0_126] : memref<1x256xf32, #tpu.memory_space<vmem>>, vector<1x256xf32>
    %290 = vector.broadcast %289 : vector<1x256xf32> to vector<8x256xf32>
    %291 = arith.addf %288, %290 : vector<8x256xf32>
    %cst_127 = arith.constant 0.000000e+00 : f32
    %292 = vector.broadcast %cst_127 : f32 to vector<8x256xf32>
    %293 = arith.maximumf %291, %292 : vector<8x256xf32>
    %294 = arith.truncf %293 : vector<8x256xf32> to vector<8x256xbf16>
    %c0_128 = arith.constant 0 : index
    %c0_129 = arith.constant 0 : index
    %295 = vector.load %arg21[%c0_128, %c0_129] : memref<256x128xbf16, #tpu.memory_space<vmem>>, vector<256x128xbf16>
    %cst_130 = arith.constant dense<0.000000e+00> : vector<8x128xf32>
    %296 = tpu.matmul %294, %295, %cst_130 {dimension_numbers = #tpu.dot_dimension_numbers<[1], [0], [0], [1], [0, 0, 1, 1], [], []>} : vector<8x256xbf16>, vector<256x128xbf16>, vector<8x128xf32> -> vector<8x128xf32>
    %c0_131 = arith.constant 0 : index
    %c0_132 = arith.constant 0 : index
    %297 = vector.load %arg22[%c0_131, %c0_132] : memref<1x128xf32, #tpu.memory_space<vmem>>, vector<1x128xf32>
    %298 = vector.broadcast %297 : vector<1x128xf32> to vector<8x128xf32>
    %299 = arith.addf %296, %298 : vector<8x128xf32>
    %300 = arith.addf %299, %285 : vector<8x128xf32>
    %c0_133 = arith.constant 0 : index
    %c0_134 = arith.constant 0 : index
    %301 = vector.load %arg23[%c0_133, %c0_134] : memref<1x128xf32, #tpu.memory_space<vmem>>, vector<1x128xf32>
    %c0_135 = arith.constant 0 : index
    %c0_136 = arith.constant 0 : index
    %302 = vector.load %arg24[%c0_135, %c0_136] : memref<1x128xf32, #tpu.memory_space<vmem>>, vector<1x128xf32>
    %cst_137 = arith.constant dense<0.000000e+00> : vector<8xf32>
    %303 = vector.multi_reduction <add>, %300, %cst_137 [1] : vector<8x128xf32> to vector<8xf32>
    %304 = vector.shape_cast %303 : vector<8xf32> to vector<8x1xf32>
    %cst_138 = arith.constant 1.280000e+02 : f32
    %305 = vector.broadcast %cst_138 : f32 to vector<8x1xf32>
    %306 = arith.divf %304, %305 : vector<8x1xf32>
    %307 = vector.broadcast %306 : vector<8x1xf32> to vector<8x128xf32>
    %308 = arith.subf %300, %307 : vector<8x128xf32>
    %309 = arith.mulf %308, %308 : vector<8x128xf32>
    %cst_139 = arith.constant dense<0.000000e+00> : vector<8xf32>
    %310 = vector.multi_reduction <add>, %309, %cst_139 [1] : vector<8x128xf32> to vector<8xf32>
    %311 = vector.shape_cast %310 : vector<8xf32> to vector<8x1xf32>
    %cst_140 = arith.constant 1.280000e+02 : f32
    %312 = vector.broadcast %cst_140 : f32 to vector<8x1xf32>
    %313 = arith.divf %311, %312 : vector<8x1xf32>
    %314 = vector.broadcast %306 : vector<8x1xf32> to vector<8x128xf32>
    %315 = arith.subf %300, %314 : vector<8x128xf32>
    %cst_141 = arith.constant 9.99999974E-6 : f32
    %316 = vector.broadcast %cst_141 : f32 to vector<8x1xf32>
    %317 = arith.addf %313, %316 : vector<8x1xf32>
    %318 = math.rsqrt %317 : vector<8x1xf32>
    %319 = vector.broadcast %318 : vector<8x1xf32> to vector<8x128xf32>
    %320 = arith.mulf %315, %319 : vector<8x128xf32>
    %321 = vector.broadcast %301 : vector<1x128xf32> to vector<8x128xf32>
    %322 = arith.mulf %320, %321 : vector<8x128xf32>
    %323 = vector.broadcast %302 : vector<1x128xf32> to vector<8x128xf32>
    %324 = arith.addf %322, %323 : vector<8x128xf32>
    %325 = arith.truncf %324 : vector<8x128xf32> to vector<8x128xbf16>
    %c0_142 = arith.constant 0 : index
    %c0_143 = arith.constant 0 : index
    %c0_144 = arith.constant 0 : index
    %326 = vector.load %arg25[%c0_142, %c0_143, %c0_144] : memref<1x8x128xbf16, #tpu.memory_space<vmem>>, vector<1x8x128xbf16>
    %327 = vector.shape_cast %326 : vector<1x8x128xbf16> to vector<8x128xbf16>
    %328 = vector.shape_cast %325 : vector<8x128xbf16> to vector<1x8x128xbf16>
    tpu.vector_store %arg25[%c0_142, %c0_143, %c0_144], %328 {strides = array<i32>} : memref<1x8x128xbf16, #tpu.memory_space<vmem>>, vector<1x8x128xbf16>,
    return
  }
  func.func @transform_0(%arg0: i32) -> (i32, i32, i32) {
    %c0_i32 = arith.constant 0 : i32
    %c0_i32_0 = arith.constant 0 : i32
    %c0_i32_1 = arith.constant 0 : i32
    return %arg0, %c0_i32, %c0_i32_0 : i32, i32, i32
  }
  func.func @transform_1(%arg0: i32) -> (i32, i32, i32) {
    %c0_i32 = arith.constant 0 : i32
    %c0_i32_0 = arith.constant 0 : i32
    %c0_i32_1 = arith.constant 0 : i32
    return %arg0, %c0_i32, %c0_i32_0 : i32, i32, i32
  }
  func.func @transform_2(%arg0: i32) -> (i32, i32, i32, i32) {
    %c0_i32 = arith.constant 0 : i32
    %c0_i32_0 = arith.constant 0 : i32
    %c0_i32_1 = arith.constant 0 : i32
    %c0_i32_2 = arith.constant 0 : i32
    return %arg0, %c0_i32, %c0_i32_0, %c0_i32_1 : i32, i32, i32, i32
  }
  func.func @transform_3(%arg0: i32) -> (i32, i32, i32, i32) {
    %c0_i32 = arith.constant 0 : i32
    %c0_i32_0 = arith.constant 0 : i32
    %c0_i32_1 = arith.constant 0 : i32
    %c0_i32_2 = arith.constant 0 : i32
    return %arg0, %c0_i32, %c0_i32_0, %c0_i32_1 : i32, i32, i32, i32
  }
  func.func @transform_4(%arg0: i32) -> (i32, i32) {
    %c0_i32 = arith.constant 0 : i32
    %c0_i32_0 = arith.constant 0 : i32
    %c0_i32_1 = arith.constant 0 : i32
    return %c0_i32, %c0_i32_0 : i32, i32
  }
  func.func @transform_5(%arg0: i32) -> (i32, i32) {
    %c0_i32 = arith.constant 0 : i32
    %c0_i32_0 = arith.constant 0 : i32
    %c0_i32_1 = arith.constant 0 : i32
    return %c0_i32, %c0_i32_0 : i32, i32
  }
  func.func @transform_6(%arg0: i32) -> (i32, i32) {
    %c0_i32 = arith.constant 0 : i32
    %c0_i32_0 = arith.constant 0 : i32
    %c0_i32_1 = arith.constant 0 : i32
    return %c0_i32, %c0_i32_0 : i32, i32
  }
  func.func @transform_7(%arg0: i32) -> (i32, i32) {
    %c0_i32 = arith.constant 0 : i32
    %c0_i32_0 = arith.constant 0 : i32
    %c0_i32_1 = arith.constant 0 : i32
    return %c0_i32, %c0_i32_0 : i32, i32
  }
  func.func @transform_8(%arg0: i32) -> (i32, i32) {
    %c0_i32 = arith.constant 0 : i32
    %c0_i32_0 = arith.constant 0 : i32
    %c0_i32_1 = arith.constant 0 : i32
    return %c0_i32, %c0_i32_0 : i32, i32
  }
  func.func @transform_9(%arg0: i32) -> (i32, i32) {
    %c0_i32 = arith.constant 0 : i32
    %c0_i32_0 = arith.constant 0 : i32
    %c0_i32_1 = arith.constant 0 : i32
    return %c0_i32, %c0_i32_0 : i32, i32
  }
  func.func @transform_10(%arg0: i32) -> (i32, i32) {
    %c0_i32 = arith.constant 0 : i32
    %c0_i32_0 = arith.constant 0 : i32
    %c0_i32_1 = arith.constant 0 : i32
    return %c0_i32, %c0_i32_0 : i32, i32
  }
  func.func @transform_11(%arg0: i32) -> (i32, i32) {
    %c0_i32 = arith.constant 0 : i32
    %c0_i32_0 = arith.constant 0 : i32
    %c0_i32_1 = arith.constant 0 : i32
    return %c0_i32, %c0_i32_0 : i32, i32
  }
  func.func @transform_12(%arg0: i32) -> (i32, i32) {
    %c0_i32 = arith.constant 0 : i32
    %c0_i32_0 = arith.constant 0 : i32
    %c0_i32_1 = arith.constant 0 : i32
    return %c0_i32, %c0_i32_0 : i32, i32
  }
  func.func @transform_13(%arg0: i32) -> (i32, i32) {
    %c0_i32 = arith.constant 0 : i32
    %c0_i32_0 = arith.constant 0 : i32
    %c0_i32_1 = arith.constant 0 : i32
    return %c0_i32, %c0_i32_0 : i32, i32
  }
  func.func @transform_14(%arg0: i32) -> (i32, i32) {
    %c0_i32 = arith.constant 0 : i32
    %c0_i32_0 = arith.constant 0 : i32
    %c0_i32_1 = arith.constant 0 : i32
    return %c0_i32, %c0_i32_0 : i32, i32
  }
  func.func @transform_15(%arg0: i32) -> (i32, i32) {
    %c0_i32 = arith.constant 0 : i32
    %c0_i32_0 = arith.constant 0 : i32
    %c0_i32_1 = arith.constant 0 : i32
    return %c0_i32, %c0_i32_0 : i32, i32
  }
  func.func @transform_16(%arg0: i32) -> (i32, i32) {
    %c0_i32 = arith.constant 0 : i32
    %c0_i32_0 = arith.constant 0 : i32
    %c0_i32_1 = arith.constant 0 : i32
    return %c0_i32, %c0_i32_0 : i32, i32
  }
  func.func @transform_17(%arg0: i32) -> (i32, i32) {
    %c0_i32 = arith.constant 0 : i32
    %c0_i32_0 = arith.constant 0 : i32
    %c0_i32_1 = arith.constant 0 : i32
    return %c0_i32, %c0_i32_0 : i32, i32
  }
  func.func @transform_18(%arg0: i32) -> (i32, i32) {
    %c0_i32 = arith.constant 0 : i32
    %c0_i32_0 = arith.constant 0 : i32
    %c0_i32_1 = arith.constant 0 : i32
    return %c0_i32, %c0_i32_0 : i32, i32
  }
  func.func @transform_19(%arg0: i32) -> (i32, i32) {
    %c0_i32 = arith.constant 0 : i32
    %c0_i32_0 = arith.constant 0 : i32
    %c0_i32_1 = arith.constant 0 : i32
    return %c0_i32, %c0_i32_0 : i32, i32
  }
  func.func @transform_20(%arg0: i32) -> (i32, i32) {
    %c0_i32 = arith.constant 0 : i32
    %c0_i32_0 = arith.constant 0 : i32
    %c0_i32_1 = arith.constant 0 : i32
    return %c0_i32, %c0_i32_0 : i32, i32
  }
  func.func @transform_21(%arg0: i32) -> (i32, i32) {
    %c0_i32 = arith.constant 0 : i32
    %c0_i32_0 = arith.constant 0 : i32
    %c0_i32_1 = arith.constant 0 : i32
    return %c0_i32, %c0_i32_0 : i32, i32
  }
  func.func @transform_22(%arg0: i32) -> (i32, i32) {
    %c0_i32 = arith.constant 0 : i32
    %c0_i32_0 = arith.constant 0 : i32
    %c0_i32_1 = arith.constant 0 : i32
    return %c0_i32, %c0_i32_0 : i32, i32
  }
  func.func @transform_23(%arg0: i32) -> (i32, i32) {
    %c0_i32 = arith.constant 0 : i32
    %c0_i32_0 = arith.constant 0 : i32
    %c0_i32_1 = arith.constant 0 : i32
    return %c0_i32, %c0_i32_0 : i32, i32
  }
  func.func @transform_24(%arg0: i32) -> (i32, i32, i32) {
    %c0_i32 = arith.constant 0 : i32
    %c0_i32_0 = arith.constant 0 : i32
    %c0_i32_1 = arith.constant 0 : i32
    return %arg0, %c0_i32, %c0_i32_0 : i32, i32, i32
  }
}

module attributes {stable_mosaic.version = 11 : i64} {
  func.func @_decoder_layer_kernel(%arg0: i32, %arg1: memref<1x8x128xbf16, #tpu.memory_space<vmem>>, %arg2: memref<1x8x128xbf16, #tpu.memory_space<vmem>>, %arg3: memref<1x1x8x8xf32, #tpu.memory_space<vmem>>, %arg4: memref<1x1x1x8xf32, #tpu.memory_space<vmem>>, %arg5: memref<128x384xbf16, #tpu.memory_space<vmem>>, %arg6: memref<1x384xf32, #tpu.memory_space<vmem>>, %arg7: memref<128x128xbf16, #tpu.memory_space<vmem>>, %arg8: memref<1x128xf32, #tpu.memory_space<vmem>>, %arg9: memref<1x128xf32, #tpu.memory_space<vmem>>, %arg10: memref<1x128xf32, #tpu.memory_space<vmem>>, %arg11: memref<128x128xbf16, #tpu.memory_space<vmem>>, %arg12: memref<1x128xf32, #tpu.memory_space<vmem>>, %arg13: memref<128x256xbf16, #tpu.memory_space<vmem>>, %arg14: memref<1x256xf32, #tpu.memory_space<vmem>>, %arg15: memref<128x128xbf16, #tpu.memory_space<vmem>>, %arg16: memref<1x128xf32, #tpu.memory_space<vmem>>, %arg17: memref<1x128xf32, #tpu.memory_space<vmem>>, %arg18: memref<1x128xf32, #tpu.memory_space<vmem>>, %arg19: memref<128x256xbf16, #tpu.memory_space<vmem>>, %arg20: memref<1x256xf32, #tpu.memory_space<vmem>>, %arg21: memref<256x128xbf16, #tpu.memory_space<vmem>>, %arg22: memref<1x128xf32, #tpu.memory_space<vmem>>, %arg23: memref<1x128xf32, #tpu.memory_space<vmem>>, %arg24: memref<1x128xf32, #tpu.memory_space<vmem>>, %arg25: memref<1x8x128xbf16, #tpu.memory_space<vmem>>, %arg26: memref<8x128xbf16, #tpu.memory_space<vmem>>) attributes {dimension_semantics = [#tpu.dimension_semantics<parallel>], iteration_bounds = array<i64: 2>, scalar_prefetch = 0 : i64, scratch_operands = 1 : i64, tpu.core_type = #tpu.core_type<tc>, window_params = [{transform_indices = @transform_0, window_bounds = array<i64: 1, 8, 128>}, {transform_indices = @transform_1, window_bounds = array<i64: 1, 8, 128>}, {transform_indices = @transform_2, window_bounds = array<i64: 1, 1, 8, 8>}, {transform_indices = @transform_3, window_bounds = array<i64: 1, 1, 1, 8>}, {pipeline_mode = #tpu.pipeline_mode<synchronous>, transform_indices = @transform_4, window_bounds = array<i64: 128, 384>}, {pipeline_mode = #tpu.pipeline_mode<synchronous>, transform_indices = @transform_5, window_bounds = array<i64: 1, 384>}, {pipeline_mode = #tpu.pipeline_mode<synchronous>, transform_indices = @transform_6, window_bounds = array<i64: 128, 128>}, {pipeline_mode = #tpu.pipeline_mode<synchronous>, transform_indices = @transform_7, window_bounds = array<i64: 1, 128>}, {pipeline_mode = #tpu.pipeline_mode<synchronous>, transform_indices = @transform_8, window_bounds = array<i64: 1, 128>}, {pipeline_mode = #tpu.pipeline_mode<synchronous>, transform_indices = @transform_9, window_bounds = array<i64: 1, 128>}, {pipeline_mode = #tpu.pipeline_mode<synchronous>, transform_indices = @transform_10, window_bounds = array<i64: 128, 128>}, {pipeline_mode = #tpu.pipeline_mode<synchronous>, transform_indices = @transform_11, window_bounds = array<i64: 1, 128>}, {pipeline_mode = #tpu.pipeline_mode<synchronous>, transform_indices = @transform_12, window_bounds = array<i64: 128, 256>}, {pipeline_mode = #tpu.pipeline_mode<synchronous>, transform_indices = @transform_13, window_bounds = array<i64: 1, 256>}, {pipeline_mode = #tpu.pipeline_mode<synchronous>, transform_indices = @transform_14, window_bounds = array<i64: 128, 128>}, {pipeline_mode = #tpu.pipeline_mode<synchronous>, transform_indices = @transform_15, window_bounds = array<i64: 1, 128>}, {pipeline_mode = #tpu.pipeline_mode<synchronous>, transform_indices = @transform_16, window_bounds = array<i64: 1, 128>}, {pipeline_mode = #tpu.pipeline_mode<synchronous>, transform_indices = @transform_17, window_bounds = array<i64: 1, 128>}, {pipeline_mode = #tpu.pipeline_mode<synchronous>, transform_indices = @transform_18, window_bounds = array<i64: 128, 256>}, {pipeline_mode = #tpu.pipeline_mode<synchronous>, transform_indices = @transform_19, window_bounds = array<i64: 1, 256>}, {pipeline_mode = #tpu.pipeline_mode<synchronous>, transform_indices = @transform_20, window_bounds = array<i64: 256, 128>}, {pipeline_mode = #tpu.pipeline_mode<synchronous>, transform_indices = @transform_21, window_bounds = array<i64: 1, 128>}, {pipeline_mode = #tpu.pipeline_mode<synchronous>, transform_indices = @transform_22, window_bounds = array<i64: 1, 128>}, {pipeline_mode = #tpu.pipeline_mode<synchronous>, transform_indices = @transform_23, window_bounds = array<i64: 1, 128>}, {transform_indices = @transform_24, window_bounds = array<i64: 1, 8, 128>}]} {
    %c0 = arith.constant 0 : index
    %c0_0 = arith.constant 0 : index
    %c0_1 = arith.constant 0 : index
    %0 = vector.load %arg1[%c0, %c0_0, %c0_1] : memref<1x8x128xbf16, #tpu.memory_space<vmem>>, vector<1x8x128xbf16>
    %1 = vector.shape_cast %0 : vector<1x8x128xbf16> to vector<8x128xbf16>
    %2 = arith.extf %1 : vector<8x128xbf16> to vector<8x128xf32>
    %c0_2 = arith.constant 0 : index
    %c0_3 = arith.constant 0 : index
    %c0_4 = arith.constant 0 : index
    %c0_5 = arith.constant 0 : index
    %3 = vector.load %arg3[%c0_2, %c0_3, %c0_4, %c0_5] : memref<1x1x8x8xf32, #tpu.memory_space<vmem>>, vector<1x1x8x8xf32>
    %4 = vector.shape_cast %3 : vector<1x1x8x8xf32> to vector<8x8xf32>
    %cst = arith.constant 0.000000e+00 : f32
    %5 = vector.broadcast %cst : f32 to vector<8x8xf32>
    %6 = arith.cmpf ogt, %4, %5 : vector<8x8xf32>
    %c0_6 = arith.constant 0 : index
    %c0_7 = arith.constant 0 : index
    %c0_8 = arith.constant 0 : index
    %c0_9 = arith.constant 0 : index
    %7 = vector.load %arg4[%c0_6, %c0_7, %c0_8, %c0_9] : memref<1x1x1x8xf32, #tpu.memory_space<vmem>>, vector<1x1x1x8xf32>
    %8 = vector.shape_cast %7 : vector<1x1x1x8xf32> to vector<1x8xf32>
    %cst_10 = arith.constant 0.000000e+00 : f32
    %9 = vector.broadcast %cst_10 : f32 to vector<1x8xf32>
    %10 = arith.cmpf ogt, %8, %9 : vector<1x8xf32>
    %c0_11 = arith.constant 0 : index
    %c0_12 = arith.constant 0 : index
    %11 = vector.load %arg5[%c0_11, %c0_12] : memref<128x384xbf16, #tpu.memory_space<vmem>>, vector<128x384xbf16>
    %cst_13 = arith.constant dense<0.000000e+00> : vector<8x384xf32>
    %12 = tpu.matmul %1, %11, %cst_13 {dimension_numbers = #tpu.dot_dimension_numbers<[1], [0], [0], [1], [0, 0, 1, 1], [], []>} : vector<8x128xbf16>, vector<128x384xbf16>, vector<8x384xf32> -> vector<8x384xf32>
    %c0_14 = arith.constant 0 : index
    %c0_15 = arith.constant 0 : index
    %13 = vector.load %arg6[%c0_14, %c0_15] : memref<1x384xf32, #tpu.memory_space<vmem>>, vector<1x384xf32>
    %14 = vector.broadcast %13 : vector<1x384xf32> to vector<8x384xf32>
    %15 = arith.addf %12, %14 : vector<8x384xf32>
    %16 = vector.extract_strided_slice %15 {offsets = [0, 0], sizes = [8, 128], strides = [1, 1]} : vector<8x384xf32> to vector<8x128xf32>
    %17 = vector.extract_strided_slice %15 {offsets = [0, 128], sizes = [8, 128], strides = [1, 1]} : vector<8x384xf32> to vector<8x128xf32>
    %18 = vector.extract_strided_slice %15 {offsets = [0, 256], sizes = [8, 128], strides = [1, 1]} : vector<8x384xf32> to vector<8x128xf32>
    %19 = arith.truncf %16 : vector<8x128xf32> to vector<8x128xbf16>
    %20 = arith.truncf %17 : vector<8x128xf32> to vector<8x128xbf16>
    %21 = arith.truncf %18 : vector<8x128xf32> to vector<8x128xbf16>
    %22 = vector.extract_strided_slice %19 {offsets = [0, 0], sizes = [8, 32], strides = [1, 1]} : vector<8x128xbf16> to vector<8x32xbf16>
    %23 = vector.extract_strided_slice %20 {offsets = [0, 0], sizes = [8, 32], strides = [1, 1]} : vector<8x128xbf16> to vector<8x32xbf16>
    %cst_16 = arith.constant dense<0.000000e+00> : vector<8x8xf32>
    %24 = tpu.matmul %22, %23, %cst_16 {dimension_numbers = #tpu.dot_dimension_numbers<[1], [1], [0], [0], [0, 0, 1, 0], [], []>} : vector<8x32xbf16>, vector<8x32xbf16>, vector<8x8xf32> -> vector<8x8xf32>
    %cst_17 = arith.constant 0.176776692 : f32
    %25 = vector.broadcast %cst_17 : f32 to vector<8x8xf32>
    %26 = arith.mulf %24, %25 : vector<8x8xf32>
    %cst_18 = arith.constant -1.000000e+09 : f32
    %27 = vector.broadcast %cst_18 : f32 to vector<8x8xf32>
    %28 = arith.select %6, %26, %27 : vector<8x8xi1>, vector<8x8xf32>
    %cst_19 = arith.constant dense<0xFF800000> : vector<8xf32>
    %29 = vector.multi_reduction <maximumf>, %28, %cst_19 [1] : vector<8x8xf32> to vector<8xf32>
    %30 = vector.shape_cast %29 : vector<8xf32> to vector<8x1xf32>
    %31 = vector.broadcast %30 : vector<8x1xf32> to vector<8x8xf32>
    %32 = arith.subf %28, %31 : vector<8x8xf32>
    %33 = math.exp %32 : vector<8x8xf32>
    %cst_20 = arith.constant dense<0.000000e+00> : vector<8xf32>
    %34 = vector.multi_reduction <add>, %33, %cst_20 [1] : vector<8x8xf32> to vector<8xf32>
    %35 = vector.shape_cast %34 : vector<8xf32> to vector<8x1xf32>
    %36 = tpu.reciprocal %35 {approx = true} : vector<8x1xf32> -> vector<8x1xf32>
    %37 = vector.broadcast %36 : vector<8x1xf32> to vector<8x8xf32>
    %38 = arith.mulf %33, %37 : vector<8x8xf32>
    %39 = arith.truncf %38 : vector<8x8xf32> to vector<8x8xbf16>
    %40 = vector.extract_strided_slice %21 {offsets = [0, 0], sizes = [8, 32], strides = [1, 1]} : vector<8x128xbf16> to vector<8x32xbf16>
    %cst_21 = arith.constant dense<0.000000e+00> : vector<8x32xf32>
    %41 = tpu.matmul %39, %40, %cst_21 {dimension_numbers = #tpu.dot_dimension_numbers<[1], [0], [0], [1], [0, 0, 1, 1], [], []>} : vector<8x8xbf16>, vector<8x32xbf16>, vector<8x32xf32> -> vector<8x32xf32>
    %42 = arith.truncf %41 : vector<8x32xf32> to vector<8x32xbf16>
    %c0_22 = arith.constant 0 : index
    %c0_23 = arith.constant 0 : index
    %43 = vector.load %arg26[%c0_22, %c0_23] : memref<8x128xbf16, #tpu.memory_space<vmem>>, vector<8x32xbf16>
    tpu.vector_store %arg26[%c0_22, %c0_23], %42 {strides = array<i32>} : memref<8x128xbf16, #tpu.memory_space<vmem>>, vector<8x32xbf16>,
    %44 = vector.extract_strided_slice %19 {offsets = [0, 32], sizes = [8, 32], strides = [1, 1]} : vector<8x128xbf16> to vector<8x32xbf16>
    %45 = vector.extract_strided_slice %20 {offsets = [0, 32], sizes = [8, 32], strides = [1, 1]} : vector<8x128xbf16> to vector<8x32xbf16>
    %cst_24 = arith.constant dense<0.000000e+00> : vector<8x8xf32>
    %46 = tpu.matmul %44, %45, %cst_24 {dimension_numbers = #tpu.dot_dimension_numbers<[1], [1], [0], [0], [0, 0, 1, 0], [], []>} : vector<8x32xbf16>, vector<8x32xbf16>, vector<8x8xf32> -> vector<8x8xf32>
    %cst_25 = arith.constant 0.176776692 : f32
    %47 = vector.broadcast %cst_25 : f32 to vector<8x8xf32>
    %48 = arith.mulf %46, %47 : vector<8x8xf32>
    %cst_26 = arith.constant -1.000000e+09 : f32
    %49 = vector.broadcast %cst_26 : f32 to vector<8x8xf32>
    %50 = arith.select %6, %48, %49 : vector<8x8xi1>, vector<8x8xf32>
    %cst_27 = arith.constant dense<0xFF800000> : vector<8xf32>
    %51 = vector.multi_reduction <maximumf>, %50, %cst_27 [1] : vector<8x8xf32> to vector<8xf32>
    %52 = vector.shape_cast %51 : vector<8xf32> to vector<8x1xf32>
    %53 = vector.broadcast %52 : vector<8x1xf32> to vector<8x8xf32>
    %54 = arith.subf %50, %53 : vector<8x8xf32>
    %55 = math.exp %54 : vector<8x8xf32>
    %cst_28 = arith.constant dense<0.000000e+00> : vector<8xf32>
    %56 = vector.multi_reduction <add>, %55, %cst_28 [1] : vector<8x8xf32> to vector<8xf32>
    %57 = vector.shape_cast %56 : vector<8xf32> to vector<8x1xf32>
    %58 = tpu.reciprocal %57 {approx = true} : vector<8x1xf32> -> vector<8x1xf32>
    %59 = vector.broadcast %58 : vector<8x1xf32> to vector<8x8xf32>
    %60 = arith.mulf %55, %59 : vector<8x8xf32>
    %61 = arith.truncf %60 : vector<8x8xf32> to vector<8x8xbf16>
    %62 = vector.extract_strided_slice %21 {offsets = [0, 32], sizes = [8, 32], strides = [1, 1]} : vector<8x128xbf16> to vector<8x32xbf16>
    %cst_29 = arith.constant dense<0.000000e+00> : vector<8x32xf32>
    %63 = tpu.matmul %61, %62, %cst_29 {dimension_numbers = #tpu.dot_dimension_numbers<[1], [0], [0], [1], [0, 0, 1, 1], [], []>} : vector<8x8xbf16>, vector<8x32xbf16>, vector<8x32xf32> -> vector<8x32xf32>
    %64 = arith.truncf %63 : vector<8x32xf32> to vector<8x32xbf16>
    %c0_30 = arith.constant 0 : index
    %c32 = arith.constant 32 : index
    %65 = vector.load %arg26[%c0_30, %c32] : memref<8x128xbf16, #tpu.memory_space<vmem>>, vector<8x32xbf16>
    tpu.vector_store %arg26[%c0_30, %c32], %64 {strides = array<i32>} : memref<8x128xbf16, #tpu.memory_space<vmem>>, vector<8x32xbf16>,
    %66 = vector.extract_strided_slice %19 {offsets = [0, 64], sizes = [8, 32], strides = [1, 1]} : vector<8x128xbf16> to vector<8x32xbf16>
    %67 = vector.extract_strided_slice %20 {offsets = [0, 64], sizes = [8, 32], strides = [1, 1]} : vector<8x128xbf16> to vector<8x32xbf16>
    %cst_31 = arith.constant dense<0.000000e+00> : vector<8x8xf32>
    %68 = tpu.matmul %66, %67, %cst_31 {dimension_numbers = #tpu.dot_dimension_numbers<[1], [1], [0], [0], [0, 0, 1, 0], [], []>} : vector<8x32xbf16>, vector<8x32xbf16>, vector<8x8xf32> -> vector<8x8xf32>
    %cst_32 = arith.constant 0.176776692 : f32
    %69 = vector.broadcast %cst_32 : f32 to vector<8x8xf32>
    %70 = arith.mulf %68, %69 : vector<8x8xf32>
    %cst_33 = arith.constant -1.000000e+09 : f32
    %71 = vector.broadcast %cst_33 : f32 to vector<8x8xf32>
    %72 = arith.select %6, %70, %71 : vector<8x8xi1>, vector<8x8xf32>
    %cst_34 = arith.constant dense<0xFF800000> : vector<8xf32>
    %73 = vector.multi_reduction <maximumf>, %72, %cst_34 [1] : vector<8x8xf32> to vector<8xf32>
    %74 = vector.shape_cast %73 : vector<8xf32> to vector<8x1xf32>
    %75 = vector.broadcast %74 : vector<8x1xf32> to vector<8x8xf32>
    %76 = arith.subf %72, %75 : vector<8x8xf32>
    %77 = math.exp %76 : vector<8x8xf32>
    %cst_35 = arith.constant dense<0.000000e+00> : vector<8xf32>
    %78 = vector.multi_reduction <add>, %77, %cst_35 [1] : vector<8x8xf32> to vector<8xf32>
    %79 = vector.shape_cast %78 : vector<8xf32> to vector<8x1xf32>
    %80 = tpu.reciprocal %79 {approx = true} : vector<8x1xf32> -> vector<8x1xf32>
    %81 = vector.broadcast %80 : vector<8x1xf32> to vector<8x8xf32>
    %82 = arith.mulf %77, %81 : vector<8x8xf32>
    %83 = arith.truncf %82 : vector<8x8xf32> to vector<8x8xbf16>
    %84 = vector.extract_strided_slice %21 {offsets = [0, 64], sizes = [8, 32], strides = [1, 1]} : vector<8x128xbf16> to vector<8x32xbf16>
    %cst_36 = arith.constant dense<0.000000e+00> : vector<8x32xf32>
    %85 = tpu.matmul %83, %84, %cst_36 {dimension_numbers = #tpu.dot_dimension_numbers<[1], [0], [0], [1], [0, 0, 1, 1], [], []>} : vector<8x8xbf16>, vector<8x32xbf16>, vector<8x32xf32> -> vector<8x32xf32>
    %86 = arith.truncf %85 : vector<8x32xf32> to vector<8x32xbf16>
    %c0_37 = arith.constant 0 : index
    %c64 = arith.constant 64 : index
    %87 = vector.load %arg26[%c0_37, %c64] : memref<8x128xbf16, #tpu.memory_space<vmem>>, vector<8x32xbf16>
    tpu.vector_store %arg26[%c0_37, %c64], %86 {strides = array<i32>} : memref<8x128xbf16, #tpu.memory_space<vmem>>, vector<8x32xbf16>,
    %88 = vector.extract_strided_slice %19 {offsets = [0, 96], sizes = [8, 32], strides = [1, 1]} : vector<8x128xbf16> to vector<8x32xbf16>
    %89 = vector.extract_strided_slice %20 {offsets = [0, 96], sizes = [8, 32], strides = [1, 1]} : vector<8x128xbf16> to vector<8x32xbf16>
    %cst_38 = arith.constant dense<0.000000e+00> : vector<8x8xf32>
    %90 = tpu.matmul %88, %89, %cst_38 {dimension_numbers = #tpu.dot_dimension_numbers<[1], [1], [0], [0], [0, 0, 1, 0], [], []>} : vector<8x32xbf16>, vector<8x32xbf16>, vector<8x8xf32> -> vector<8x8xf32>
    %cst_39 = arith.constant 0.176776692 : f32
    %91 = vector.broadcast %cst_39 : f32 to vector<8x8xf32>
    %92 = arith.mulf %90, %91 : vector<8x8xf32>
    %cst_40 = arith.constant -1.000000e+09 : f32
    %93 = vector.broadcast %cst_40 : f32 to vector<8x8xf32>
    %94 = arith.select %6, %92, %93 : vector<8x8xi1>, vector<8x8xf32>
    %cst_41 = arith.constant dense<0xFF800000> : vector<8xf32>
    %95 = vector.multi_reduction <maximumf>, %94, %cst_41 [1] : vector<8x8xf32> to vector<8xf32>
    %96 = vector.shape_cast %95 : vector<8xf32> to vector<8x1xf32>
    %97 = vector.broadcast %96 : vector<8x1xf32> to vector<8x8xf32>
    %98 = arith.subf %94, %97 : vector<8x8xf32>
    %99 = math.exp %98 : vector<8x8xf32>
    %cst_42 = arith.constant dense<0.000000e+00> : vector<8xf32>
    %100 = vector.multi_reduction <add>, %99, %cst_42 [1] : vector<8x8xf32> to vector<8xf32>
    %101 = vector.shape_cast %100 : vector<8xf32> to vector<8x1xf32>
    %102 = tpu.reciprocal %101 {approx = true} : vector<8x1xf32> -> vector<8x1xf32>
    %103 = vector.broadcast %102 : vector<8x1xf32> to vector<8x8xf32>
    %104 = arith.mulf %99, %103 : vector<8x8xf32>
    %105 = arith.truncf %104 : vector<8x8xf32> to vector<8x8xbf16>
    %106 = vector.extract_strided_slice %21 {offsets = [0, 96], sizes = [8, 32], strides = [1, 1]} : vector<8x128xbf16> to vector<8x32xbf16>
    %cst_43 = arith.constant dense<0.000000e+00> : vector<8x32xf32>
    %107 = tpu.matmul %105, %106, %cst_43 {dimension_numbers = #tpu.dot_dimension_numbers<[1], [0], [0], [1], [0, 0, 1, 1], [], []>} : vector<8x8xbf16>, vector<8x32xbf16>, vector<8x32xf32> -> vector<8x32xf32>
    %108 = arith.truncf %107 : vector<8x32xf32> to vector<8x32xbf16>
    %c0_44 = arith.constant 0 : index
    %c96 = arith.constant 96 : index
    %109 = vector.load %arg26[%c0_44, %c96] : memref<8x128xbf16, #tpu.memory_space<vmem>>, vector<8x32xbf16>
    tpu.vector_store %arg26[%c0_44, %c96], %108 {strides = array<i32>} : memref<8x128xbf16, #tpu.memory_space<vmem>>, vector<8x32xbf16>,
    %c0_45 = arith.constant 0 : index
    %c0_46 = arith.constant 0 : index
    %110 = vector.load %arg26[%c0_45, %c0_46] : memref<8x128xbf16, #tpu.memory_space<vmem>>, vector<8x128xbf16>
    %c0_47 = arith.constant 0 : index
    %c0_48 = arith.constant 0 : index
    %111 = vector.load %arg7[%c0_47, %c0_48] : memref<128x128xbf16, #tpu.memory_space<vmem>>, vector<128x128xbf16>
    %cst_49 = arith.constant dense<0.000000e+00> : vector<8x128xf32>
    %112 = tpu.matmul %110, %111, %cst_49 {dimension_numbers = #tpu.dot_dimension_numbers<[1], [0], [0], [1], [0, 0, 1, 1], [], []>} : vector<8x128xbf16>, vector<128x128xbf16>, vector<8x128xf32> -> vector<8x128xf32>
    %c0_50 = arith.constant 0 : index
    %c0_51 = arith.constant 0 : index
    %113 = vector.load %arg8[%c0_50, %c0_51] : memref<1x128xf32, #tpu.memory_space<vmem>>, vector<1x128xf32>
    %114 = vector.broadcast %113 : vector<1x128xf32> to vector<8x128xf32>
    %115 = arith.addf %112, %114 : vector<8x128xf32>
    %116 = arith.addf %2, %115 : vector<8x128xf32>
    %c0_52 = arith.constant 0 : index
    %c0_53 = arith.constant 0 : index
    %117 = vector.load %arg9[%c0_52, %c0_53] : memref<1x128xf32, #tpu.memory_space<vmem>>, vector<1x128xf32>
    %c0_54 = arith.constant 0 : index
    %c0_55 = arith.constant 0 : index
    %118 = vector.load %arg10[%c0_54, %c0_55] : memref<1x128xf32, #tpu.memory_space<vmem>>, vector<1x128xf32>
    %cst_56 = arith.constant dense<0.000000e+00> : vector<8xf32>
    %119 = vector.multi_reduction <add>, %116, %cst_56 [1] : vector<8x128xf32> to vector<8xf32>
    %120 = vector.shape_cast %119 : vector<8xf32> to vector<8x1xf32>
    %cst_57 = arith.constant 1.280000e+02 : f32
    %121 = vector.broadcast %cst_57 : f32 to vector<8x1xf32>
    %122 = arith.divf %120, %121 : vector<8x1xf32>
    %123 = vector.broadcast %122 : vector<8x1xf32> to vector<8x128xf32>
    %124 = arith.subf %116, %123 : vector<8x128xf32>
    %125 = arith.mulf %124, %124 : vector<8x128xf32>
    %cst_58 = arith.constant dense<0.000000e+00> : vector<8xf32>
    %126 = vector.multi_reduction <add>, %125, %cst_58 [1] : vector<8x128xf32> to vector<8xf32>
    %127 = vector.shape_cast %126 : vector<8xf32> to vector<8x1xf32>
    %cst_59 = arith.constant 1.280000e+02 : f32
    %128 = vector.broadcast %cst_59 : f32 to vector<8x1xf32>
    %129 = arith.divf %127, %128 : vector<8x1xf32>
    %130 = vector.broadcast %122 : vector<8x1xf32> to vector<8x128xf32>
    %131 = arith.subf %116, %130 : vector<8x128xf32>
    %cst_60 = arith.constant 9.99999997E-7 : f32
    %132 = vector.broadcast %cst_60 : f32 to vector<8x1xf32>
    %133 = arith.addf %129, %132 : vector<8x1xf32>
    %134 = math.rsqrt %133 : vector<8x1xf32>
    %135 = vector.broadcast %134 : vector<8x1xf32> to vector<8x128xf32>
    %136 = arith.mulf %131, %135 : vector<8x128xf32>
    %137 = vector.broadcast %117 : vector<1x128xf32> to vector<8x128xf32>
    %138 = arith.mulf %136, %137 : vector<8x128xf32>
    %139 = vector.broadcast %118 : vector<1x128xf32> to vector<8x128xf32>
    %140 = arith.addf %138, %139 : vector<8x128xf32>
    %c0_61 = arith.constant 0 : index
    %c0_62 = arith.constant 0 : index
    %c0_63 = arith.constant 0 : index
    %141 = vector.load %arg2[%c0_61, %c0_62, %c0_63] : memref<1x8x128xbf16, #tpu.memory_space<vmem>>, vector<1x8x128xbf16>
    %142 = vector.shape_cast %141 : vector<1x8x128xbf16> to vector<8x128xbf16>
    %143 = arith.truncf %140 : vector<8x128xf32> to vector<8x128xbf16>
    %c0_64 = arith.constant 0 : index
    %c0_65 = arith.constant 0 : index
    %144 = vector.load %arg11[%c0_64, %c0_65] : memref<128x128xbf16, #tpu.memory_space<vmem>>, vector<128x128xbf16>
    %cst_66 = arith.constant dense<0.000000e+00> : vector<8x128xf32>
    %145 = tpu.matmul %143, %144, %cst_66 {dimension_numbers = #tpu.dot_dimension_numbers<[1], [0], [0], [1], [0, 0, 1, 1], [], []>} : vector<8x128xbf16>, vector<128x128xbf16>, vector<8x128xf32> -> vector<8x128xf32>
    %c0_67 = arith.constant 0 : index
    %c0_68 = arith.constant 0 : index
    %146 = vector.load %arg12[%c0_67, %c0_68] : memref<1x128xf32, #tpu.memory_space<vmem>>, vector<1x128xf32>
    %147 = vector.broadcast %146 : vector<1x128xf32> to vector<8x128xf32>
    %148 = arith.addf %145, %147 : vector<8x128xf32>
    %c0_69 = arith.constant 0 : index
    %c0_70 = arith.constant 0 : index
    %149 = vector.load %arg13[%c0_69, %c0_70] : memref<128x256xbf16, #tpu.memory_space<vmem>>, vector<128x256xbf16>
    %cst_71 = arith.constant dense<0.000000e+00> : vector<8x256xf32>
    %150 = tpu.matmul %142, %149, %cst_71 {dimension_numbers = #tpu.dot_dimension_numbers<[1], [0], [0], [1], [0, 0, 1, 1], [], []>} : vector<8x128xbf16>, vector<128x256xbf16>, vector<8x256xf32> -> vector<8x256xf32>
    %c0_72 = arith.constant 0 : index
    %c0_73 = arith.constant 0 : index
    %151 = vector.load %arg14[%c0_72, %c0_73] : memref<1x256xf32, #tpu.memory_space<vmem>>, vector<1x256xf32>
    %152 = vector.broadcast %151 : vector<1x256xf32> to vector<8x256xf32>
    %153 = arith.addf %150, %152 : vector<8x256xf32>
    %154 = vector.extract_strided_slice %153 {offsets = [0, 0], sizes = [8, 128], strides = [1, 1]} : vector<8x256xf32> to vector<8x128xf32>
    %155 = vector.extract_strided_slice %153 {offsets = [0, 128], sizes = [8, 128], strides = [1, 1]} : vector<8x256xf32> to vector<8x128xf32>
    %156 = arith.truncf %148 : vector<8x128xf32> to vector<8x128xbf16>
    %157 = arith.truncf %154 : vector<8x128xf32> to vector<8x128xbf16>
    %158 = arith.truncf %155 : vector<8x128xf32> to vector<8x128xbf16>
    %159 = vector.extract_strided_slice %156 {offsets = [0, 0], sizes = [8, 32], strides = [1, 1]} : vector<8x128xbf16> to vector<8x32xbf16>
    %160 = vector.extract_strided_slice %157 {offsets = [0, 0], sizes = [8, 32], strides = [1, 1]} : vector<8x128xbf16> to vector<8x32xbf16>
    %cst_74 = arith.constant dense<0.000000e+00> : vector<8x8xf32>
    %161 = tpu.matmul %159, %160, %cst_74 {dimension_numbers = #tpu.dot_dimension_numbers<[1], [1], [0], [0], [0, 0, 1, 0], [], []>} : vector<8x32xbf16>, vector<8x32xbf16>, vector<8x8xf32> -> vector<8x8xf32>
    %cst_75 = arith.constant 0.176776692 : f32
    %162 = vector.broadcast %cst_75 : f32 to vector<8x8xf32>
    %163 = arith.mulf %161, %162 : vector<8x8xf32>
    %cst_76 = arith.constant -1.000000e+09 : f32
    %164 = vector.shape_cast %10 : vector<1x8xi1> to vector<1x8xi1>
    %165 = vector.broadcast %164 : vector<1x8xi1> to vector<8x8xi1>
    %166 = vector.broadcast %cst_76 : f32 to vector<8x8xf32>
    %167 = arith.select %165, %163, %166 : vector<8x8xi1>, vector<8x8xf32>
    %cst_77 = arith.constant dense<0xFF800000> : vector<8xf32>
    %168 = vector.multi_reduction <maximumf>, %167, %cst_77 [1] : vector<8x8xf32> to vector<8xf32>
    %169 = vector.shape_cast %168 : vector<8xf32> to vector<8x1xf32>
    %170 = vector.broadcast %169 : vector<8x1xf32> to vector<8x8xf32>
    %171 = arith.subf %167, %170 : vector<8x8xf32>
    %172 = math.exp %171 : vector<8x8xf32>
    %cst_78 = arith.constant dense<0.000000e+00> : vector<8xf32>
    %173 = vector.multi_reduction <add>, %172, %cst_78 [1] : vector<8x8xf32> to vector<8xf32>
    %174 = vector.shape_cast %173 : vector<8xf32> to vector<8x1xf32>
    %175 = tpu.reciprocal %174 {approx = true} : vector<8x1xf32> -> vector<8x1xf32>
    %176 = vector.broadcast %175 : vector<8x1xf32> to vector<8x8xf32>
    %177 = arith.mulf %172, %176 : vector<8x8xf32>
    %178 = arith.truncf %177 : vector<8x8xf32> to vector<8x8xbf16>
    %179 = vector.extract_strided_slice %158 {offsets = [0, 0], sizes = [8, 32], strides = [1, 1]} : vector<8x128xbf16> to vector<8x32xbf16>
    %cst_79 = arith.constant dense<0.000000e+00> : vector<8x32xf32>
    %180 = tpu.matmul %178, %179, %cst_79 {dimension_numbers = #tpu.dot_dimension_numbers<[1], [0], [0], [1], [0, 0, 1, 1], [], []>} : vector<8x8xbf16>, vector<8x32xbf16>, vector<8x32xf32> -> vector<8x32xf32>
    %181 = arith.truncf %180 : vector<8x32xf32> to vector<8x32xbf16>
    %c0_80 = arith.constant 0 : index
    %c0_81 = arith.constant 0 : index
    %182 = vector.load %arg26[%c0_80, %c0_81] : memref<8x128xbf16, #tpu.memory_space<vmem>>, vector<8x32xbf16>
    tpu.vector_store %arg26[%c0_80, %c0_81], %181 {strides = array<i32>} : memref<8x128xbf16, #tpu.memory_space<vmem>>, vector<8x32xbf16>,
    %183 = vector.extract_strided_slice %156 {offsets = [0, 32], sizes = [8, 32], strides = [1, 1]} : vector<8x128xbf16> to vector<8x32xbf16>
    %184 = vector.extract_strided_slice %157 {offsets = [0, 32], sizes = [8, 32], strides = [1, 1]} : vector<8x128xbf16> to vector<8x32xbf16>
    %cst_82 = arith.constant dense<0.000000e+00> : vector<8x8xf32>
    %185 = tpu.matmul %183, %184, %cst_82 {dimension_numbers = #tpu.dot_dimension_numbers<[1], [1], [0], [0], [0, 0, 1, 0], [], []>} : vector<8x32xbf16>, vector<8x32xbf16>, vector<8x8xf32> -> vector<8x8xf32>
    %cst_83 = arith.constant 0.176776692 : f32
    %186 = vector.broadcast %cst_83 : f32 to vector<8x8xf32>
    %187 = arith.mulf %185, %186 : vector<8x8xf32>
    %cst_84 = arith.constant -1.000000e+09 : f32
    %188 = vector.shape_cast %10 : vector<1x8xi1> to vector<1x8xi1>
    %189 = vector.broadcast %188 : vector<1x8xi1> to vector<8x8xi1>
    %190 = vector.broadcast %cst_84 : f32 to vector<8x8xf32>
    %191 = arith.select %189, %187, %190 : vector<8x8xi1>, vector<8x8xf32>
    %cst_85 = arith.constant dense<0xFF800000> : vector<8xf32>
    %192 = vector.multi_reduction <maximumf>, %191, %cst_85 [1] : vector<8x8xf32> to vector<8xf32>
    %193 = vector.shape_cast %192 : vector<8xf32> to vector<8x1xf32>
    %194 = vector.broadcast %193 : vector<8x1xf32> to vector<8x8xf32>
    %195 = arith.subf %191, %194 : vector<8x8xf32>
    %196 = math.exp %195 : vector<8x8xf32>
    %cst_86 = arith.constant dense<0.000000e+00> : vector<8xf32>
    %197 = vector.multi_reduction <add>, %196, %cst_86 [1] : vector<8x8xf32> to vector<8xf32>
    %198 = vector.shape_cast %197 : vector<8xf32> to vector<8x1xf32>
    %199 = tpu.reciprocal %198 {approx = true} : vector<8x1xf32> -> vector<8x1xf32>
    %200 = vector.broadcast %199 : vector<8x1xf32> to vector<8x8xf32>
    %201 = arith.mulf %196, %200 : vector<8x8xf32>
    %202 = arith.truncf %201 : vector<8x8xf32> to vector<8x8xbf16>
    %203 = vector.extract_strided_slice %158 {offsets = [0, 32], sizes = [8, 32], strides = [1, 1]} : vector<8x128xbf16> to vector<8x32xbf16>
    %cst_87 = arith.constant dense<0.000000e+00> : vector<8x32xf32>
    %204 = tpu.matmul %202, %203, %cst_87 {dimension_numbers = #tpu.dot_dimension_numbers<[1], [0], [0], [1], [0, 0, 1, 1], [], []>} : vector<8x8xbf16>, vector<8x32xbf16>, vector<8x32xf32> -> vector<8x32xf32>
    %205 = arith.truncf %204 : vector<8x32xf32> to vector<8x32xbf16>
    %c0_88 = arith.constant 0 : index
    %c32_89 = arith.constant 32 : index
    %206 = vector.load %arg26[%c0_88, %c32_89] : memref<8x128xbf16, #tpu.memory_space<vmem>>, vector<8x32xbf16>
    tpu.vector_store %arg26[%c0_88, %c32_89], %205 {strides = array<i32>} : memref<8x128xbf16, #tpu.memory_space<vmem>>, vector<8x32xbf16>,
    %207 = vector.extract_strided_slice %156 {offsets = [0, 64], sizes = [8, 32], strides = [1, 1]} : vector<8x128xbf16> to vector<8x32xbf16>
    %208 = vector.extract_strided_slice %157 {offsets = [0, 64], sizes = [8, 32], strides = [1, 1]} : vector<8x128xbf16> to vector<8x32xbf16>
    %cst_90 = arith.constant dense<0.000000e+00> : vector<8x8xf32>
    %209 = tpu.matmul %207, %208, %cst_90 {dimension_numbers = #tpu.dot_dimension_numbers<[1], [1], [0], [0], [0, 0, 1, 0], [], []>} : vector<8x32xbf16>, vector<8x32xbf16>, vector<8x8xf32> -> vector<8x8xf32>
    %cst_91 = arith.constant 0.176776692 : f32
    %210 = vector.broadcast %cst_91 : f32 to vector<8x8xf32>
    %211 = arith.mulf %209, %210 : vector<8x8xf32>
    %cst_92 = arith.constant -1.000000e+09 : f32
    %212 = vector.shape_cast %10 : vector<1x8xi1> to vector<1x8xi1>
    %213 = vector.broadcast %212 : vector<1x8xi1> to vector<8x8xi1>
    %214 = vector.broadcast %cst_92 : f32 to vector<8x8xf32>
    %215 = arith.select %213, %211, %214 : vector<8x8xi1>, vector<8x8xf32>
    %cst_93 = arith.constant dense<0xFF800000> : vector<8xf32>
    %216 = vector.multi_reduction <maximumf>, %215, %cst_93 [1] : vector<8x8xf32> to vector<8xf32>
    %217 = vector.shape_cast %216 : vector<8xf32> to vector<8x1xf32>
    %218 = vector.broadcast %217 : vector<8x1xf32> to vector<8x8xf32>
    %219 = arith.subf %215, %218 : vector<8x8xf32>
    %220 = math.exp %219 : vector<8x8xf32>
    %cst_94 = arith.constant dense<0.000000e+00> : vector<8xf32>
    %221 = vector.multi_reduction <add>, %220, %cst_94 [1] : vector<8x8xf32> to vector<8xf32>
    %222 = vector.shape_cast %221 : vector<8xf32> to vector<8x1xf32>
    %223 = tpu.reciprocal %222 {approx = true} : vector<8x1xf32> -> vector<8x1xf32>
    %224 = vector.broadcast %223 : vector<8x1xf32> to vector<8x8xf32>
    %225 = arith.mulf %220, %224 : vector<8x8xf32>
    %226 = arith.truncf %225 : vector<8x8xf32> to vector<8x8xbf16>
    %227 = vector.extract_strided_slice %158 {offsets = [0, 64], sizes = [8, 32], strides = [1, 1]} : vector<8x128xbf16> to vector<8x32xbf16>
    %cst_95 = arith.constant dense<0.000000e+00> : vector<8x32xf32>
    %228 = tpu.matmul %226, %227, %cst_95 {dimension_numbers = #tpu.dot_dimension_numbers<[1], [0], [0], [1], [0, 0, 1, 1], [], []>} : vector<8x8xbf16>, vector<8x32xbf16>, vector<8x32xf32> -> vector<8x32xf32>
    %229 = arith.truncf %228 : vector<8x32xf32> to vector<8x32xbf16>
    %c0_96 = arith.constant 0 : index
    %c64_97 = arith.constant 64 : index
    %230 = vector.load %arg26[%c0_96, %c64_97] : memref<8x128xbf16, #tpu.memory_space<vmem>>, vector<8x32xbf16>
    tpu.vector_store %arg26[%c0_96, %c64_97], %229 {strides = array<i32>} : memref<8x128xbf16, #tpu.memory_space<vmem>>, vector<8x32xbf16>,
    %231 = vector.extract_strided_slice %156 {offsets = [0, 96], sizes = [8, 32], strides = [1, 1]} : vector<8x128xbf16> to vector<8x32xbf16>
    %232 = vector.extract_strided_slice %157 {offsets = [0, 96], sizes = [8, 32], strides = [1, 1]} : vector<8x128xbf16> to vector<8x32xbf16>
    %cst_98 = arith.constant dense<0.000000e+00> : vector<8x8xf32>
    %233 = tpu.matmul %231, %232, %cst_98 {dimension_numbers = #tpu.dot_dimension_numbers<[1], [1], [0], [0], [0, 0, 1, 0], [], []>} : vector<8x32xbf16>, vector<8x32xbf16>, vector<8x8xf32> -> vector<8x8xf32>
    %cst_99 = arith.constant 0.176776692 : f32
    %234 = vector.broadcast %cst_99 : f32 to vector<8x8xf32>
    %235 = arith.mulf %233, %234 : vector<8x8xf32>
    %cst_100 = arith.constant -1.000000e+09 : f32
    %236 = vector.shape_cast %10 : vector<1x8xi1> to vector<1x8xi1>
    %237 = vector.broadcast %236 : vector<1x8xi1> to vector<8x8xi1>
    %238 = vector.broadcast %cst_100 : f32 to vector<8x8xf32>
    %239 = arith.select %237, %235, %238 : vector<8x8xi1>, vector<8x8xf32>
    %cst_101 = arith.constant dense<0xFF800000> : vector<8xf32>
    %240 = vector.multi_reduction <maximumf>, %239, %cst_101 [1] : vector<8x8xf32> to vector<8xf32>
    %241 = vector.shape_cast %240 : vector<8xf32> to vector<8x1xf32>
    %242 = vector.broadcast %241 : vector<8x1xf32> to vector<8x8xf32>
    %243 = arith.subf %239, %242 : vector<8x8xf32>
    %244 = math.exp %243 : vector<8x8xf32>
    %cst_102 = arith.constant dense<0.000000e+00> : vector<8xf32>
    %245 = vector.multi_reduction <add>, %244, %cst_102 [1] : vector<8x8xf32> to vector<8xf32>
    %246 = vector.shape_cast %245 : vector<8xf32> to vector<8x1xf32>
    %247 = tpu.reciprocal %246 {approx = true} : vector<8x1xf32> -> vector<8x1xf32>
    %248 = vector.broadcast %247 : vector<8x1xf32> to vector<8x8xf32>
    %249 = arith.mulf %244, %248 : vector<8x8xf32>
    %250 = arith.truncf %249 : vector<8x8xf32> to vector<8x8xbf16>
    %251 = vector.extract_strided_slice %158 {offsets = [0, 96], sizes = [8, 32], strides = [1, 1]} : vector<8x128xbf16> to vector<8x32xbf16>
    %cst_103 = arith.constant dense<0.000000e+00> : vector<8x32xf32>
    %252 = tpu.matmul %250, %251, %cst_103 {dimension_numbers = #tpu.dot_dimension_numbers<[1], [0], [0], [1], [0, 0, 1, 1], [], []>} : vector<8x8xbf16>, vector<8x32xbf16>, vector<8x32xf32> -> vector<8x32xf32>
    %253 = arith.truncf %252 : vector<8x32xf32> to vector<8x32xbf16>
    %c0_104 = arith.constant 0 : index
    %c96_105 = arith.constant 96 : index
    %254 = vector.load %arg26[%c0_104, %c96_105] : memref<8x128xbf16, #tpu.memory_space<vmem>>, vector<8x32xbf16>
    tpu.vector_store %arg26[%c0_104, %c96_105], %253 {strides = array<i32>} : memref<8x128xbf16, #tpu.memory_space<vmem>>, vector<8x32xbf16>,
    %c0_106 = arith.constant 0 : index
    %c0_107 = arith.constant 0 : index
    %255 = vector.load %arg26[%c0_106, %c0_107] : memref<8x128xbf16, #tpu.memory_space<vmem>>, vector<8x128xbf16>
    %c0_108 = arith.constant 0 : index
    %c0_109 = arith.constant 0 : index
    %256 = vector.load %arg15[%c0_108, %c0_109] : memref<128x128xbf16, #tpu.memory_space<vmem>>, vector<128x128xbf16>
    %cst_110 = arith.constant dense<0.000000e+00> : vector<8x128xf32>
    %257 = tpu.matmul %255, %256, %cst_110 {dimension_numbers = #tpu.dot_dimension_numbers<[1], [0], [0], [1], [0, 0, 1, 1], [], []>} : vector<8x128xbf16>, vector<128x128xbf16>, vector<8x128xf32> -> vector<8x128xf32>
    %c0_111 = arith.constant 0 : index
    %c0_112 = arith.constant 0 : index
    %258 = vector.load %arg16[%c0_111, %c0_112] : memref<1x128xf32, #tpu.memory_space<vmem>>, vector<1x128xf32>
    %259 = vector.broadcast %258 : vector<1x128xf32> to vector<8x128xf32>
    %260 = arith.addf %257, %259 : vector<8x128xf32>
    %261 = arith.addf %260, %140 : vector<8x128xf32>
    %c0_113 = arith.constant 0 : index
    %c0_114 = arith.constant 0 : index
    %262 = vector.load %arg17[%c0_113, %c0_114] : memref<1x128xf32, #tpu.memory_space<vmem>>, vector<1x128xf32>
    %c0_115 = arith.constant 0 : index
    %c0_116 = arith.constant 0 : index
    %263 = vector.load %arg18[%c0_115, %c0_116] : memref<1x128xf32, #tpu.memory_space<vmem>>, vector<1x128xf32>
    %cst_117 = arith.constant dense<0.000000e+00> : vector<8xf32>
    %264 = vector.multi_reduction <add>, %261, %cst_117 [1] : vector<8x128xf32> to vector<8xf32>
    %265 = vector.shape_cast %264 : vector<8xf32> to vector<8x1xf32>
    %cst_118 = arith.constant 1.280000e+02 : f32
    %266 = vector.broadcast %cst_118 : f32 to vector<8x1xf32>
    %267 = arith.divf %265, %266 : vector<8x1xf32>
    %268 = vector.broadcast %267 : vector<8x1xf32> to vector<8x128xf32>
    %269 = arith.subf %261, %268 : vector<8x128xf32>
    %270 = arith.mulf %269, %269 : vector<8x128xf32>
    %cst_119 = arith.constant dense<0.000000e+00> : vector<8xf32>
    %271 = vector.multi_reduction <add>, %270, %cst_119 [1] : vector<8x128xf32> to vector<8xf32>
    %272 = vector.shape_cast %271 : vector<8xf32> to vector<8x1xf32>
    %cst_120 = arith.constant 1.280000e+02 : f32
    %273 = vector.broadcast %cst_120 : f32 to vector<8x1xf32>
    %274 = arith.divf %272, %273 : vector<8x1xf32>
    %275 = vector.broadcast %267 : vector<8x1xf32> to vector<8x128xf32>
    %276 = arith.subf %261, %275 : vector<8x128xf32>
    %cst_121 = arith.constant 9.99999974E-6 : f32
    %277 = vector.broadcast %cst_121 : f32 to vector<8x1xf32>
    %278 = arith.addf %274, %277 : vector<8x1xf32>
    %279 = math.rsqrt %278 : vector<8x1xf32>
    %280 = vector.broadcast %279 : vector<8x1xf32> to vector<8x128xf32>
    %281 = arith.mulf %276, %280 : vector<8x128xf32>
    %282 = vector.broadcast %262 : vector<1x128xf32> to vector<8x128xf32>
    %283 = arith.mulf %281, %282 : vector<8x128xf32>
    %284 = vector.broadcast %263 : vector<1x128xf32> to vector<8x128xf32>
    %285 = arith.addf %283, %284 : vector<8x128xf32>
    %286 = arith.truncf %285 : vector<8x128xf32> to vector<8x128xbf16>
    %c0_122 = arith.constant 0 : index
    %c0_123 = arith.constant 0 : index
    %287 = vector.load %arg19[%c0_122, %c0_123] : memref<128x256xbf16, #tpu.memory_space<vmem>>, vector<128x256xbf16>
    %cst_124 = arith.constant dense<0.000000e+00> : vector<8x256xf32>
    %288 = tpu.matmul %286, %287, %cst_124 {dimension_numbers = #tpu.dot_dimension_numbers<[1], [0], [0], [1], [0, 0, 1, 1], [], []>} : vector<8x128xbf16>, vector<128x256xbf16>, vector<8x256xf32> -> vector<8x256xf32>
    %c0_125 = arith.constant 0 : index
    %c0_126 = arith.constant 0 : index
    %289 = vector.load %arg20[%c0_125, %c0_126] : memref<1x256xf32, #tpu.memory_space<vmem>>, vector<1x256xf32>
    %290 = vector.broadcast %289 : vector<1x256xf32> to vector<8x256xf32>
    %291 = arith.addf %288, %290 : vector<8x256xf32>
    %cst_127 = arith.constant 0.000000e+00 : f32
    %292 = vector.broadcast %cst_127 : f32 to vector<8x256xf32>
    %293 = arith.maximumf %291, %292 : vector<8x256xf32>
    %294 = arith.truncf %293 : vector<8x256xf32> to vector<8x256xbf16>
    %c0_128 = arith.constant 0 : index
    %c0_129 = arith.constant 0 : index
    %295 = vector.load %arg21[%c0_128, %c0_129] : memref<256x128xbf16, #tpu.memory_space<vmem>>, vector<256x128xbf16>
    %cst_130 = arith.constant dense<0.000000e+00> : vector<8x128xf32>
    %296 = tpu.matmul %294, %295, %cst_130 {dimension_numbers = #tpu.dot_dimension_numbers<[1], [0], [0], [1], [0, 0, 1, 1], [], []>} : vector<8x256xbf16>, vector<256x128xbf16>, vector<8x128xf32> -> vector<8x128xf32>
    %c0_131 = arith.constant 0 : index
    %c0_132 = arith.constant 0 : index
    %297 = vector.load %arg22[%c0_131, %c0_132] : memref<1x128xf32, #tpu.memory_space<vmem>>, vector<1x128xf32>
    %298 = vector.broadcast %297 : vector<1x128xf32> to vector<8x128xf32>
    %299 = arith.addf %296, %298 : vector<8x128xf32>
    %300 = arith.addf %299, %285 : vector<8x128xf32>
    %c0_133 = arith.constant 0 : index
    %c0_134 = arith.constant 0 : index
    %301 = vector.load %arg23[%c0_133, %c0_134] : memref<1x128xf32, #tpu.memory_space<vmem>>, vector<1x128xf32>
    %c0_135 = arith.constant 0 : index
    %c0_136 = arith.constant 0 : index
    %302 = vector.load %arg24[%c0_135, %c0_136] : memref<1x128xf32, #tpu.memory_space<vmem>>, vector<1x128xf32>
    %cst_137 = arith.constant dense<0.000000e+00> : vector<8xf32>
    %303 = vector.multi_reduction <add>, %300, %cst_137 [1] : vector<8x128xf32> to vector<8xf32>
    %304 = vector.shape_cast %303 : vector<8xf32> to vector<8x1xf32>
    %cst_138 = arith.constant 1.280000e+02 : f32
    %305 = vector.broadcast %cst_138 : f32 to vector<8x1xf32>
    %306 = arith.divf %304, %305 : vector<8x1xf32>
    %307 = vector.broadcast %306 : vector<8x1xf32> to vector<8x128xf32>
    %308 = arith.subf %300, %307 : vector<8x128xf32>
    %309 = arith.mulf %308, %308 : vector<8x128xf32>
    %cst_139 = arith.constant dense<0.000000e+00> : vector<8xf32>
    %310 = vector.multi_reduction <add>, %309, %cst_139 [1] : vector<8x128xf32> to vector<8xf32>
    %311 = vector.shape_cast %310 : vector<8xf32> to vector<8x1xf32>
    %cst_140 = arith.constant 1.280000e+02 : f32
    %312 = vector.broadcast %cst_140 : f32 to vector<8x1xf32>
    %313 = arith.divf %311, %312 : vector<8x1xf32>
    %314 = vector.broadcast %306 : vector<8x1xf32> to vector<8x128xf32>
    %315 = arith.subf %300, %314 : vector<8x128xf32>
    %cst_141 = arith.constant 9.99999974E-6 : f32
    %316 = vector.broadcast %cst_141 : f32 to vector<8x1xf32>
    %317 = arith.addf %313, %316 : vector<8x1xf32>
    %318 = math.rsqrt %317 : vector<8x1xf32>
    %319 = vector.broadcast %318 : vector<8x1xf32> to vector<8x128xf32>
    %320 = arith.mulf %315, %319 : vector<8x128xf32>
    %321 = vector.broadcast %301 : vector<1x128xf32> to vector<8x128xf32>
    %322 = arith.mulf %320, %321 : vector<8x128xf32>
    %323 = vector.broadcast %302 : vector<1x128xf32> to vector<8x128xf32>
    %324 = arith.addf %322, %323 : vector<8x128xf32>
    %325 = arith.truncf %324 : vector<8x128xf32> to vector<8x128xbf16>
    %c0_142 = arith.constant 0 : index
    %c0_143 = arith.constant 0 : index
    %c0_144 = arith.constant 0 : index
    %326 = vector.load %arg25[%c0_142, %c0_143, %c0_144] : memref<1x8x128xbf16, #tpu.memory_space<vmem>>, vector<1x8x128xbf16>
    %327 = vector.shape_cast %326 : vector<1x8x128xbf16> to vector<8x128xbf16>
    %328 = vector.shape_cast %325 : vector<8x128xbf16> to vector<1x8x128xbf16>
    tpu.vector_store %arg25[%c0_142, %c0_143, %c0_144], %328 {strides = array<i32>} : memref<1x8x128xbf16, #tpu.memory_space<vmem>>, vector<1x8x128xbf16>,
    return
  }
  func.func @transform_0(%arg0: i32) -> (i32, i32, i32) {
    %c0_i32 = arith.constant 0 : i32
    %c0_i32_0 = arith.constant 0 : i32
    %c0_i32_1 = arith.constant 0 : i32
    return %arg0, %c0_i32, %c0_i32_0 : i32, i32, i32
  }
  func.func @transform_1(%arg0: i32) -> (i32, i32, i32) {
    %c0_i32 = arith.constant 0 : i32
    %c0_i32_0 = arith.constant 0 : i32
    %c0_i32_1 = arith.constant 0 : i32
    return %arg0, %c0_i32, %c0_i32_0 : i32, i32, i32
  }
  func.func @transform_2(%arg0: i32) -> (i32, i32, i32, i32) {
    %c0_i32 = arith.constant 0 : i32
    %c0_i32_0 = arith.constant 0 : i32
    %c0_i32_1 = arith.constant 0 : i32
    %c0_i32_2 = arith.constant 0 : i32
    return %arg0, %c0_i32, %c0_i32_0, %c0_i32_1 : i32, i32, i32, i32
  }
  func.func @transform_3(%arg0: i32) -> (i32, i32, i32, i32) {
    %c0_i32 = arith.constant 0 : i32
    %c0_i32_0 = arith.constant 0 : i32
    %c0_i32_1 = arith.constant 0 : i32
    %c0_i32_2 = arith.constant 0 : i32
    return %arg0, %c0_i32, %c0_i32_0, %c0_i32_1 : i32, i32, i32, i32
  }
  func.func @transform_4(%arg0: i32) -> (i32, i32) {
    %c0_i32 = arith.constant 0 : i32
    %c0_i32_0 = arith.constant 0 : i32
    %c0_i32_1 = arith.constant 0 : i32
    return %c0_i32, %c0_i32_0 : i32, i32
  }
  func.func @transform_5(%arg0: i32) -> (i32, i32) {
    %c0_i32 = arith.constant 0 : i32
    %c0_i32_0 = arith.constant 0 : i32
    %c0_i32_1 = arith.constant 0 : i32
    return %c0_i32, %c0_i32_0 : i32, i32
  }
  func.func @transform_6(%arg0: i32) -> (i32, i32) {
    %c0_i32 = arith.constant 0 : i32
    %c0_i32_0 = arith.constant 0 : i32
    %c0_i32_1 = arith.constant 0 : i32
    return %c0_i32, %c0_i32_0 : i32, i32
  }
  func.func @transform_7(%arg0: i32) -> (i32, i32) {
    %c0_i32 = arith.constant 0 : i32
    %c0_i32_0 = arith.constant 0 : i32
    %c0_i32_1 = arith.constant 0 : i32
    return %c0_i32, %c0_i32_0 : i32, i32
  }
  func.func @transform_8(%arg0: i32) -> (i32, i32) {
    %c0_i32 = arith.constant 0 : i32
    %c0_i32_0 = arith.constant 0 : i32
    %c0_i32_1 = arith.constant 0 : i32
    return %c0_i32, %c0_i32_0 : i32, i32
  }
  func.func @transform_9(%arg0: i32) -> (i32, i32) {
    %c0_i32 = arith.constant 0 : i32
    %c0_i32_0 = arith.constant 0 : i32
    %c0_i32_1 = arith.constant 0 : i32
    return %c0_i32, %c0_i32_0 : i32, i32
  }
  func.func @transform_10(%arg0: i32) -> (i32, i32) {
    %c0_i32 = arith.constant 0 : i32
    %c0_i32_0 = arith.constant 0 : i32
    %c0_i32_1 = arith.constant 0 : i32
    return %c0_i32, %c0_i32_0 : i32, i32
  }
  func.func @transform_11(%arg0: i32) -> (i32, i32) {
    %c0_i32 = arith.constant 0 : i32
    %c0_i32_0 = arith.constant 0 : i32
    %c0_i32_1 = arith.constant 0 : i32
    return %c0_i32, %c0_i32_0 : i32, i32
  }
  func.func @transform_12(%arg0: i32) -> (i32, i32) {
    %c0_i32 = arith.constant 0 : i32
    %c0_i32_0 = arith.constant 0 : i32
    %c0_i32_1 = arith.constant 0 : i32
    return %c0_i32, %c0_i32_0 : i32, i32
  }
  func.func @transform_13(%arg0: i32) -> (i32, i32) {
    %c0_i32 = arith.constant 0 : i32
    %c0_i32_0 = arith.constant 0 : i32
    %c0_i32_1 = arith.constant 0 : i32
    return %c0_i32, %c0_i32_0 : i32, i32
  }
  func.func @transform_14(%arg0: i32) -> (i32, i32) {
    %c0_i32 = arith.constant 0 : i32
    %c0_i32_0 = arith.constant 0 : i32
    %c0_i32_1 = arith.constant 0 : i32
    return %c0_i32, %c0_i32_0 : i32, i32
  }
  func.func @transform_15(%arg0: i32) -> (i32, i32) {
    %c0_i32 = arith.constant 0 : i32
    %c0_i32_0 = arith.constant 0 : i32
    %c0_i32_1 = arith.constant 0 : i32
    return %c0_i32, %c0_i32_0 : i32, i32
  }
  func.func @transform_16(%arg0: i32) -> (i32, i32) {
    %c0_i32 = arith.constant 0 : i32
    %c0_i32_0 = arith.constant 0 : i32
    %c0_i32_1 = arith.constant 0 : i32
    return %c0_i32, %c0_i32_0 : i32, i32
  }
  func.func @transform_17(%arg0: i32) -> (i32, i32) {
    %c0_i32 = arith.constant 0 : i32
    %c0_i32_0 = arith.constant 0 : i32
    %c0_i32_1 = arith.constant 0 : i32
    return %c0_i32, %c0_i32_0 : i32, i32
  }
  func.func @transform_18(%arg0: i32) -> (i32, i32) {
    %c0_i32 = arith.constant 0 : i32
    %c0_i32_0 = arith.constant 0 : i32
    %c0_i32_1 = arith.constant 0 : i32
    return %c0_i32, %c0_i32_0 : i32, i32
  }
  func.func @transform_19(%arg0: i32) -> (i32, i32) {
    %c0_i32 = arith.constant 0 : i32
    %c0_i32_0 = arith.constant 0 : i32
    %c0_i32_1 = arith.constant 0 : i32
    return %c0_i32, %c0_i32_0 : i32, i32
  }
  func.func @transform_20(%arg0: i32) -> (i32, i32) {
    %c0_i32 = arith.constant 0 : i32
    %c0_i32_0 = arith.constant 0 : i32
    %c0_i32_1 = arith.constant 0 : i32
    return %c0_i32, %c0_i32_0 : i32, i32
  }
  func.func @transform_21(%arg0: i32) -> (i32, i32) {
    %c0_i32 = arith.constant 0 : i32
    %c0_i32_0 = arith.constant 0 : i32
    %c0_i32_1 = arith.constant 0 : i32
    return %c0_i32, %c0_i32_0 : i32, i32
  }
  func.func @transform_22(%arg0: i32) -> (i32, i32) {
    %c0_i32 = arith.constant 0 : i32
    %c0_i32_0 = arith.constant 0 : i32
    %c0_i32_1 = arith.constant 0 : i32
    return %c0_i32, %c0_i32_0 : i32, i32
  }
  func.func @transform_23(%arg0: i32) -> (i32, i32) {
    %c0_i32 = arith.constant 0 : i32
    %c0_i32_0 = arith.constant 0 : i32
    %c0_i32_1 = arith.constant 0 : i32
    return %c0_i32, %c0_i32_0 : i32, i32
  }
  func.func @transform_24(%arg0: i32) -> (i32, i32, i32) {
    %c0_i32 = arith.constant 0 : i32
    %c0_i32_0 = arith.constant 0 : i32
    %c0_i32_1 = arith.constant 0 : i32
    return %arg0, %c0_i32, %c0_i32_0 : i32, i32, i32
  }
}

</mosaic_0001>

<bundles_post_ra>
// kernel: decoder_forward.5
= control target key start
LH: loop header
LB: loop body
LE: loop exit
PB: predicated region body
PF: predicated region fallthrough
CT: control target
= control target key end

     0   :  { %v418_v1 = vmov 0   ;;  %v51_v34 = vlaneseq  ;;  %s565_s1 = inlined_call_operand.vmem [shape: bf16[128,512], index: 1, kind: input, shape index: {}]   ;;  %s566_s0 = inlined_call_operand.vmem [shape: bf16[16,128], index: 0, kind: input, shape index: {}]   ;;  %s567_s2 = inlined_call_operand.vmem [shape: f32[1,512], index: 2, kind: input, shape index: {}]   ;;  %s568_s3 = inlined_call_operand.vmem [shape: f32[16,512], index: 3, kind: output, shape index: {}]  }
   0x1   :  { %v369_v0 = vld [vmem:[%s565_s1 + $0x4] ss:$16 sps:$4 sm:$0xff]   ;;  %269 = vmatprep.mubr.bf16.mxu0 %v418_v1  ;;  %312 = vmatprep.mubr.bf16.mxu1 %v418_v1  ;;  %v371_v2 = vld [vmem:[%s565_s1 + $0xc] ss:$16 sps:$4 sm:$0xff]   ;;  %v373_v3 = vld [vmem:[%s565_s1] ss:$16 sps:$4 sm:$0xff]  }
   0x2   :  { %237 = vmatprep.subr.bf16.mxu0 %v369_v0  ;;  %v374_v4 = vld [vmem:[%s565_s1 + $0x8] ss:$16 sps:$4 sm:$0xff]   ;;  %280 = vmatprep.subr.bf16.mxu1 %v371_v2  ;;  %v375_v5 = vld [vmem:[%s565_s1 + $0x24] ss:$16 sps:$4 sm:$0xff]   ;;  %v377_v6 = vld [vmem:[%s565_s1 + $0x2c] ss:$16 sps:$4 sm:$0xff]  }
   0x3   :  { %238 = vmatpush1.bf16.msra.mxu0 %v373_v3  ;;  %281 = vmatpush1.bf16.msra.mxu1 %v374_v4  ;;  %v379_v7 = vld [vmem:[%s565_s1 + $0x20] ss:$16 sps:$4 sm:$0xff]   ;;  %v380_v8 = vld [vmem:[%s565_s1 + $0x28] ss:$16 sps:$4 sm:$0xff]   ;;  %v381_v9 = vld [vmem:[%s565_s1 + $0x44] ss:$16 sps:$4 sm:$0xff]  }
   0x4   :  { %239 = vmatprep.subr.bf16.mxu0 %v375_v5  ;;  %282 = vmatprep.subr.bf16.mxu1 %v377_v6  ;;  %v383_v10 = vld [vmem:[%s565_s1 + $0x4c] ss:$16 sps:$4 sm:$0xff]   ;;  %v385_v11 = vld [vmem:[%s565_s1 + $0x40] ss:$16 sps:$4 sm:$0xff]   ;;  %v386_v12 = vld [vmem:[%s565_s1 + $0x48] ss:$16 sps:$4 sm:$0xff]  }
   0x5   :  { %v387_v13 = vld [vmem:[%s565_s1 + $0x64] ss:$16 sps:$4 sm:$0xff]   ;;  %v389_v14 = vld [vmem:[%s565_s1 + $0x6c] ss:$16 sps:$4 sm:$0xff]   ;;  %v391_v15 = vld [vmem:[%s565_s1 + $0x60] ss:$16 sps:$4 sm:$0xff]  }
   0x6   :  { %v392_v16 = vld [vmem:[%s565_s1 + $0x68] ss:$16 sps:$4 sm:$0xff]   ;;  %v393_v17 = vld [vmem:[%s565_s1 + $0x84] ss:$16 sps:$4 sm:$0xff]   ;;  %v395_v18 = vld [vmem:[%s565_s1 + $0x8c] ss:$16 sps:$4 sm:$0xff]  }
   0x7   :  { %240 = vmatpush1.bf16.msra.mxu0 %v379_v7  ;;  %283 = vmatpush1.bf16.msra.mxu1 %v380_v8  ;;  %v397_v19 = vld [vmem:[%s565_s1 + $0x80] ss:$16 sps:$4 sm:$0xff]   ;;  %v398_v20 = vld [vmem:[%s565_s1 + $0x88] ss:$16 sps:$4 sm:$0xff]   ;;  %v399_v21 = vld [vmem:[%s565_s1 + $0xa4] ss:$16 sps:$4 sm:$0xff]  }
   0x8   :  { %241 = vmatprep.subr.bf16.mxu0 %v381_v9  ;;  %284 = vmatprep.subr.bf16.mxu1 %v383_v10  ;;  %v401_v22 = vld [vmem:[%s565_s1 + $0xac] ss:$16 sps:$4 sm:$0xff]   ;;  %v403_v23 = vld [vmem:[%s565_s1 + $0xa0] ss:$16 sps:$4 sm:$0xff]   ;;  %v404_v24 = vld [vmem:[%s565_s1 + $0xa8] ss:$16 sps:$4 sm:$0xff]  }
   0x9   :  { %v405_v25 = vld [vmem:[%s565_s1 + $0xc4] ss:$16 sps:$4 sm:$0xff]   ;;  %v407_v26 = vld [vmem:[%s565_s1 + $0xcc] ss:$16 sps:$4 sm:$0xff]   ;;  %v409_v27 = vld [vmem:[%s565_s1 + $0xc0] ss:$16 sps:$4 sm:$0xff]  }
   0xa   :  { %v410_v28 = vld [vmem:[%s565_s1 + $0xc8] ss:$16 sps:$4 sm:$0xff]   ;;  %v411_v29 = vld [vmem:[%s565_s1 + $0xe4] ss:$16 sps:$4 sm:$0xff]   ;;  %v413_v30 = vld [vmem:[%s565_s1 + $0xec] ss:$16 sps:$4 sm:$0xff]  }
   0xb   :  { %242 = vmatpush1.bf16.msra.mxu0 %v385_v11  ;;  %285 = vmatpush1.bf16.msra.mxu1 %v386_v12  ;;  %v415_v31 = vld [vmem:[%s565_s1 + $0xe0] ss:$16 sps:$4 sm:$0xff]   ;;  %v416_v32 = vld [vmem:[%s565_s1 + $0xe8] ss:$16 sps:$4 sm:$0xff]   ;;  %v52_v35 = vshrl.u32 %v51_v34, 7 }
   0xc   :  { %243 = vmatprep.subr.bf16.mxu0 %v387_v13  ;;  %286 = vmatprep.subr.bf16.mxu1 %v389_v14  ;;  %v417_v33 = vld [vmem:[%s566_s0] sm:$0xff]  }
   0xd   :  { %v53_v36 = vsub.s32 0, %v52_v35  ;;  %v61_v37 = vsub.s32 2, %v52_v35  ;;  %v49_v38 = vld [vmem:[%s567_s2] sm:$0xf]  ;;  %v57_v39 = vsub.s32 1, %v52_v35  ;;  %v65_v40 = vsub.s32 3, %v52_v35 }
   0xf   :  { %244 = vmatpush1.bf16.msra.mxu0 %v391_v15  ;;  %287 = vmatpush1.bf16.msra.mxu1 %v392_v16  ;;  %v54_v41 = vrot.slane %v49_v38, %v53_v36  ;;  %v62_v42 = vrot.slane %v49_v38, %v61_v37  ;;  %v58_v43 = vrot.slane %v49_v38, %v57_v39 }
  0x10   :  { %245 = vmatprep.subr.bf16.mxu0 %v393_v17  ;;  %288 = vmatprep.subr.bf16.mxu1 %v395_v18  ;;  %v66_v44 = vrot.slane %v49_v38, %v65_v40 }
  0x13   :  { %246 = vmatpush1.bf16.msra.mxu0 %v397_v19  ;;  %289 = vmatpush1.bf16.msra.mxu1 %v398_v20 }
  0x14   :  { %247 = vmatprep.subr.bf16.mxu0 %v399_v21  ;;  %290 = vmatprep.subr.bf16.mxu1 %v401_v22 }
  0x17   :  { %248 = vmatpush1.bf16.msra.mxu0 %v403_v23  ;;  %291 = vmatpush1.bf16.msra.mxu1 %v404_v24 }
  0x18   :  { %249 = vmatprep.subr.bf16.mxu0 %v405_v25  ;;  %292 = vmatprep.subr.bf16.mxu1 %v407_v26 }
  0x1b   :  { %250 = vmatpush1.bf16.msra.mxu0 %v409_v27  ;;  %293 = vmatpush1.bf16.msra.mxu1 %v410_v28 }
  0x1c   :  { %251 = vmatprep.subr.bf16.mxu0 %v411_v29  ;;  %294 = vmatprep.subr.bf16.mxu1 %v413_v30 }
  0x1f   :  { %252 = vmatpush1.bf16.msra.mxu0 %v415_v31  ;;  %295 = vmatpush1.bf16.msra.mxu1 %v416_v32 }
  0x22   :  { %270 = vmatmul.mubr.bf16.vlgmr.msra.gmra.mrb[0].mxu0 %v417_v33  ;;  %313 = vmatmul.mubr.bf16.vlgmr.msra.gmra.mrb[0].mxu1 %v417_v33 }
  0xf5   :  { %v271_v45 = vpop.f32.mrb[0].mxu0  ;;  %v314_v46 = vpop.f32.mrb[0].mxu1 }
  0xf6   :  { %v272_v47 = vadd.f32 %v271_v45, %v54_v41  ;;  %v315_v48 = vadd.f32 %v314_v46, %v62_v42  ;;  %v273_v49 = vpop.f32.mrb[1].mxu0  ;;  %v316_v50 = vpop.f32.mrb[1].mxu1 }
  0xf7   :  { %v274_v51 = vadd.f32 %v273_v49, %v58_v43  ;;  %v317_v52 = vadd.f32 %v316_v50, %v66_v44  ;;  %v275_v53 = vpop.f32.mrb[2].mxu0  ;;  %v318_v54 = vpop.f32.mrb[2].mxu1 }
  0xf8   :  { %323 = vst [vmem:[%s568_s3] sm:$0xff] %v272_v47  ;;  %325 = vst [vmem:[%s568_s3 + $0x10] sm:$0xff] %v315_v48  ;;  %v276_v55 = vadd.f32 %v275_v53, %v54_v41  ;;  %v319_v56 = vadd.f32 %v318_v54, %v62_v42  ;;  %v277_v57 = vpop.f32.mrb[3].mxu0  ;;  %v320_v58 = vpop.f32.mrb[3].mxu1 }
  0xf9   :  { %324 = vst [vmem:[%s568_s3 + $0x8] sm:$0xff] %v274_v51  ;;  %326 = vst [vmem:[%s568_s3 + $0x18] sm:$0xff] %v317_v52  ;;  %v278_v59 = vadd.f32 %v277_v57, %v58_v43  ;;  %v321_v60 = vadd.f32 %v320_v58, %v66_v44 }
  0xfa   :  { %327 = vst [vmem:[%s568_s3 + $0x20] sm:$0xff] %v276_v55  ;;  %329 = vst [vmem:[%s568_s3 + $0x30] sm:$0xff] %v319_v56 }
  0xfb   :  { %328 = vst [vmem:[%s568_s3 + $0x28] sm:$0xff] %v278_v59  ;;  %330 = vst [vmem:[%s568_s3 + $0x38] sm:$0xff] %v321_v60 }

// kernel: decoder_forward.3
= control target key start
LH: loop header
LB: loop body
LE: loop exit
PB: predicated region body
PF: predicated region fallthrough
CT: control target
= control target key end

     0   :  { %s4629_s0 = inlined_call_operand.vmem [shape: bf16[2,8,128], index: 0, kind: input, shape index: {}]   ;;  %s4630_s1 = inlined_call_operand.vmem [shape: bf16[2,8,128], index: 1, kind: input, shape index: {}]   ;;  %s4631_s2 = inlined_call_operand.vmem [shape: f32[2,1,8,8], index: 2, kind: input, shape index: {}]   ;;  %s4632_s3 = inlined_call_operand.vmem [shape: f32[2,1,1,8], index: 3, kind: input, shape index: {}]   ;;  %s4633_s4 = inlined_call_operand.vmem [shape: bf16[128,384], index: 4, kind: input, shape index: {}]   ;;  %s4634_s5 = inlined_call_operand.vmem [shape: f32[1,384], index: 5, kind: input, shape index: {}]   ;;  %s4635_s6 = inlined_call_operand.vmem [shape: bf16[128,128], index: 6, kind: input, shape index: {}]   ;;  %s4636_s7 = inlined_call_operand.vmem [shape: f32[1,128], index: 7, kind: input, shape index: {}]   ;;  %s4637_s8 = inlined_call_operand.vmem [shape: f32[1,128], index: 8, kind: input, shape index: {}]   ;;  %s4638_s9 = inlined_call_operand.vmem [shape: f32[1,128], index: 9, kind: input, shape index: {}]   ;;  %s4639_s10 = inlined_call_operand.hbm [shape: bf16[128,128], index: 10, kind: input, shape index: {}]   ;;  %s4640_s11 = inlined_call_operand.vmem [shape: f32[1,128], index: 11, kind: input, shape index: {}]   ;;  %s4641_s12 = inlined_call_operand.hbm [shape: bf16[128,256], index: 12, kind: input, shape index: {}]   ;;  %s4642_s13 = inlined_call_operand.vmem [shape: f32[1,256], index: 13, kind: input, shape index: {}]   ;;  %s4643_s14 = inlined_call_operand.hbm [shape: bf16[128,128], index: 14, kind: input, shape index: {}]   ;;  %s4644_s15 = inlined_call_operand.vmem [shape: f32[1,128], index: 15, kind: input, shape index: {}]   ;;  %s4645_s16 = inlined_call_operand.vmem [shape: f32[1,128], index: 16, kind: input, shape index: {}]   ;;  %s4646_s17 = inlined_call_operand.vmem [shape: f32[1,128], index: 17, kind: input, shape index: {}]   ;;  %s4647_s18 = inlined_call_operand.hbm [shape: bf16[128,256], index: 18, kind: input, shape index: {}]   ;;  %s4648_s19 = inlined_call_operand.vmem [shape: f32[1,256], index: 19, kind: input, shape index: {}]   ;;  %s4649_s20 = inlined_call_operand.hbm [shape: bf16[256,128], index: 20, kind: input, shape index: {}]   ;;  %s4650_s21 = inlined_call_operand.vmem [shape: f32[1,128], index: 21, kind: input, shape index: {}]   ;;  %s4651_s22 = inlined_call_operand.vmem [shape: f32[1,128], index: 22, kind: input, shape index: {}]   ;;  %s4652_s23 = inlined_call_operand.vmem [shape: f32[1,128], index: 23, kind: input, shape index: {}]   ;;  %s4653_s24 = inlined_call_operand.vmem [shape: bf16[2,8,128], index: 24, kind: output, shape index: {}]  }
   0x1   :  { %4659 = sst [smem:[#allocation15_spill]] %s4629_s0 }
   0x2   :  { %4660 = sst [smem:[#allocation16_spill]] %s4630_s1 }
   0x3   :  { %4661 = sst [smem:[#allocation17_spill]] %s4631_s2 }
   0x4   :  { %4662 = sst [smem:[#allocation18_spill]] %s4632_s3 }
   0x5   :  { %4663 = sst [smem:[#allocation19_spill]] %s4633_s4 }
   0x6   :  { %4664 = sst [smem:[#allocation20_spill]] %s4634_s5 }
   0x7   :  { %4665 = sst [smem:[#allocation21_spill]] %s4635_s6 }
   0x8   :  { %4666 = sst [smem:[#allocation22_spill]] %s4636_s7 }
   0x9   :  { %4667 = sst [smem:[#allocation23_spill]] %s4637_s8 }
   0xa   :  { %4668 = sst [smem:[#allocation24_spill]] %s4651_s22 }
   0xb   :  { %4669 = sst [smem:[#allocation25_spill]] %s4652_s23 }
   0xc   :  { %4670 = sst [smem:[#allocation26_spill]] %s4653_s24 }
   0xd   :  { %29 = vsyncpa [#allocation4], 0 }
   0xe   :  { %30 = vsyncpa [#allocation6], 0 }
   0xf   :  { %31 = vsyncpa [#allocation9], 0  ;;  %s4066_s5 = smov 0  }
  0x10 LB: > { %4671 = sst [smem:[#allocation14_spill]] %s3924_s5  ;;  %s3926_s26 = smov [#allocation5]   ;;  %s3924_s5 = sphi %s4066_s5, %s37_s5  }
  0x11   : > { %s638_s27 = sshll.u32 %s3926_s26, 4  ;;  %s4072_s28 = sadd.s32 4294967295, %s3924_s5   ;;  %s4077_s27 = int_to_ptr.vmem [resolvable:$true] %s638_s27 }
  0x12   : > { %p3120_p0 = scmp.ge.s32.totalorder %s3924_s5, 1  ;;  %p592_p1 = scmp.lt.s32.totalorder %s3924_s5, 3 }
  0x13   : > { %p4657_p2 = scmp.eq.s32.totalorder %s4072_s28, 0  ;;  %s3927_s2 = smov [#allocation8]  }
  0x14   : > { %p4079_p3 = pnand %p3120_p0, %p592_p1  ;;  %s676_s29 = sshll.u32 %s3927_s2, 4  ;;  %s4085_s29 = int_to_ptr.vmem [resolvable:$true] %s676_s29 }
  0x15   : > { %s3928_s7 = smov [#allocation3]   ;;  %s3766_s8 = scalar_lea.hbm %s4641_s12, 2048 }
  0x16   : > { %s4672_s6 = scalar_select %p4079_p3, 1, 0 }
  0x17   : > { %p3559_p4 = pneg %p4079_p3  ;;  %s622_s30 = sshll.u32 %s3928_s7, 4  ;;  %s4093_s30 = int_to_ptr.vmem [resolvable:$true] %s622_s30 }
  0x18   : > { %p3767_p6 = scmp.ne.s32.totalorder %s4641_s12, %s3766_s8  ;;  %p3773_p10 = scmp.lt.u32.totalorder %s3766_s8, %s4641_s12 }
  0x19   : > { %p4089_p5 = pnand %p4657_p2, %p3559_p4 }
  0x1b   : > { %p4103_p7 = pneg %p4089_p5 }
  0x1d   : > { %p3769_p8 = pnand %p4103_p7, %p3767_p6 }
  0x1f   : > { %p3770_p9 = pneg %p3769_p8 }
  0x21   : > { %p3775_p11 = pnand %p3773_p10, %p3770_p9 }
  0x23   : > { %3778 = shalt.err (!%p3775_p11)
}
  0x24   : > { %s3779_s3 = scalar_lea.vmem %s4077_s27, 2048  ;;  %p3787_p1 = scmp.lt.s32.totalorder %s4077_s27, %s4077_s27 }
  0x25   : > { %p3780_p12 = scmp.ne.s32.totalorder %s4077_s27, %s3779_s3  ;;  %p3788_p4 = scmp.lt.s32.totalorder %s3779_s3, %s3779_s3 }
  0x27   : > { %p3782_p13 = pnand %p3780_p12, %p4103_p7  ;;  %p3789_p6 = por %p3788_p4, %p3787_p1 }
  0x29   : > { %p3783_p0 = pneg %p3782_p13 }
  0x2b   : > { %p3790_p8 = pnand %p3789_p6, %p3783_p0 }
  0x2d   : > { %3793 = shalt.err (!%p3790_p8)
}
  0x2e   : > { %s3929_s25 = smov 128   ;;  %s3930_s8 = smov 8  }
  0x2f   : > { %3565 = dma.hbm_to_vmem [thread:$0]  (!%p4089_p5), %s4641_s12, 2048, %s4077_s27, [#allocation6], %s3929_s25, %s3929_s25, %s3930_s8  }
  0x30   : > { %s3794_s5 = scalar_lea.hbm %s4647_s18, 2048 }
  0x31   : > { %p3795_p9 = scmp.ne.s32.totalorder %s4647_s18, %s3794_s5  ;;  %p3801_p12 = scmp.lt.u32.totalorder %s3794_s5, %s4647_s18 }
  0x33   : > { %p3797_p10 = pnand %p3795_p9, %p4103_p7 }
  0x35   : > { %p3798_p11 = pneg %p3797_p10 }
  0x37   : > { %p3803_p13 = pnand %p3801_p12, %p3798_p11 }
  0x39   : > { %3806 = shalt.err (!%p3803_p13)
}
  0x3a   : > { %s3807_s27 = scalar_lea.vmem %s4085_s29, 2048  ;;  %p3815_p6 = scmp.lt.s32.totalorder %s4085_s29, %s4085_s29 }
  0x3b   : > { %p3808_p0 = scmp.ne.s32.totalorder %s4085_s29, %s3807_s27  ;;  %p3816_p8 = scmp.lt.s32.totalorder %s3807_s27, %s3807_s27 }
  0x3d   : > { %p3810_p1 = pnand %p3808_p0, %p4103_p7  ;;  %p3817_p9 = por %p3816_p8, %p3815_p6 }
  0x3f   : > { %p3811_p4 = pneg %p3810_p1 }
  0x41   : > { %p3818_p10 = pnand %p3817_p9, %p3811_p4 }
  0x43   : > { %3821 = shalt.err (!%p3818_p10)
}
  0x44   : > { %3571 = dma.hbm_to_vmem [thread:$0]  (!%p4089_p5), %s4647_s18, 2048, %s4085_s29, [#allocation9], %s3929_s25, %s3929_s25, %s3930_s8  }
  0x45   : > { %s3822_s4 = scalar_lea.hbm %s4639_s10, 1024 }
  0x46   : > { %p3823_p11 = scmp.ne.s32.totalorder %s4639_s10, %s3822_s4  ;;  %p3829_p0 = scmp.lt.u32.totalorder %s3822_s4, %s4639_s10 }
  0x48   : > { %p3825_p12 = pnand %p3823_p11, %p4103_p7 }
  0x4a   : > { %p3826_p13 = pneg %p3825_p12 }
  0x4c   : > { %p3831_p1 = pnand %p3829_p0, %p3826_p13 }
  0x4e   : > { %3834 = shalt.err (!%p3831_p1)
}
  0x4f   : > { %s3835_s29 = scalar_lea.vmem %s4093_s30, 1024  ;;  %p3843_p9 = scmp.lt.s32.totalorder %s4093_s30, %s4093_s30 }
  0x50   : > { %p3836_p4 = scmp.ne.s32.totalorder %s4093_s30, %s3835_s29  ;;  %p3844_p10 = scmp.lt.s32.totalorder %s3835_s29, %s3835_s29 }
  0x52   : > { %p3838_p6 = pnand %p3836_p4, %p4103_p7  ;;  %p3845_p11 = por %p3844_p10, %p3843_p9 }
  0x54   : > { %p3839_p8 = pneg %p3838_p6 }
  0x56   : > { %p3846_p12 = pnand %p3845_p11, %p3839_p8 }
  0x58   : > { %3849 = shalt.err (!%p3846_p12)
}
  0x59   : > { %s3931_s25 = smov 64   ;;  %s3932_s8 = smov 4  }
  0x5a   : > { %3562 = dma.hbm_to_vmem [thread:$0]  (!%p4089_p5), %s4639_s10, 1024, %s4093_s30, [#allocation4], %s3931_s25, %s3931_s25, %s3932_s8  }
  0x5b   : > { %s3933_s23 = smov [#allocation7]   ;;  %s3934_s5 = smov [#allocation10]  }
  0x5c   : > { %s654_s24 = sshll.u32 %s3933_s23, 4  ;;  %s692_s4 = sshll.u32 %s3934_s5, 4  ;;  %s655_s24 = int_to_ptr.vmem [resolvable:$true] %s654_s24  ;;  %s4173_s4 = int_to_ptr.vmem [resolvable:$true] %s692_s4 }
  0x5d   : > { %s3850_s7 = scalar_lea.hbm %s4643_s14, 1024 }
  0x5e   : > { %p3851_p13 = scmp.ne.s32.totalorder %s4643_s14, %s3850_s7  ;;  %p3857_p4 = scmp.lt.u32.totalorder %s3850_s7, %s4643_s14 }
  0x60   : > { %p3853_p0 = pnand %p3851_p13, %p4103_p7 }
  0x62   : > { %p3854_p1 = pneg %p3853_p0 }
  0x64   : > { %p3859_p6 = pnand %p3857_p4, %p3854_p1 }
  0x66   : > { %3862 = shalt.err (!%p3859_p6)
}
  0x67   : > { %s3863_s22 = scalar_lea.vmem %s655_s24, 1024  ;;  %p3871_p11 = scmp.lt.s32.totalorder %s655_s24, %s655_s24 }
  0x68   : > { %p3864_p8 = scmp.ne.s32.totalorder %s655_s24, %s3863_s22  ;;  %p3872_p12 = scmp.lt.s32.totalorder %s3863_s22, %s3863_s22 }
  0x6a   : > { %p3866_p9 = pnand %p3864_p8, %p4103_p7  ;;  %p3873_p2 = por %p3872_p12, %p3871_p11 }
  0x6c   : > { %p3867_p10 = pneg %p3866_p9 }
  0x6e   : > { %p3874_p3 = pnand %p3873_p2, %p3867_p10 }
  0x70   : > { %3877 = shalt.err (!%p3874_p3)
}
  0x71   : > { %3568 = dma.hbm_to_vmem [thread:$0]  (!%p4089_p5), %s4643_s14, 1024, %s655_s24, [#allocation6], %s3931_s25, %s3931_s25, %s3932_s8  }
  0x72   : > { %s3878_s7 = scalar_lea.hbm %s4649_s20, 2048 }
  0x73   : > { %p3879_p13 = scmp.ne.s32.totalorder %s4649_s20, %s3878_s7  ;;  %p3885_p0 = scmp.lt.u32.totalorder %s3878_s7, %s4649_s20 }
  0x75   : > { %p3881_p2 = pnand %p3879_p13, %p4103_p7 }
  0x77   : > { %p3882_p3 = pneg %p3881_p2 }
  0x79   : > { %p3887_p1 = pnand %p3885_p0, %p3882_p3 }
  0x7b   : > { %3890 = shalt.err (!%p3887_p1)
}
  0x7c   : > { %s3891_s24 = scalar_lea.vmem %s4173_s4, 2048  ;;  %p3899_p9 = scmp.lt.s32.totalorder %s4173_s4, %s4173_s4 }
  0x7d   : > { %p3892_p4 = scmp.ne.s32.totalorder %s4173_s4, %s3891_s24  ;;  %p3900_p10 = scmp.lt.s32.totalorder %s3891_s24, %s3891_s24 }
  0x7f   : > { %p3894_p6 = pnand %p3892_p4, %p4103_p7  ;;  %p3901_p11 = por %p3900_p10, %p3899_p9 }
  0x81   : > { %p3895_p8 = pneg %p3894_p6 }
  0x83   : > { %p3902_p12 = pnand %p3901_p11, %p3895_p8 }
  0x85   : > { %3905 = shalt.err (!%p3902_p12)
}
  0x86   : > { %3574 = dma.hbm_to_vmem [thread:$0]  (!%p4089_p5), %s4649_s20, 2048, %s4173_s4, [#allocation9], %s3931_s25, %s3931_s25, %s3932_s8  }
  0x87   : > { %p4675_p13 = scmp.ne.s32.totalorder %s4672_s6, 0 }
  0x88   : > { %p4676_p7 = scmp.eq.s32.totalorder (!%p4675_p13), %s4072_s28, 0 }
  0x89   : > { %744 = sbr.rel (%p4675_p13) target bundleno = 5302 (0x14b6), region = 116 }
  0x90   : > { %3911 = dma.done.wait (%p4676_p7), [#allocation4], 1024   ;;  %p4677_p2 = pmov %p4676_p7 }
  0x92   : > { %3913 = vsyncadd (%p4677_p2), [#allocation4], 4294966272  ;;  %p4678_p3 = pmov %p4677_p2 }
  0x93   : > { %p4679_p0 = pmov %p4677_p2 }
  0x94   : > { %3915 = dma.done.wait (%p4678_p3), [#allocation6], 3072  }
  0x95   : > { %3917 = vsyncadd (%p4679_p0), [#allocation6], 4294964224  ;;  %p4680_p1 = pmov %p4679_p0 }
  0x96   : > { %p4681_p5 = pmov %p4679_p0 }
  0x97   : > { %3919 = dma.done.wait (%p4680_p1), [#allocation9], 4096  }
  0x98   : > { %3921 = vsyncadd (%p4681_p5), [#allocation9], 4294963200  ;;  %v3935_v0 = vmov 0   ;;  %v3936_v1 = vmov 0.0   ;;  %s4682_s26 = sld [smem:[#allocation19_spill]]  ;;  %p835_p4 = scmp.lt.s32.totalorder %s4072_s28, 1  ;;  %v895_v27 = vlaneseq }
  0x99   : > { %1070 = vmatprep.mubr.bf16.mxu0 %v3935_v0  ;;  %3363 = vmatprep.subr.bf16.mxu1 %v3936_v1  ;;  %s4683_s22 = sld [smem:[#allocation15_spill]]  ;;  %vm3937_vm0 = vmmov 0   ;;  %s4684_s3 = sld [smem:[#allocation20_spill]]  ;;  %vm1122_vm1 = vcmask 261120   ;;  %vm1187_vm2 = vcmask 1043456   ;;  %vm1171_vm4 = vcmask 64512  }
  0x9a   : > { %s4698_s28 = smov (!%p835_p4, %s4072_s28), 1  ;;  %3379 = vmatprep.mubr.msk.bf16.mxu1 %vm3937_vm0, %v3936_v1  ;;  %v896_v28 = vshrl.u32 %v895_v27, 7  ;;  %s3938_s29 = smov 96   ;;  %vm1232_vm5 = vcmask 257024   ;;  %vm1356_vm6 = vcmask 519424   ;;  %vm1477_vm7 = vcmask 781824  }
  0x9b   : > { %s4276_s1 = sshll.u32 %s4698_s28, 2  ;;  %s3939_s27 = smov 64   ;;  %vm1598_vm8 = vcmask 1044224  }
  0x9c   : > { %v4340_v29 = vsub.s32 1, %v896_v28  ;;  %v4345_v31 = vsub.s32 0, %v896_v28  ;;  %s3940_s30 = smov 32   ;;  %v905_v43 = vsub.s32 2, %v896_v28  ;;  %s3135_s24 = sshll.u32 %s4698_s28, 3 }
  0x9d   : > { %s4685_s6 = sld [smem:[#allocation17_spill]]  ;;  %s4686_s4 = sld [smem:[#allocation21_spill]] }
  0x9e   : > { %v3608_v2 = vld [vmem:[%s4682_s26 + $0x4] ss:$12 sps:$4 sm:$0xff]   ;;  %v3610_v3 = vld [vmem:[%s4682_s26] ss:$12 sps:$4 sm:$0xff]   ;;  %v3611_v4 = vld [vmem:[%s4682_s26 + $0x1c] ss:$12 sps:$4 sm:$0xff]  }
  0x9f   : > { %1038 = vmatprep.subr.bf16.mxu0 %v3608_v2  ;;  %v3613_v5 = vld [vmem:[%s4682_s26 + $0x18] ss:$12 sps:$4 sm:$0xff]   ;;  %v3614_v6 = vld [vmem:[%s4682_s26 + $0x34] ss:$12 sps:$4 sm:$0xff]   ;;  %v3616_v7 = vld [vmem:[%s4682_s26 + $0x30] ss:$12 sps:$4 sm:$0xff]   ;;  %s838_s23 = scalar_lea.vmem %s4683_s22, %s4276_s1 }
  0xa0   : > { %1039 = vmatpush1.bf16.msra.mxu0 %v3610_v3  ;;  %v3617_v8 = vld [vmem:[%s4682_s26 + $0x4c] ss:$12 sps:$4 sm:$0xff]   ;;  %v3619_v9 = vld [vmem:[%s4682_s26 + $0x48] ss:$12 sps:$4 sm:$0xff]   ;;  %v3620_v11 = vld [vmem:[%s4682_s26 + $0x64] ss:$12 sps:$4 sm:$0xff]  }
  0xa1   : > { %1040 = vmatprep.subr.bf16.mxu0 %v3611_v4  ;;  %v3632_v10 = vld [vmem:[%s4682_s26 + $0x8] ss:$12 sps:$4 sm:$0xff]   ;;  %v3633_v12 = vld [vmem:[%s4682_s26 + $0x20] ss:$12 sps:$4 sm:$0xff]   ;;  %v3625_v15 = vld [vmem:[%s4682_s26 + $0x78] ss:$12 sps:$4 sm:$0xff]  }
  0xa2   : > { %3364 = vmatpush3.bf16.msra.mxu1 %v3632_v10  ;;  %v3622_v13 = vld [vmem:[%s4682_s26 + $0x60] ss:$12 sps:$4 sm:$0xff]   ;;  %v3623_v14 = vld [vmem:[%s4682_s26 + $0x7c] ss:$12 sps:$4 sm:$0xff]   ;;  %v3634_v16 = vld [vmem:[%s4682_s26 + $0x38] ss:$12 sps:$4 sm:$0xff]  }
  0xa3   : > { %3365 = vmatprep.subr.bf16.mxu1 %v3936_v1  ;;  %v3626_v17 = vld [vmem:[%s4682_s26 + $0x94] ss:$12 sps:$4 sm:$0xff]   ;;  %v3635_v18 = vld [vmem:[%s4682_s26 + $0x50] ss:$12 sps:$4 sm:$0xff]   ;;  %v3629_v20 = vld [vmem:[%s4682_s26 + $0xac] ss:$12 sps:$4 sm:$0xff]   ;;  %s846_s0 = scalar_lea.vmem %s4685_s6, %s3135_s24 }
  0xa4   : > { %1041 = vmatpush1.bf16.msra.mxu0 %v3613_v5  ;;  %v3628_v19 = vld [vmem:[%s4682_s26 + $0x90] ss:$12 sps:$4 sm:$0xff]   ;;  %v3636_v21 = vld [vmem:[%s4682_s26 + $0x68] ss:$12 sps:$4 sm:$0xff]   ;;  %v3637_v23 = vld [vmem:[%s4682_s26 + $0x80] ss:$12 sps:$4 sm:$0xff]  }
  0xa5   : > { %1042 = vmatprep.subr.bf16.mxu0 %v3614_v6  ;;  %v3631_v22 = vld [vmem:[%s4682_s26 + $0xa8] ss:$12 sps:$4 sm:$0xff]   ;;  %v4319_v24 = vld [vmem:[%s838_s23] sm:$0xf]  ;;  %v3638_v25 = vld [vmem:[%s4682_s26 + $0x98] ss:$12 sps:$4 sm:$0xff]  }
  0xa6   : > { %3366 = vmatpush3.bf16.msra.mxu1 %v3633_v12  ;;  %v3639_v26 = vld [vmem:[%s4682_s26 + $0xb0] ss:$12 sps:$4 sm:$0xff]   ;;  %v893_v30 = vld [vmem:[%s4684_s3] sm:$0x7]  ;;  %s4687_s22 = sld [smem:[#allocation22_spill]]  ;;  %s4689_s2 = sld [smem:[#allocation23_spill]] }
  0xa7   : > { %3367 = vmatprep.subr.bf16.mxu1 %v3936_v1  ;;  %v902_v32 = vrot.slane %v893_v30, %v4340_v29  ;;  %v898_v33 = vrot.slane %v893_v30, %v4345_v31  ;;  %v906_v44 = vrot.slane %v893_v30, %v905_v43  ;;  %v4368_v52 = vld [vmem:[%s846_s0] sm:$0xff]  ;;  %s4688_s0 = sld [smem:[#allocation16_spill]]  ;;  %s4690_s8 = sld [smem:[#allocation18_spill]] }
  0xa8   : > { %1043 = vmatpush1.bf16.msra.mxu0 %v3616_v7  ;;  %vm858_vm3 = vcmp.gt.f32.partialorder %v4368_v52, 0.0 }
  0xa9   : > { %1044 = vmatprep.subr.bf16.mxu0 %v3617_v8 }
  0xaa   : > { %3368 = vmatpush3.bf16.msra.mxu1 %v3634_v16 }
  0xab   : > { %3369 = vmatprep.subr.bf16.mxu1 %v3936_v1 }
  0xac   : > { %1045 = vmatpush1.bf16.msra.mxu0 %v3619_v9 }
  0xad   : > { %1046 = vmatprep.subr.bf16.mxu0 %v3620_v11  ;;  %s842_s25 = scalar_lea.vmem %s4688_s0, %s4276_s1  ;;  %s849_s5 = scalar_lea.vmem %s4690_s8, %s4698_s28 }
  0xae   : > { %3370 = vmatpush3.bf16.msra.mxu1 %v3635_v18  ;;  %s4694_s28 = sld [smem:[#allocation25_spill]] }
  0xaf   : > { %3371 = vmatprep.subr.bf16.mxu1 %v3936_v1 }
  0xb0   : > { %1047 = vmatpush1.bf16.msra.mxu0 %v3622_v13 }
  0xb1   : > { %1048 = vmatprep.subr.bf16.mxu0 %v3623_v14 }
  0xb2   : > { %3372 = vmatpush3.bf16.msra.mxu1 %v3636_v21 }
  0xb3   : > { %3373 = vmatprep.subr.bf16.mxu1 %v3936_v1 }
  0xb4   : > { %1049 = vmatpush1.bf16.msra.mxu0 %v3625_v15 }
  0xb5   : > { %1050 = vmatprep.subr.bf16.mxu0 %v3626_v17 }
  0xb6   : > { %3374 = vmatpush3.bf16.msra.mxu1 %v3637_v23 }
  0xb7   : > { %3375 = vmatprep.subr.bf16.mxu1 %v3936_v1 }
  0xb8   : > { %1051 = vmatpush1.bf16.msra.mxu0 %v3628_v19 }
  0xb9   : > { %1052 = vmatprep.subr.bf16.mxu0 %v3629_v20 }
  0xba   : > { %3376 = vmatpush3.bf16.msra.mxu1 %v3638_v25 }
  0xbb   : > { %3377 = vmatprep.subr.bf16.mxu1 %v3936_v1 }
  0xbc   : > { %1053 = vmatpush1.bf16.msra.mxu0 %v3631_v22 }
  0xbd   : > { %3407 = vmatprep.subr.bf16.mxu0 %v3936_v1 }
  0xbe   : > { %3378 = vmatpush3.bf16.msra.mxu1 %v3639_v26 }
  0xbf   : > { %1071 = vmatmul.mubr.bf16.vlgmr.msra.gmra.mrb[0].mxu0 %v4319_v24  ;;  %3383 = vmatprep.subr.bf16.mxu1 %v3936_v1 }
  0xc0   : > { %3409 = vmatprep.mubr.msk.bf16.mxu0 %vm3937_vm0, %v3936_v1 }
  0xc1   : > { %3380 = vmatmul.mubr.bf16.vlgmr.msra.gmra.mrb[0].mxu1 %v4319_v24 }
  0xc2   : > { %3385 = vmatprep.mubr.msk.bf16.mxu1 %vm3937_vm0, %v3936_v1 }
 0x192   : > { %v1072_v34 = vpop.f32.mrb[0].mxu0 }
 0x193   : > { %v1074_v35 = vpop.f32.mrb[1].mxu0  ;;  %v1073_v39 = vadd.f32 %v1072_v34, %v898_v33 }
 0x194   : > { %v1075_v36 = vadd.f32 %v1074_v35, %v902_v32  ;;  %v1076_v37 = vpop.f32.mrb[2].mxu0  ;;  %v1113_v45 = vpop.f32.mrb[0].mxu1 }
 0x195   : > { %v1077_v38 = vpop.f32.mrb[3].mxu0  ;;  %v1119_v42 = vpack.c.bf16 %v1073_v39, %v1073_v39  ;;  %v1114_v46 = vadd.f32 %v1113_v45, %v906_v44  ;;  %v3381_v47 = vpop.f32.mrb[1].mxu1 }
 0x196   : > { %v1120_v40 = vpack.c.bf16 %v1075_v36, %v1075_v36  ;;  %v1116_v48 = vpop.f32.mrb[2].mxu1 }
 0x197   : > { %v4359_v49 = vpack.c.bf16 %v1114_v46, %v1114_v46  ;;  %v3382_v50 = vpop.f32.mrb[3].mxu1 }
 0x198   : > { %1238 = vrot.lane.b32.xlu1 %v1120_v40, %s3938_s29  ;;  %v1127_v41 = vsel %vm1122_vm1, %v1120_v40, 0 }
 0x199   : > { %3384 = vmatpush3.bf16.xpose.msra.mxu1 %v1127_v41  ;;  %v1189_v51 = vsel %vm1187_vm2, %v4359_v49, 0 }
 0x19a   : > { %3389 = vmatprep.subr.bf16.mxu1 %v3936_v1 }
 0x19c   : > { %1235 = vrot.lane.b32.xlu1 %v1119_v42, %s3938_s29 }
 0x1a0   : > { %1358 = vrot.lane.b32.xlu1 %v1119_v42, %s3939_s27  ;;  %3386 = vmatmul.mubr.msk.bf16.vlgmr.msra.gmra.mrb[4].mxu1 %vm1122_vm1, %v1119_v42 }
 0x1a1   : > { %3391 = vmatprep.mubr.msk.bf16.mxu1 %vm3937_vm0, %v3936_v1  ;;  %3390 = vmatpush3.bf16.msra.mxu1 %v1189_v51 }
 0x1a2   : > { %3395 = vmatprep.subr.bf16.mxu1 %v3936_v1 }
 0x1a4   : > { %1481 = vrot.lane.b32.xlu1 %v1120_v40, %s3940_s30 }
 0x1a8   : > { %1479 = vrot.lane.b32.xlu1 %v1119_v42, %s3940_s30 }
 0x20a   : > { %v1239_v3 = vpop.permute.xlu1 %1238 }
 0x20b   : > { %v1244_v14 = vsel %vm1122_vm1, %v1239_v3, 0 }
 0x20e   : > { %v1236_v4 = vpop.permute.xlu1 %1235 }
 0x212   : > { %v1359_v6 = vpop.permute.xlu1 %1358 }
 0x216   : > { %v1482_v9 = vpop.permute.xlu1 %1481 }
 0x217   : > { %v1487_v12 = vsel %vm1122_vm1, %v1482_v9, 0 }
 0x21a   : > { %v1480_v15 = vpop.permute.xlu1 %1479 }
 0x273   : > { %v1163_v53 = vpop.f32.mrb[4].mxu1 }
 0x274   : > { %v1169_v54 = vmul.f32 0.17677669, %v1163_v53  ;;  %v3387_v55 = vpop.f32.mrb[5].mxu1 }
 0x275   : > { %v1166_v56 = vpop.f32.mrb[6].mxu1 }
 0x276   : > { %v3388_v57 = vpop.f32.mrb[7].mxu1  ;;  %v1170_v58 = vsel %vm858_vm3, %v1169_v54, -1e+09 }
 0x277   : > { %v1172_v59 = vsel %vm1171_vm4, %v1170_v58, -inf }
 0x278   : > { %1173 = vmax.xlane.f32.xlu0 %v1172_v59 }
 0x305   : > { %v1174_v60 = vpop.xlane.xlu0 %1173 }
 0x306   : > { %v1175_v61 = vsub.f32 %v1170_v58, %v1174_v60 }
 0x308   : > { %v1176_v62 = vmul.f32 1.442695, %v1175_v61 }
 0x30a   : > { %3728 = vpow2.f32 %v1176_v62 }
 0x314   : > { %v3729_v63 = vpop.eup %3728 }
 0x315   : > { %v1178_v2 = vsel %vm1171_vm4, %v3729_v63, 0.0 }
 0x316   : > { %1179 = vadd.xlane.f32.xlu0 %v1178_v2 }
 0x32c   : > { %1360 = vrot.lane.b32.xlu0 %v1120_v40, %s3939_s27 }
 0x3a3   : > { %v1180_v5 = vpop.xlane.xlu0 %1179 }
 0x3a4   : > { %3730 = vrcp.f32 %v1180_v5 }
 0x3a7   : > { %v1361_v7 = vpop.permute.xlu0 %1360 }
 0x3a8   : > { %v1366_v8 = vsel %vm1122_vm1, %v1361_v7, 0 }
 0x3a9   : > { %3408 = vmatpush3.bf16.xpose.msra.mxu0 %v1366_v8 }
 0x3aa   : > { %3419 = vmatprep.subr.bf16.mxu0 %v3936_v1 }
 0x3ae   : > { %v3731_v10 = vpop.eup %3730 }
 0x3af   : > { %v1182_v11 = vmul.f32 %v3731_v10, %v3729_v63 }
 0x3b0   : > { %3410 = vmatmul.mubr.msk.bf16.vlgmr.msra.gmra.mrb[4].mxu0 %vm1122_vm1, %v1359_v6 }
 0x3b1   : > { %3420 = vmatpush3.bf16.xpose.msra.mxu0 %v1487_v12  ;;  %v1183_v13 = vpack.c.bf16 %v1182_v11, %v1182_v11  ;;  %3421 = vmatprep.mubr.msk.bf16.mxu0 %vm3937_vm0, %v3936_v1 }
 0x3b2   : > { %3431 = vmatprep.subr.bf16.mxu0 %v3936_v1 }
 0x3b3   : > { %3392 = vmatmul.mubr.msk.bf16.vlgmr.msra.gmra.mrb[8].mxu1 %vm1171_vm4, %v1183_v13 }
 0x3b4   : > { %3396 = vmatpush3.bf16.xpose.msra.mxu1 %v1244_v14  ;;  %3397 = vmatprep.mubr.msk.bf16.mxu1 %vm3937_vm0, %v3936_v1 }
 0x3b5   : > { %3401 = vmatprep.subr.bf16.mxu1 %v3936_v1 }
 0x3b8   : > { %3422 = vmatmul.mubr.msk.bf16.vlgmr.msra.gmra.mrb[8].mxu0 %vm1122_vm1, %v1480_v15 }
 0x3b9   : > { %3447 = vmatprep.mubr.msk.bf16.mxu0 %vm3937_vm0, %v3936_v1 }
 0x3bb   : > { %3398 = vmatmul.mubr.msk.bf16.vlgmr.msra.gmra.mrb[12].mxu1 %vm1122_vm1, %v1236_v4 }
 0x3bc   : > { %3403 = vmatprep.mubr.msk.bf16.mxu1 %vm3937_vm0, %v3936_v1 }
 0x483   : > { %v1402_v16 = vpop.f32.mrb[4].mxu0 }
 0x484   : > { %v1408_v17 = vmul.f32 0.17677669, %v1402_v16  ;;  %v3411_v18 = vpop.f32.mrb[5].mxu0  ;;  %v3640_v16 = vld [vmem:[%s4686_s4] sm:$0xff]  }
 0x485   : > { %v1405_v19 = vpop.f32.mrb[6].mxu0  ;;  %3432 = vmatpush3.bf16.msra.mxu0 %v3640_v16  ;;  %v3642_v18 = vld [vmem:[%s4686_s4 + $0x10] sm:$0xff]  }
 0x486   : > { %v1225_v20 = vpop.f32.mrb[8].mxu1  ;;  %v3412_v21 = vpop.f32.mrb[7].mxu0  ;;  %v1409_v22 = vsel %vm858_vm3, %v1408_v17, -1e+09  ;;  %v3641_v17 = vld [vmem:[%s4686_s4 + $0x8] sm:$0xff]   ;;  %3433 = vmatprep.subr.bf16.mxu0 %v3936_v1  ;;  %v3643_v19 = vld [vmem:[%s4686_s4 + $0x18] sm:$0xff]  }
 0x487   : > { %v1231_v23 = vpack.c.bf16 %v1225_v20, %v1225_v20  ;;  %v3393_v25 = vpop.f32.mrb[9].mxu1  ;;  %v1410_v26 = vsel %vm1171_vm4, %v1409_v22, -inf  ;;  %v3644_v20 = vld [vmem:[%s4686_s4 + $0x20] sm:$0xff]   ;;  %v3677_v16 = vld [vmem:[#allocation3 + $0x28] sm:$0xff]  }
 0x488   : > { %1411 = vmax.xlane.f32.xlu0 %v1410_v26  ;;  %v1228_v27 = vpop.f32.mrb[10].mxu1 }
 0x489   : > { %1233 = vst.msk [vmem:[#allocation2] sm:$0xf] %vm1232_vm5, %v1231_v23  ;;  %v3394_v28 = vpop.f32.mrb[11].mxu1  ;;  %3434 = vmatpush3.bf16.msra.mxu0 %v3641_v17  ;;  %v1741_v17 = vld [vmem:[%s842_s25] sm:$0xf]  ;;  %s4693_s25 = sld [smem:[#allocation24_spill]] }
 0x48a   : > { %3435 = vmatprep.subr.bf16.mxu0 %v3936_v1  ;;  %v3646_v28 = vld [vmem:[%s4686_s4 + $0x30] sm:$0xff]  }
 0x48b   : > { %v1523_v30 = vpop.f32.mrb[8].mxu0 }
 0x48c   : > { %v3423_v32 = vpop.f32.mrb[9].mxu0  ;;  %v1529_v36 = vmul.f32 0.17677669, %v1523_v30 }
 0x48d   : > { %v1526_v33 = vpop.f32.mrb[10].mxu0  ;;  %3436 = vmatpush3.bf16.msra.mxu0 %v3642_v18  ;;  %v3647_v32 = vld [vmem:[%s4686_s4 + $0x38] sm:$0xff]  }
 0x48e   : > { %v1280_v34 = vpop.f32.mrb[12].mxu1  ;;  %v3424_v35 = vpop.f32.mrb[11].mxu0  ;;  %v1530_v43 = vsel %vm858_vm3, %v1529_v36, -1e+09  ;;  %3437 = vmatprep.subr.bf16.mxu0 %v3936_v1  ;;  %v3678_v18 = vld [vmem:[#allocation3 + $0x30] sm:$0xff]  }
 0x48f   : > { %v1286_v37 = vmul.f32 0.17677669, %v1280_v34  ;;  %v3399_v38 = vpop.f32.mrb[13].mxu1  ;;  %v1531_v44 = vsel %vm1171_vm4, %v1530_v43, -inf }
 0x490   : > { %v1283_v39 = vpop.f32.mrb[14].mxu1 }
 0x491   : > { %v3400_v40 = vpop.f32.mrb[15].mxu1  ;;  %v1287_v41 = vsel %vm858_vm3, %v1286_v37, -1e+09  ;;  %3438 = vmatpush3.bf16.msra.mxu0 %v3643_v19  ;;  %v3679_v19 = vld [vmem:[#allocation3 + $0x38] sm:$0xff]  }
 0x492   : > { %v1288_v42 = vsel %vm1171_vm4, %v1287_v41, -inf  ;;  %3439 = vmatprep.subr.bf16.mxu0 %v3936_v1 }
 0x493   : > { %1289 = vmax.xlane.f32.xlu1 %v1288_v42 }
 0x495   : > { %3440 = vmatpush3.bf16.msra.mxu0 %v3644_v20 }
 0x496   : > { %3441 = vmatprep.subr.bf16.mxu0 %v3936_v1 }
 0x497   : > { %1532 = vmax.xlane.f32.xlu1 %v1531_v44 }
 0x515   : > { %v1412_v45 = vpop.xlane.xlu0 %1411 }
 0x516   : > { %v1413_v46 = vsub.f32 %v1409_v22, %v1412_v45  ;;  %v3645_v22 = vld [vmem:[%s4686_s4 + $0x28] sm:$0xff]  }
 0x517   : > { %3442 = vmatpush3.bf16.msra.mxu0 %v3645_v22 }
 0x518   : > { %v1414_v47 = vmul.f32 1.442695, %v1413_v46  ;;  %3443 = vmatprep.subr.bf16.mxu0 %v3936_v1  ;;  %v3172_v46 = vld [vmem:[%s4687_s22] ss:$0 sm:$0xff] }
 0x51a   : > { %3732 = vpow2.f32 %v1414_v47  ;;  %v856_v47 = vunpack.c.l.bf16 %v4319_v24  ;;  %v3654_v24 = vld [vmem:[#allocation5 + $0x20] ss:$8 sps:$4 sm:$0xff]  }
 0x51b   : > { %3444 = vmatpush3.bf16.msra.mxu0 %v3646_v28 }
 0x51c   : > { %3445 = vmatprep.subr.bf16.mxu0 %v3936_v1 }
 0x51f   : > { %3446 = vmatpush3.bf16.msra.mxu0 %v3647_v32 }
 0x520   : > { %v1290_v48 = vpop.xlane.xlu1 %1289 }
 0x521   : > { %v1291_v50 = vsub.f32 %v1287_v41, %v1290_v48 }
 0x523   : > { %v1292_v56 = vmul.f32 1.442695, %v1291_v50 }
 0x524   : > { %v3733_v51 = vpop.eup %3732  ;;  %v1533_v53 = vpop.xlane.xlu1 %1532 }
 0x525   : > { %v1534_v54 = vsub.f32 %v1530_v43, %v1533_v53  ;;  %v1416_v55 = vsel %vm1171_vm4, %v3733_v51, 0.0 }
 0x526   : > { %1417 = vadd.xlane.f32.xlu0 %v1416_v55 }
 0x527   : > { %v1535_v57 = vmul.f32 1.442695, %v1534_v54 }
 0x529   : > { %3734 = vpow2.f32 %v1535_v57  ;;  %v3650_v57 = vld [vmem:[#allocation5 + $0x4] ss:$8 sps:$4 sm:$0xff]  }
 0x52a   : > { %3736 = vpow2.f32 %v1292_v56  ;;  %v3648_v56 = vld [vmem:[#allocation5] ss:$8 sps:$4 sm:$0xff]   ;;  %1962 = vmatprep.subr.bf16.mxu0 %v3650_v57 }
 0x533   : > { %v3735_v52 = vpop.eup %3734 }
 0x534   : > { %v1537_v58 = vsel %vm1171_vm4, %v3735_v52, 0.0  ;;  %v3737_v59 = vpop.eup %3736 }
 0x535   : > { %1538 = vadd.xlane.f32.xlu1 %v1537_v58  ;;  %v1294_v60 = vsel %vm1171_vm4, %v3737_v59, 0.0  ;;  %v3657_v58 = vld [vmem:[#allocation3] sm:$0xff]  }
 0x539   : > { %1295 = vadd.xlane.f32.xlu1 %v1294_v60  ;;  %v3656_v60 = vld [vmem:[#allocation5 + $0x24] ss:$8 sps:$4 sm:$0xff]  }
 0x53c   : > { %1301 = vrot.lane.b32.xlu0 %v4359_v49, %s3938_s29 }
 0x54a   : > { %1422 = vrot.lane.b32.xlu1 %v4359_v49, %s3939_s27 }
 0x54e   : > { %1543 = vrot.lane.b32.xlu1 %v4359_v49, %s3940_s30 }
 0x5b3   : > { %v1418_v61 = vpop.xlane.xlu0 %1417 }
 0x5b7   : > { %v1302_v62 = vpop.permute.xlu0 %1301 }
 0x5b8   : > { %v1307_v63 = vsel %vm1187_vm2, %v1302_v62, 0  ;;  %v3660_v62 = vld [vmem:[#allocation5 + $0x34] ss:$8 sps:$4 sm:$0xff]  }
 0x5b9   : > { %3402 = vmatpush3.bf16.msra.mxu1 %v1307_v63  ;;  %v3658_v63 = vld [vmem:[#allocation5 + $0x30] ss:$8 sps:$4 sm:$0xff]  }
 0x5ba   : > { %3413 = vmatprep.subr.bf16.mxu1 %v3936_v1 }
 0x5c2   : > { %v1539_v2 = vpop.xlane.xlu1 %1538 }
 0x5c6   : > { %v1296_v3 = vpop.xlane.xlu1 %1295 }
 0x5c7   : > { %3738 = vrcp.f32 %v1296_v3  ;;  %v3662_v3 = vld [vmem:[#allocation5 + $0x40] ss:$8 sps:$4 sm:$0xff]  }
 0x5c8   : > { %3740 = vrcp.f32 %v1418_v61  ;;  %v3661_v61 = vld [vmem:[#allocation3 + $0x8] sm:$0xff]  }
 0x5c9   : > { %3742 = vrcp.f32 %v1539_v2  ;;  %v3664_v2 = vld [vmem:[#allocation5 + $0x44] ss:$8 sps:$4 sm:$0xff]  }
 0x5ca   : > { %v1423_v6 = vpop.permute.xlu1 %1422 }
 0x5cb   : > { %v1428_v9 = vsel %vm1187_vm2, %v1423_v6, 0 }
 0x5ce   : > { %v1544_v10 = vpop.permute.xlu1 %1543 }
 0x5cf   : > { %v1549_v13 = vsel %vm1187_vm2, %v1544_v10, 0  ;;  %v3669_v10 = vld [vmem:[#allocation3 + $0x18] sm:$0xff]  }
 0x5d1   : > { %v3739_v4 = vpop.eup %3738 }
 0x5d2   : > { %v1298_v5 = vmul.f32 %v3739_v4, %v3737_v59  ;;  %v3741_v8 = vpop.eup %3740  ;;  %v3651_v59 = vld [vmem:[#allocation5 + $0x10] ss:$8 sps:$4 sm:$0xff]  }
 0x5d3   : > { %v1420_v49 = vmul.f32 %v3741_v8, %v3733_v51  ;;  %v3743_v12 = vpop.eup %3742  ;;  %v3665_v8 = vld [vmem:[#allocation3 + $0x10] sm:$0xff]  }
 0x5d4   : > { %v1299_v7 = vpack.c.bf16 %v1298_v5, %v1298_v5  ;;  %v1541_v14 = vmul.f32 %v3743_v12, %v3735_v52  ;;  %v3653_v52 = vld [vmem:[#allocation5 + $0x14] ss:$8 sps:$4 sm:$0xff]   ;;  %v3670_v12 = vld [vmem:[#allocation5 + $0x60] ss:$8 sps:$4 sm:$0xff]  }
 0x5d5   : > { %v1421_v11 = vpack.c.bf16 %v1420_v49, %v1420_v49  ;;  %v3666_v49 = vld [vmem:[#allocation5 + $0x50] ss:$8 sps:$4 sm:$0xff]  }
 0x5d6   : > { %3404 = vmatmul.mubr.msk.bf16.vlgmr.msra.gmra.mrb[16].mxu1 %vm1171_vm4, %v1299_v7  ;;  %v1542_v15 = vpack.c.bf16 %v1541_v14, %v1541_v14  ;;  %v3676_v14 = vld [vmem:[#allocation5 + $0x74] ss:$8 sps:$4 sm:$0xff]  }
 0x5d7   : > { %3414 = vmatpush3.bf16.msra.mxu1 %v1428_v9  ;;  %3415 = vmatprep.mubr.msk.bf16.mxu1 %vm3937_vm0, %v3936_v1  ;;  %v3668_v9 = vld [vmem:[#allocation5 + $0x54] ss:$8 sps:$4 sm:$0xff]  }
 0x5d8   : > { %3425 = vmatprep.subr.bf16.mxu1 %v3936_v1 }
 0x5de   : > { %3416 = vmatmul.mubr.msk.bf16.vlgmr.msra.gmra.mrb[20].mxu1 %vm1171_vm4, %v1421_v11  ;;  %v3672_v11 = vld [vmem:[#allocation5 + $0x64] ss:$8 sps:$4 sm:$0xff]  }
 0x5df   : > { %3426 = vmatpush3.bf16.msra.mxu1 %v1549_v13  ;;  %3427 = vmatprep.mubr.msk.bf16.mxu1 %vm3937_vm0, %v3936_v1  ;;  %v3673_v13 = vld [vmem:[#allocation3 + $0x20] sm:$0xff]  }
 0x5e0   : > { %3451 = vmatprep.subr.bf16.mxu1 %v3936_v1 }
 0x5e6   : > { %3428 = vmatmul.mubr.msk.bf16.vlgmr.msra.gmra.mrb[24].mxu1 %vm1171_vm4, %v1542_v15  ;;  %v3674_v15 = vld [vmem:[#allocation5 + $0x70] ss:$8 sps:$4 sm:$0xff]  }
 0x5e7   : > { %3467 = vmatprep.mubr.msk.bf16.mxu1 %vm3937_vm0, %v3936_v1  ;;  %3452 = vmatpush3.bf16.msra.mxu1 %v3657_v58 }
 0x5e8   : > { %3453 = vmatprep.subr.bf16.mxu1 %v3936_v1 }
 0x5eb   : > { %3454 = vmatpush3.bf16.msra.mxu1 %v3661_v61 }
 0x5ec   : > { %3455 = vmatprep.subr.bf16.mxu1 %v3936_v1 }
 0x5ef   : > { %3456 = vmatpush3.bf16.msra.mxu1 %v3665_v8 }
 0x5f0   : > { %3457 = vmatprep.subr.bf16.mxu1 %v3936_v1 }
 0x5f3   : > { %3458 = vmatpush3.bf16.msra.mxu1 %v3669_v10 }
 0x5f4   : > { %3459 = vmatprep.subr.bf16.mxu1 %v3936_v1 }
 0x5f7   : > { %3460 = vmatpush3.bf16.msra.mxu1 %v3673_v13 }
 0x5f8   : > { %3461 = vmatprep.subr.bf16.mxu1 %v3936_v1 }
 0x5fb   : > { %3462 = vmatpush3.bf16.msra.mxu1 %v3677_v16 }
 0x5fc   : > { %3463 = vmatprep.subr.bf16.mxu1 %v3936_v1 }
 0x5ff   : > { %3464 = vmatpush3.bf16.msra.mxu1 %v3678_v18 }
 0x600   : > { %3465 = vmatprep.subr.bf16.mxu1 %v3936_v1 }
 0x603   : > { %3466 = vmatpush3.bf16.msra.mxu1 %v3679_v19 }
 0x604   : > { %3471 = vmatprep.subr.bf16.mxu1 %v3936_v1 }
 0x6a9   : > { %v1343_v21 = vpop.f32.mrb[16].mxu1 }
 0x6aa   : > { %v3267_v23 = vpack.c.bf16 %v1343_v21, %v1343_v21  ;;  %v3405_v25 = vpop.f32.mrb[17].mxu1 }
 0x6ab   : > { %v1346_v26 = vpop.f32.mrb[18].mxu1  ;;  %v3181_v25 = vld [vmem:[%s4689_s2] ss:$0 sm:$0xff] }
 0x6ac   : > { %1353 = vrot.lane.b32.xlu0 %v3267_v23, %s3940_s30  ;;  %v3406_v27 = vpop.f32.mrb[19].mxu1 }
 0x6ad   : > { %v3182_v27 = vld [vmem:[%s4638_s9] ss:$0 sm:$0xff] }
 0x6b1   : > { %v1464_v30 = vpop.f32.mrb[20].mxu1 }
 0x6b2   : > { %v3268_v33 = vpack.c.bf16 %v1464_v30, %v1464_v30  ;;  %v3417_v34 = vpop.f32.mrb[21].mxu1 }
 0x6b3   : > { %v1467_v35 = vpop.f32.mrb[22].mxu1 }
 0x6b4   : > { %1474 = vrot.lane.b32.xlu1 %v3268_v33, %s3939_s27  ;;  %v3418_v36 = vpop.f32.mrb[23].mxu1  ;;  %v1870_v33 = vld [vmem:[%s4642_s13] sm:$0x3] }
 0x6b5   : > { %v1875_v34 = vrot.slane %v1870_v33, %v4345_v31 }
 0x6b9   : > { %v1585_v37 = vpop.f32.mrb[24].mxu1 }
 0x6ba   : > { %v3269_v38 = vpack.c.bf16 %v1585_v37, %v1585_v37  ;;  %v3429_v39 = vpop.f32.mrb[25].mxu1 }
 0x6bb   : > { %v1588_v40 = vpop.f32.mrb[26].mxu1 }
 0x6bc   : > { %1595 = vrot.lane.b32.xlu0 %v3269_v38, %s3938_s29  ;;  %v3430_v41 = vpop.f32.mrb[27].mxu1 }
 0x71e   : > { %v1354_v42 = vpop.permute.xlu0 %1353 }
 0x71f   : > { %1357 = vst.msk [vmem:[#allocation2] sm:$0xf] %vm1356_vm6, %v1354_v42  ;;  %v1879_v42 = vrot.slane %v1870_v33, %v4340_v29 }
 0x726   : > { %v1475_v43 = vpop.permute.xlu1 %1474 }
 0x727   : > { %1478 = vst.msk [vmem:[#allocation2] sm:$0xf] %vm1477_vm7, %v1475_v43 }
 0x72e   : > { %v1596_v44 = vpop.permute.xlu0 %1595 }
 0x72f   : > { %1599 = vst.msk [vmem:[#allocation2] sm:$0xf] %vm1598_vm8, %v1596_v44  ;;  %v3183_v44 = vld [vmem:[%s4640_s11] ss:$0 sm:$0xff] }
 0x736   : > { %v1600_v45 = vld [vmem:[#allocation2] sm:$0xf] }
 0x737   : > { %3448 = vmatmul.mubr.bf16.vlgmr.msra.gmra.mrb[12].mxu0 %v1600_v45 }
 0x738   : > { %1994 = vmatprep.mubr.bf16.mxu0 %v3935_v0  ;;  %1963 = vmatpush1.bf16.msra.mxu0 %v3648_v56 }
 0x739   : > { %1964 = vmatprep.subr.bf16.mxu0 %v3653_v52 }
 0x73c   : > { %1965 = vmatpush1.bf16.msra.mxu0 %v3651_v59 }
 0x73d   : > { %1966 = vmatprep.subr.bf16.mxu0 %v3656_v60 }
 0x740   : > { %1967 = vmatpush1.bf16.msra.mxu0 %v3654_v24 }
 0x741   : > { %1968 = vmatprep.subr.bf16.mxu0 %v3660_v62 }
 0x744   : > { %1969 = vmatpush1.bf16.msra.mxu0 %v3658_v63 }
 0x745   : > { %1970 = vmatprep.subr.bf16.mxu0 %v3664_v2 }
 0x748   : > { %1971 = vmatpush1.bf16.msra.mxu0 %v3662_v3 }
 0x749   : > { %1972 = vmatprep.subr.bf16.mxu0 %v3668_v9 }
 0x74c   : > { %1973 = vmatpush1.bf16.msra.mxu0 %v3666_v49 }
 0x74d   : > { %1974 = vmatprep.subr.bf16.mxu0 %v3672_v11 }
 0x750   : > { %1975 = vmatpush1.bf16.msra.mxu0 %v3670_v12 }
 0x751   : > { %1976 = vmatprep.subr.bf16.mxu0 %v3676_v14 }
 0x754   : > { %1977 = vmatpush1.bf16.msra.mxu0 %v3674_v15 }
 0x755   : > { %3495 = vmatprep.subr.bf16.mxu0 %v3936_v1 }
 0x757   : > { %1995 = vmatmul.mubr.bf16.vlgmr.msra.gmra.mrb[16].mxu0 %v1741_v17 }
 0x758   : > { %3497 = vmatprep.mubr.msk.bf16.mxu0 %vm3937_vm0, %v3936_v1 }
 0x80a   : > { %v1706_v48 = vpop.f32.mrb[12].mxu0 }
 0x80b   : > { %v1707_v50 = vadd.f32 %v3172_v46, %v1706_v48  ;;  %v3449_v51 = vpop.f32.mrb[13].mxu0 }
 0x80c   : > { %v1709_v53 = vpop.f32.mrb[14].mxu0 }
 0x80d   : > { %v3450_v54 = vpop.f32.mrb[15].mxu0  ;;  %v1712_v55 = vadd.f32 %v1707_v50, %v856_v47 }
 0x80f   : > { %1715 = vadd.xlane.f32.xlu1 %v1712_v55 }
 0x82a   : > { %v1996_v35 = vpop.f32.mrb[16].mxu0 }
 0x82b   : > { %v1997_v36 = vadd.f32 %v1996_v35, %v1875_v34  ;;  %v1998_v37 = vpop.f32.mrb[17].mxu0 }
 0x82c   : > { %v2000_v38 = vpop.f32.mrb[18].mxu0  ;;  %v1999_v43 = vadd.f32 %v1998_v37, %v1879_v42 }
 0x82d   : > { %v2004_v39 = vpack.c.bf16 %v1997_v36, %v1997_v36  ;;  %v2001_v40 = vpop.f32.mrb[19].mxu0 }
 0x82e   : > { %v4507_v46 = vpack.c.bf16 %v1999_v43, %v1999_v43 }
 0x82f   : > { %v2010_v41 = vsel %vm1122_vm1, %v2004_v39, 0 }
 0x830   : > { %v2076_v54 = vsel %vm1187_vm2, %v4507_v46, 0 }
 0x89c   : > { %v1716_v4 = vpop.xlane.xlu1 %1715 }
 0x89d   : > { %v1718_v5 = vmul.f32 0.0078125, %v1716_v4 }
 0x89f   : > { %v1719_v6 = vsub.f32 %v1712_v55, %v1718_v5  ;;  %v859_v55 = vld [vmem:[%s849_s5] sm:$0x1] }
 0x8a0   : > { %vm860_vm9 = vcmp.gt.f32.partialorder %v859_v55, 0.0 }
 0x8a1   : > { %v1720_v7 = vmul.f32 %v1719_v6, %v1719_v6  ;;  %v2053_v56 = vsel %vm860_vm9, 1, %v3935_v0 }
 0x8a2   : > { %v2057_v57 = vrot.slane %v2053_v56, %v4345_v31 }
 0x8a3   : > { %1721 = vadd.xlane.f32.xlu0 %v1720_v7 }
 0x8a4   : > { %vm4521_vm10 = vcmp.eq.s32.totalorder %v2057_v57, 1 }
 0x930   : > { %v1722_v20 = vpop.xlane.xlu0 %1721 }
 0x931   : > { %v1723_v21 = vmul.f32 0.0078125, %v1722_v20 }
 0x933   : > { %v1724_v22 = vadd.f32 1e-06, %v1723_v21 }
 0x935   : > { %3744 = vrsqrt.f32 %v1724_v22 }
 0x93f   : > { %v3745_v23 = vpop.eup %3744 }
 0x940   : > { %v1726_v26 = vmul.f32 %v3745_v23, %v1719_v6 }
 0x942   : > { %v1733_v28 = vmul.f32 %v3181_v25, %v1726_v26 }
 0x944   : > { %v4491_v30 = vadd.f32 %v3182_v27, %v1733_v28 }
 0x946   : > { %v1742_v32 = vpack.c.bf16 %v4491_v30, %v4491_v30 }
 0x948   : > { %3468 = vmatmul.mubr.bf16.vlgmr.msra.gmra.mrb[28].mxu1 %v1742_v32 }
 0x949   : > { %3473 = vmatprep.mubr.msk.bf16.mxu1 %vm3937_vm0, %v3936_v1  ;;  %3472 = vmatpush3.bf16.xpose.msra.mxu1 %v2010_v41 }
 0x94a   : > { %3477 = vmatprep.subr.bf16.mxu1 %v3936_v1 }
 0xa1b   : > { %v1848_v45 = vpop.f32.mrb[28].mxu1 }
 0xa1c   : > { %v1849_v47 = vadd.f32 %v3183_v44, %v1848_v45  ;;  %v3469_v48 = vpop.f32.mrb[29].mxu1 }
 0xa1d   : > { %v1851_v50 = vpop.f32.mrb[30].mxu1 }
 0xa1e   : > { %v2003_v51 = vpack.c.bf16 %v1849_v47, %v1849_v47  ;;  %v3470_v53 = vpop.f32.mrb[31].mxu1 }
 0xa20   : > { %3474 = vmatmul.mubr.msk.bf16.vlgmr.msra.gmra.mrb[32].mxu1 %vm1122_vm1, %v2003_v51 }
 0xa21   : > { %3478 = vmatpush3.bf16.msra.mxu1 %v2076_v54  ;;  %3479 = vmatprep.mubr.msk.bf16.mxu1 %vm3937_vm0, %v3936_v1 }
 0xa22   : > { %3483 = vmatprep.subr.bf16.mxu1 %v3936_v1 }
 0xaf3   : > { %v2046_v52 = vpop.f32.mrb[32].mxu1 }
 0xaf4   : > { %v2052_v59 = vmul.f32 0.17677669, %v2046_v52  ;;  %v3475_v60 = vpop.f32.mrb[33].mxu1 }
 0xaf5   : > { %v2049_v61 = vpop.f32.mrb[34].mxu1 }
 0xaf6   : > { %v3476_v24 = vpop.f32.mrb[35].mxu1  ;;  %v2059_v62 = vsel %vm4521_vm10, %v2052_v59, -1e+09 }
 0xaf7   : > { %v2060_v63 = vsel %vm1171_vm4, %v2059_v62, -inf }
 0xaf8   : > { %2061 = vmax.xlane.f32.xlu0 %v2060_v63 }
 0xb0e   : > { %2124 = vrot.lane.b32.xlu0 %v2004_v39, %s3938_s29 }
 0xb12   : > { %2243 = vrot.lane.b32.xlu0 %v2003_v51, %s3939_s27 }
 0xb16   : > { %2363 = vrot.lane.b32.xlu0 %v2003_v51, %s3940_s30 }
 0xb85   : > { %v2062_v2 = vpop.xlane.xlu0 %2061 }
 0xb86   : > { %v2063_v3 = vsub.f32 %v2059_v62, %v2062_v2 }
 0xb88   : > { %v2064_v4 = vmul.f32 1.442695, %v2063_v3 }
 0xb89   : > { %v2125_v10 = vpop.permute.xlu0 %2124 }
 0xb8a   : > { %3746 = vpow2.f32 %v2064_v4  ;;  %v2130_v15 = vsel %vm1122_vm1, %v2125_v10, 0 }
 0xb8d   : > { %v2244_v16 = vpop.permute.xlu0 %2243 }
 0xb91   : > { %v2364_v18 = vpop.permute.xlu0 %2363 }
 0xb94   : > { %v3747_v5 = vpop.eup %3746 }
 0xb95   : > { %v2066_v6 = vsel %vm1171_vm4, %v3747_v5, 0.0 }
 0xb96   : > { %2067 = vadd.xlane.f32.xlu1 %v2066_v6 }
 0xba7   : > { %2121 = vrot.lane.b32.xlu1 %v2003_v51, %s3938_s29 }
 0xbab   : > { %2245 = vrot.lane.b32.xlu1 %v2004_v39, %s3939_s27 }
 0xbaf   : > { %2365 = vrot.lane.b32.xlu1 %v2004_v39, %s3940_s30 }
 0xc23   : > { %v2068_v7 = vpop.xlane.xlu1 %2067 }
 0xc24   : > { %3748 = vrcp.f32 %v2068_v7 }
 0xc27   : > { %v2122_v8 = vpop.permute.xlu1 %2121 }
 0xc2b   : > { %v2246_v9 = vpop.permute.xlu1 %2245 }
 0xc2c   : > { %v2251_v49 = vsel %vm1122_vm1, %v2246_v9, 0 }
 0xc2d   : > { %3496 = vmatpush3.bf16.xpose.msra.mxu0 %v2251_v49 }
 0xc2e   : > { %v3749_v11 = vpop.eup %3748  ;;  %3507 = vmatprep.subr.bf16.mxu0 %v3936_v1 }
 0xc2f   : > { %v2070_v12 = vmul.f32 %v3749_v11, %v3747_v5  ;;  %v2366_v13 = vpop.permute.xlu1 %2365 }
 0xc30   : > { %v2371_v17 = vsel %vm1122_vm1, %v2366_v13, 0 }
 0xc31   : > { %v2071_v14 = vpack.c.bf16 %v2070_v12, %v2070_v12 }
 0xc33   : > { %3480 = vmatmul.mubr.msk.bf16.vlgmr.msra.gmra.mrb[36].mxu1 %vm1171_vm4, %v2071_v14 }
 0xc34   : > { %3484 = vmatpush3.bf16.xpose.msra.mxu1 %v2130_v15  ;;  %3498 = vmatmul.mubr.msk.bf16.vlgmr.msra.gmra.mrb[20].mxu0 %vm1122_vm1, %v2244_v16 }
 0xc35   : > { %3508 = vmatpush3.bf16.xpose.msra.mxu0 %v2371_v17  ;;  %3485 = vmatprep.mubr.msk.bf16.mxu1 %vm3937_vm0, %v3936_v1 }
 0xc36   : > { %3509 = vmatprep.mubr.msk.bf16.mxu0 %vm3937_vm0, %v3936_v1  ;;  %3489 = vmatprep.subr.bf16.mxu1 %v3936_v1 }
 0xc37   : > { %3519 = vmatprep.subr.bf16.mxu0 %v3936_v1 }
 0xc3b   : > { %3486 = vmatmul.mubr.msk.bf16.vlgmr.msra.gmra.mrb[40].mxu1 %vm1122_vm1, %v2122_v8 }
 0xc3c   : > { %3510 = vmatmul.mubr.msk.bf16.vlgmr.msra.gmra.mrb[24].mxu0 %vm1122_vm1, %v2364_v18  ;;  %3491 = vmatprep.mubr.msk.bf16.mxu1 %vm3937_vm0, %v3936_v1 }
 0xc3d   : > { %3535 = vmatprep.mubr.msk.bf16.mxu0 %vm3937_vm0, %v3936_v1 }
 0xd06   : > { %v2112_v19 = vpop.f32.mrb[36].mxu1 }
 0xd07   : > { %v2118_v20 = vpack.c.bf16 %v2112_v19, %v2112_v19  ;;  %v3481_v21 = vpop.f32.mrb[37].mxu1  ;;  %v2287_v22 = vpop.f32.mrb[20].mxu0  ;;  %v3680_v19 = vld [vmem:[#allocation7] sm:$0xff]  }
 0xd08   : > { %v2293_v23 = vmul.f32 0.17677669, %v2287_v22  ;;  %v2115_v25 = vpop.f32.mrb[38].mxu1  ;;  %v3499_v26 = vpop.f32.mrb[21].mxu0  ;;  %3520 = vmatpush3.bf16.msra.mxu0 %v3680_v19  ;;  %v3682_v21 = vld [vmem:[#allocation7 + $0x10] sm:$0xff]   ;;  %v3683_v22 = vld [vmem:[#allocation7 + $0x18] sm:$0xff]  }
 0xd09   : > { %2119 = vst.msk [vmem:[#allocation2] sm:$0xf] %vm1232_vm5, %v2118_v20  ;;  %v3482_v27 = vpop.f32.mrb[39].mxu1  ;;  %v2290_v28 = vpop.f32.mrb[22].mxu0  ;;  %v3681_v20 = vld [vmem:[#allocation7 + $0x8] sm:$0xff]   ;;  %3521 = vmatprep.subr.bf16.mxu0 %v3936_v1  ;;  %v3720_v19 = vld [vmem:[#allocation10 + $0x60] sm:$0xff]  }
 0xd0a   : > { %v3500_v32 = vpop.f32.mrb[23].mxu0  ;;  %v2294_v33 = vsel %vm4521_vm10, %v2293_v23, -1e+09  ;;  %v3684_v23 = vld [vmem:[#allocation7 + $0x20] sm:$0xff]  }
 0xd0b   : > { %v2295_v34 = vsel %vm1171_vm4, %v2294_v33, -inf }
 0xd0c   : > { %2296 = vmax.xlane.f32.xlu0 %v2295_v34  ;;  %3522 = vmatpush3.bf16.msra.mxu0 %v3681_v20  ;;  %v3721_v20 = vld [vmem:[#allocation10 + $0x20] sm:$0xff]  }
 0xd0d   : > { %3523 = vmatprep.subr.bf16.mxu0 %v3936_v1 }
 0xd0e   : > { %v2166_v35 = vpop.f32.mrb[40].mxu1 }
 0xd0f   : > { %v2172_v36 = vmul.f32 0.17677669, %v2166_v35  ;;  %v3487_v37 = vpop.f32.mrb[41].mxu1  ;;  %v2407_v38 = vpop.f32.mrb[24].mxu0  ;;  %v3687_v35 = vld [vmem:[#allocation7 + $0x38] sm:$0xff]  }
 0xd10   : > { %v2413_v39 = vmul.f32 0.17677669, %v2407_v38  ;;  %v2169_v40 = vpop.f32.mrb[42].mxu1  ;;  %v3511_v41 = vpop.f32.mrb[25].mxu0  ;;  %3524 = vmatpush3.bf16.msra.mxu0 %v3682_v21  ;;  %v3722_v21 = vld [vmem:[#allocation10 + $0x68] sm:$0xff]  }
 0xd11   : > { %v3488_v42 = vpop.f32.mrb[43].mxu1  ;;  %v2410_v43 = vpop.f32.mrb[26].mxu0  ;;  %v2173_v44 = vsel %vm4521_vm10, %v2172_v36, -1e+09  ;;  %3525 = vmatprep.subr.bf16.mxu0 %v3936_v1 }
 0xd12   : > { %v3512_v45 = vpop.f32.mrb[27].mxu0  ;;  %v2174_v47 = vsel %vm1171_vm4, %v2173_v44, -inf  ;;  %v2414_v48 = vsel %vm4521_vm10, %v2413_v39, -1e+09 }
 0xd13   : > { %2175 = vmax.xlane.f32.xlu1 %v2174_v47  ;;  %v2415_v50 = vsel %vm1171_vm4, %v2414_v48, -inf }
 0xd14   : > { %2416 = vmax.xlane.f32.xlu0 %v2415_v50  ;;  %3526 = vmatpush3.bf16.msra.mxu0 %v3683_v22  ;;  %v3219_v50 = vld [vmem:[%s4644_s15] ss:$0 sm:$0xff]  ;;  %v3723_v22 = vld [vmem:[#allocation10 + $0x28] sm:$0xff]  }
 0xd15   : > { %3527 = vmatprep.subr.bf16.mxu0 %v3936_v1 }
 0xd18   : > { %3528 = vmatpush3.bf16.msra.mxu0 %v3684_v23 }
 0xd19   : > { %3529 = vmatprep.subr.bf16.mxu0 %v3936_v1 }
 0xd99   : > { %v2297_v51 = vpop.xlane.xlu0 %2296 }
 0xd9a   : > { %v2298_v53 = vsub.f32 %v2294_v33, %v2297_v51  ;;  %v3686_v33 = vld [vmem:[#allocation7 + $0x30] sm:$0xff]  }
 0xd9c   : > { %v2299_v54 = vmul.f32 1.442695, %v2298_v53 }
 0xd9e   : > { %3750 = vpow2.f32 %v2299_v54 }
 0xda0   : > { %v2176_v55 = vpop.xlane.xlu1 %2175 }
 0xda1   : > { %v2177_v56 = vsub.f32 %v2173_v44, %v2176_v55  ;;  %v2417_v57 = vpop.xlane.xlu0 %2416 }
 0xda2   : > { %v2418_v52 = vsub.f32 %v2414_v48, %v2417_v57 }
 0xda3   : > { %v2178_v59 = vmul.f32 1.442695, %v2177_v56 }
 0xda4   : > { %v2419_v60 = vmul.f32 1.442695, %v2418_v52  ;;  %v3688_v52 = vld [vmem:[#allocation8] ss:$8 sps:$4 sm:$0xff]  }
 0xda6   : > { %3752 = vpow2.f32 %v2419_v60  ;;  %v3693_v60 = vld [vmem:[#allocation8 + $0x14] ss:$8 sps:$4 sm:$0xff]  }
 0xda7   : > { %3754 = vpow2.f32 %v2178_v59  ;;  %v3690_v59 = vld [vmem:[#allocation8 + $0x4] ss:$8 sps:$4 sm:$0xff]  }
 0xda8   : > { %v3751_v61 = vpop.eup %3750 }
 0xda9   : > { %v2301_v58 = vsel %vm1171_vm4, %v3751_v61, 0.0 }
 0xdaa   : > { %2302 = vadd.xlane.f32.xlu0 %v2301_v58  ;;  %v3696_v58 = vld [vmem:[#allocation8 + $0x24] ss:$8 sps:$4 sm:$0xff]  }
 0xdb0   : > { %v3753_v24 = vpop.eup %3752 }
 0xdb1   : > { %v2421_v62 = vsel %vm1171_vm4, %v3753_v24, 0.0  ;;  %v3755_v63 = vpop.eup %3754 }
 0xdb2   : > { %2422 = vadd.xlane.f32.xlu1 %v2421_v62  ;;  %v2180_v2 = vsel %vm1171_vm4, %v3755_v63, 0.0 }
 0xdb6   : > { %2181 = vadd.xlane.f32.xlu1 %v2180_v2 }
 0xdc0   : > { %2187 = vrot.lane.b32.xlu0 %v4507_v46, %s3938_s29 }
 0xdc7   : > { %2307 = vrot.lane.b32.xlu1 %v4507_v46, %s3939_s27 }
 0xdcb   : > { %2427 = vrot.lane.b32.xlu1 %v4507_v46, %s3940_s30 }
 0xe37   : > { %v2303_v3 = vpop.xlane.xlu0 %2302 }
 0xe3b   : > { %v2188_v4 = vpop.permute.xlu0 %2187 }
 0xe3c   : > { %v2193_v5 = vsel %vm1187_vm2, %v2188_v4, 0  ;;  %v3699_v4 = vld [vmem:[#allocation8 + $0x34] ss:$8 sps:$4 sm:$0xff]  }
 0xe3d   : > { %3490 = vmatpush3.bf16.msra.mxu1 %v2193_v5  ;;  %v3702_v5 = vld [vmem:[#allocation8 + $0x44] ss:$8 sps:$4 sm:$0xff]  }
 0xe3e   : > { %3501 = vmatprep.subr.bf16.mxu1 %v3936_v1 }
 0xe3f   : > { %v2423_v6 = vpop.xlane.xlu1 %2422 }
 0xe43   : > { %v2182_v7 = vpop.xlane.xlu1 %2181 }
 0xe44   : > { %3756 = vrcp.f32 %v2182_v7  ;;  %v3705_v7 = vld [vmem:[#allocation8 + $0x54] ss:$8 sps:$4 sm:$0xff]  }
 0xe45   : > { %3758 = vrcp.f32 %v2303_v3 }
 0xe46   : > { %3760 = vrcp.f32 %v2423_v6  ;;  %v3700_v6 = vld [vmem:[#allocation8 + $0x40] ss:$8 sps:$4 sm:$0xff]  }
 0xe47   : > { %v2308_v49 = vpop.permute.xlu1 %2307 }
 0xe48   : > { %v2313_v12 = vsel %vm1187_vm2, %v2308_v49, 0  ;;  %v3706_v49 = vld [vmem:[#allocation8 + $0x60] ss:$8 sps:$4 sm:$0xff]  }
 0xe4b   : > { %v2428_v13 = vpop.permute.xlu1 %2427 }
 0xe4c   : > { %v2433_v16 = vsel %vm1187_vm2, %v2428_v13, 0  ;;  %v3714_v13 = vld [vmem:[#allocation10 + $0x48] sm:$0xff]  }
 0xe4e   : > { %v3757_v8 = vpop.eup %3756 }
 0xe4f   : > { %v2184_v9 = vmul.f32 %v3757_v8, %v3755_v63  ;;  %v3759_v11 = vpop.eup %3758  ;;  %v3703_v8 = vld [vmem:[#allocation8 + $0x50] ss:$8 sps:$4 sm:$0xff]  }
 0xe50   : > { %v2305_v46 = vmul.f32 %v3759_v11, %v3751_v61  ;;  %v3761_v15 = vpop.eup %3760  ;;  %v3691_v61 = vld [vmem:[#allocation8 + $0x10] ss:$8 sps:$4 sm:$0xff]  }
 0xe51   : > { %v2185_v10 = vpack.c.bf16 %v2184_v9, %v2184_v9  ;;  %v2425_v17 = vmul.f32 %v3761_v15, %v3753_v24  ;;  %v3694_v24 = vld [vmem:[#allocation8 + $0x20] ss:$8 sps:$4 sm:$0xff]   ;;  %v3708_v9 = vld [vmem:[#allocation8 + $0x64] ss:$8 sps:$4 sm:$0xff]   ;;  %v3709_v11 = vld [vmem:[#allocation8 + $0x70] ss:$8 sps:$4 sm:$0xff]  }
 0xe52   : > { %v2306_v14 = vpack.c.bf16 %v2305_v46, %v2305_v46  ;;  %v3713_v46 = vld [vmem:[#allocation10] sm:$0xff]   ;;  %v3716_v15 = vld [vmem:[#allocation10 + $0x50] sm:$0xff]  }
 0xe53   : > { %3492 = vmatmul.mubr.msk.bf16.vlgmr.msra.gmra.mrb[44].mxu1 %vm1171_vm4, %v2185_v10  ;;  %v2426_v18 = vpack.c.bf16 %v2425_v17, %v2425_v17  ;;  %v3711_v10 = vld [vmem:[#allocation8 + $0x74] ss:$8 sps:$4 sm:$0xff]  }
 0xe54   : > { %3502 = vmatpush3.bf16.msra.mxu1 %v2313_v12  ;;  %3503 = vmatprep.mubr.msk.bf16.mxu1 %vm3937_vm0, %v3936_v1  ;;  %v3712_v12 = vld [vmem:[#allocation10 + $0x40] sm:$0xff]   ;;  %v3718_v17 = vld [vmem:[#allocation10 + $0x58] sm:$0xff]  }
 0xe55   : > { %3513 = vmatprep.subr.bf16.mxu1 %v3936_v1 }
 0xe5b   : > { %3504 = vmatmul.mubr.msk.bf16.vlgmr.msra.gmra.mrb[48].mxu1 %vm1171_vm4, %v2306_v14  ;;  %v3715_v14 = vld [vmem:[#allocation10 + $0x8] sm:$0xff]  }
 0xe5c   : > { %3514 = vmatpush3.bf16.msra.mxu1 %v2433_v16  ;;  %3515 = vmatprep.mubr.msk.bf16.mxu1 %vm3937_vm0, %v3936_v1  ;;  %v3717_v16 = vld [vmem:[#allocation10 + $0x10] sm:$0xff]  }
 0xe5d   : > { %2732 = vmatprep.subr.bf16.mxu1 %v3690_v59 }
 0xe63   : > { %3516 = vmatmul.mubr.msk.bf16.vlgmr.msra.gmra.mrb[52].mxu1 %vm1171_vm4, %v2426_v18  ;;  %v3719_v18 = vld [vmem:[#allocation10 + $0x18] sm:$0xff]  }
 0xe64   : > { %2764 = vmatprep.mubr.bf16.mxu1 %v3935_v0  ;;  %v3685_v0 = vld [vmem:[#allocation7 + $0x28] sm:$0xff]   ;;  %2733 = vmatpush1.bf16.msra.mxu1 %v3688_v52 }
 0xe65   : > { %3530 = vmatpush3.bf16.msra.mxu0 %v3685_v0  ;;  %2734 = vmatprep.subr.bf16.mxu1 %v3693_v60 }
 0xe66   : > { %3531 = vmatprep.subr.bf16.mxu0 %v3936_v1 }
 0xe68   : > { %2735 = vmatpush1.bf16.msra.mxu1 %v3691_v61 }
 0xe69   : > { %3532 = vmatpush3.bf16.msra.mxu0 %v3686_v33  ;;  %2736 = vmatprep.subr.bf16.mxu1 %v3696_v58 }
 0xe6a   : > { %3533 = vmatprep.subr.bf16.mxu0 %v3936_v1 }
 0xe6c   : > { %2737 = vmatpush1.bf16.msra.mxu1 %v3694_v24 }
 0xe6d   : > { %3534 = vmatpush3.bf16.msra.mxu0 %v3687_v35  ;;  %2738 = vmatprep.subr.bf16.mxu1 %v3699_v4 }
 0xe6e   : > { %3341 = vmatprep.subr.bf16.mxu0 %v3712_v12 }
 0xf26   : > { %v2229_v25 = vpop.f32.mrb[44].mxu1 }
 0xf27   : > { %v3270_v26 = vpack.c.bf16 %v2229_v25, %v2229_v25  ;;  %v3493_v27 = vpop.f32.mrb[45].mxu1 }
 0xf28   : > { %v2232_v28 = vpop.f32.mrb[46].mxu1  ;;  %v3228_v27 = vld [vmem:[%s4645_s16] ss:$0 sm:$0xff] }
 0xf29   : > { %2239 = vrot.lane.b32.xlu0 %v3270_v26, %s3940_s30  ;;  %v3494_v32 = vpop.f32.mrb[47].mxu1  ;;  %s4695_s30 = sld [smem:[#allocation26_spill]] }
 0xf2a   : > { %v3229_v32 = vld [vmem:[%s4646_s17] ss:$0 sm:$0xff] }
 0xf2e   : > { %v2349_v34 = vpop.f32.mrb[48].mxu1 }
 0xf2f   : > { %v3271_v36 = vpack.c.bf16 %v2349_v34, %v2349_v34  ;;  %v3505_v37 = vpop.f32.mrb[49].mxu1  ;;  %s853_s2 = scalar_lea.vmem %s4695_s30, %s4276_s1 }
 0xf30   : > { %v2352_v38 = vpop.f32.mrb[50].mxu1  ;;  %v3725_v37 = vld [vmem:[#allocation10 + $0x30] sm:$0xff]  }
 0xf31   : > { %2359 = vrot.lane.b32.xlu1 %v3271_v36, %s3939_s27  ;;  %v3506_v39 = vpop.f32.mrb[51].mxu1  ;;  %v3724_v36 = vld [vmem:[#allocation10 + $0x70] sm:$0xff]   ;;  %v3726_v38 = vld [vmem:[#allocation10 + $0x78] sm:$0xff]  }
 0xf32   : > { %v3727_v39 = vld [vmem:[#allocation10 + $0x38] sm:$0xff]  }
 0xf36   : > { %v2469_v40 = vpop.f32.mrb[52].mxu1 }
 0xf37   : > { %v3272_v41 = vpack.c.bf16 %v2469_v40, %v2469_v40  ;;  %v3517_v42 = vpop.f32.mrb[53].mxu1  ;;  %v2640_v40 = vld [vmem:[%s4648_s19] sm:$0x3] }
 0xf38   : > { %v2472_v43 = vpop.f32.mrb[54].mxu1  ;;  %v2649_v42 = vrot.slane %v2640_v40, %v4340_v29 }
 0xf39   : > { %2479 = vrot.lane.b32.xlu0 %v3272_v41, %s3938_s29  ;;  %v3518_v44 = vpop.f32.mrb[55].mxu1  ;;  %v2645_v41 = vrot.slane %v2640_v40, %v4345_v31 }
 0xf9b   : > { %v2240_v45 = vpop.permute.xlu0 %2239 }
 0xf9c   : > { %2242 = vst.msk [vmem:[#allocation2] sm:$0xf] %vm1356_vm6, %v2240_v45 }
 0xfa3   : > { %v2360_v47 = vpop.permute.xlu1 %2359 }
 0xfa4   : > { %2362 = vst.msk [vmem:[#allocation2] sm:$0xf] %vm1477_vm7, %v2360_v47 }
 0xfab   : > { %v2480_v48 = vpop.permute.xlu0 %2479 }
 0xfac   : > { %2482 = vst.msk [vmem:[#allocation2] sm:$0xf] %vm1598_vm8, %v2480_v48 }
 0xfb3   : > { %v2483_v1 = vld [vmem:[#allocation2] sm:$0xf] }
 0xfb4   : > { %3536 = vmatmul.mubr.bf16.vlgmr.msra.gmra.mrb[28].mxu0 %v2483_v1 }
 0xfb5   : > { %3342 = vmatpush3.bf16.msra.mxu0 %v3713_v46 }
 0xfb6   : > { %3343 = vmatprep.subr.bf16.mxu0 %v3714_v13 }
 0xfb9   : > { %3344 = vmatpush3.bf16.msra.mxu0 %v3715_v14 }
 0xfba   : > { %3345 = vmatprep.subr.bf16.mxu0 %v3716_v15 }
 0xfbd   : > { %3346 = vmatpush3.bf16.msra.mxu0 %v3717_v16 }
 0xfbe   : > { %3347 = vmatprep.subr.bf16.mxu0 %v3718_v17 }
 0xfc1   : > { %3348 = vmatpush3.bf16.msra.mxu0 %v3719_v18 }
 0xfc2   : > { %3349 = vmatprep.subr.bf16.mxu0 %v3720_v19 }
 0xfc5   : > { %3350 = vmatpush3.bf16.msra.mxu0 %v3721_v20 }
 0xfc6   : > { %3351 = vmatprep.subr.bf16.mxu0 %v3722_v21 }
 0xfc9   : > { %3352 = vmatpush3.bf16.msra.mxu0 %v3723_v22 }
 0xfca   : > { %3353 = vmatprep.subr.bf16.mxu0 %v3724_v36 }
 0xfcd   : > { %3354 = vmatpush3.bf16.msra.mxu0 %v3725_v37 }
 0xfce   : > { %3355 = vmatprep.subr.bf16.mxu0 %v3726_v38 }
 0xfd1   : > { %3356 = vmatpush3.bf16.msra.mxu0 %v3727_v39 }
0x1087   : > { %v2589_v51 = vpop.f32.mrb[28].mxu0 }
0x1088   : > { %v2590_v53 = vadd.f32 %v3219_v50, %v2589_v51  ;;  %v3537_v54 = vpop.f32.mrb[29].mxu0 }
0x1089   : > { %v2592_v55 = vpop.f32.mrb[30].mxu0 }
0x108a   : > { %v3538_v56 = vpop.f32.mrb[31].mxu0  ;;  %v2595_v57 = vadd.f32 %v2590_v53, %v4491_v30  ;;  %v3697_v30 = vld [vmem:[#allocation8 + $0x30] ss:$8 sps:$4 sm:$0xff]  }
0x108b   : > { %2739 = vmatpush1.bf16.msra.mxu1 %v3697_v30  ;;  %v3246_v56 = vld [vmem:[%s4650_s21] ss:$0 sm:$0xff] }
0x108c   : > { %2598 = vadd.xlane.f32.xlu1 %v2595_v57  ;;  %2740 = vmatprep.subr.bf16.mxu1 %v3702_v5  ;;  %v3263_v30 = vld [vmem:[%s4693_s25] ss:$0 sm:$0xff] }
0x108f   : > { %2741 = vmatpush1.bf16.msra.mxu1 %v3700_v6  ;;  %v3264_v6 = vld [vmem:[%s4694_s28] ss:$0 sm:$0xff] }
0x1090   : > { %2742 = vmatprep.subr.bf16.mxu1 %v3705_v7 }
0x1093   : > { %2743 = vmatpush1.bf16.msra.mxu1 %v3703_v8 }
0x1094   : > { %2744 = vmatprep.subr.bf16.mxu1 %v3708_v9 }
0x1097   : > { %2745 = vmatpush1.bf16.msra.mxu1 %v3706_v49 }
0x1098   : > { %2746 = vmatprep.subr.bf16.mxu1 %v3711_v10 }
0x109b   : > { %2747 = vmatpush1.bf16.msra.mxu1 %v3709_v11 }
0x1119   : > { %v2599_v62 = vpop.xlane.xlu1 %2598 }
0x111a   : > { %v2600_v63 = vmul.f32 0.0078125, %v2599_v62 }
0x111c   : > { %v2601_v2 = vsub.f32 %v2595_v57, %v2600_v63 }
0x111e   : > { %v2602_v3 = vmul.f32 %v2601_v2, %v2601_v2 }
0x1120   : > { %2603 = vadd.xlane.f32.xlu0 %v2602_v3 }
0x11ad   : > { %v2604_v23 = vpop.xlane.xlu0 %2603 }
0x11ae   : > { %v2605_v25 = vmul.f32 0.0078125, %v2604_v23 }
0x11b0   : > { %v2606_v0 = vadd.f32 1e-05, %v2605_v25 }
0x11b2   : > { %3762 = vrsqrt.f32 %v2606_v0 }
0x11bc   : > { %v3763_v26 = vpop.eup %3762 }
0x11bd   : > { %v2608_v28 = vmul.f32 %v3763_v26, %v2601_v2 }
0x11bf   : > { %v2615_v33 = vmul.f32 %v3228_v27, %v2608_v28 }
0x11c1   : > { %v2622_v34 = vadd.f32 %v3229_v32, %v2615_v33 }
0x11c3   : > { %v2623_v35 = vpack.c.bf16 %v2622_v34, %v2622_v34 }
0x11c5   : > { %2765 = vmatmul.mubr.bf16.vlgmr.msra.gmra.mrb[56].mxu1 %v2623_v35 }
0x1298   : > { %v2766_v43 = vpop.f32.mrb[56].mxu1 }
0x1299   : > { %v2767_v44 = vadd.f32 %v2766_v43, %v2645_v41  ;;  %v2768_v45 = vpop.f32.mrb[57].mxu1 }
0x129a   : > { %v2769_v47 = vadd.f32 %v2768_v45, %v2649_v42  ;;  %v2770_v48 = vpop.f32.mrb[58].mxu1 }
0x129b   : > { %v2773_v1 = vmax.f32 %v2767_v44, 0.0  ;;  %v2771_v50 = vpop.f32.mrb[59].mxu1 }
0x129c   : > { %v2774_v51 = vmax.f32 %v2769_v47, 0.0 }
0x129d   : > { %v2775_v54 = vpack.c.bf16 %v2773_v1, %v2773_v1 }
0x129e   : > { %v2776_v53 = vpack.c.bf16 %v2774_v51, %v2774_v51 }
0x12a0   : > { %2944 = vmatprep.mubr.bf16.mxu0 %v2776_v53 }
0x12a1   : > { %2945 = vmatmul.mubr.bf16.vlgmr.msra.gmra.mrb[32].mxu0 %v2775_v54 }
0x1374   : > { %v3357_v55 = vpop.f32.mrb[32].mxu0 }
0x1375   : > { %v3358_v31 = vpop.f32.mrb[33].mxu0 }
0x1376   : > { %v3359_v57 = vadd.f32 %v3358_v31, %v3357_v55  ;;  %v3360_v29 = vpop.f32.mrb[34].mxu0 }
0x1377   : > { %v3361_v52 = vpop.f32.mrb[35].mxu0 }
0x1378   : > { %v2947_v59 = vadd.f32 %v3359_v57, %v3246_v56 }
0x137a   : > { %v2952_v60 = vadd.f32 %v2947_v59, %v2622_v34 }
0x137c   : > { %2955 = vadd.xlane.f32.xlu0 %v2952_v60 }
0x1409   : > { %v2956_v61 = vpop.xlane.xlu0 %2955 }
0x140a   : > { %v2957_v58 = vmul.f32 0.0078125, %v2956_v61 }
0x140c   : > { %v2958_v24 = vsub.f32 %v2952_v60, %v2957_v58 }
0x140e   : > { %v2959_v62 = vmul.f32 %v2958_v24, %v2958_v24 }
0x1410   : > { %2960 = vadd.xlane.f32.xlu1 %v2959_v62 }
0x149d   : > { %v2961_v63 = vpop.xlane.xlu1 %2960 }
0x149e   : > { %v2962_v2 = vmul.f32 0.0078125, %v2961_v63 }
0x14a0   : > { %v2963_v3 = vadd.f32 1e-05, %v2962_v2 }
0x14a2   : > { %3764 = vrsqrt.f32 %v2963_v3 }
0x14ac   : > { %v3765_v4 = vpop.eup %3764 }
0x14ad   : > { %v2965_v5 = vmul.f32 %v3765_v4, %v2958_v24 }
0x14af   : > { %v2972_v7 = vmul.f32 %v3263_v30, %v2965_v5 }
0x14b1   : > { %v2979_v8 = vadd.f32 %v3264_v6, %v2972_v7 }
0x14b3   : > { %v2980_v9 = vpack.c.bf16 %v2979_v8, %v2979_v8 }
0x14b5   : > { %2981 = vst [vmem:[%s853_s2] sm:$0xf] %v2980_v9 }
0x14b6 PF: > { %s4696_s7 = sld [smem:[#allocation14_spill]] }
0x14bc   : > { %s37_s5 = sadd.s32 1, %s4696_s7  }
0x14bd   : > { %p34_p6 = scmp.ge.s32.totalorder %s37_s5, 4  }
0x14bf   :  { %36 = sbr.rel (!%p34_p6) target bundleno = 16 (0x10), region = 176 }
0x14c6   :  { %3001 = vsyncpa [#allocation4], 1 }
0x14c7   :  { %3003 = vsyncpa [#allocation4 + $0x1], 1 }
0x14c8   :  { %3004 = vsyncpa [#allocation6], 1 }
0x14c9   :  { %3005 = vsyncpa [#allocation9], 1 }

// kernel: decoder_forward.4
= control target key start
LH: loop header
LB: loop body
LE: loop exit
PB: predicated region body
PF: predicated region fallthrough
CT: control target
= control target key end

     0   :  { %s4308_s0 = inlined_call_operand.vmem [shape: bf16[2,8,128], index: 0, kind: input, shape index: {}]   ;;  %s4309_s1 = inlined_call_operand.vmem [shape: bf16[2,8,128], index: 1, kind: input, shape index: {}]   ;;  %s4310_s2 = inlined_call_operand.vmem [shape: f32[2,1,8,8], index: 2, kind: input, shape index: {}]   ;;  %s4311_s3 = inlined_call_operand.vmem [shape: f32[2,1,1,8], index: 3, kind: input, shape index: {}]   ;;  %s4312_s4 = inlined_call_operand.vmem [shape: bf16[128,384], index: 4, kind: input, shape index: {}]   ;;  %s4313_s5 = inlined_call_operand.vmem [shape: f32[1,384], index: 5, kind: input, shape index: {}]   ;;  %s4314_s6 = inlined_call_operand.vmem [shape: bf16[128,128], index: 6, kind: input, shape index: {}]   ;;  %s4315_s7 = inlined_call_operand.vmem [shape: f32[1,128], index: 7, kind: input, shape index: {}]   ;;  %s4316_s8 = inlined_call_operand.vmem [shape: f32[1,128], index: 8, kind: input, shape index: {}]   ;;  %s4317_s9 = inlined_call_operand.vmem [shape: f32[1,128], index: 9, kind: input, shape index: {}]   ;;  %s4318_s10 = inlined_call_operand.vmem [shape: bf16[128,128], index: 10, kind: input, shape index: {}]   ;;  %s4319_s11 = inlined_call_operand.vmem [shape: f32[1,128], index: 11, kind: input, shape index: {}]   ;;  %s4320_s12 = inlined_call_operand.vmem [shape: bf16[128,256], index: 12, kind: input, shape index: {}]   ;;  %s4321_s13 = inlined_call_operand.vmem [shape: f32[1,256], index: 13, kind: input, shape index: {}]   ;;  %s4322_s14 = inlined_call_operand.vmem [shape: bf16[128,128], index: 14, kind: input, shape index: {}]   ;;  %s4323_s15 = inlined_call_operand.vmem [shape: f32[1,128], index: 15, kind: input, shape index: {}]   ;;  %s4324_s16 = inlined_call_operand.vmem [shape: f32[1,128], index: 16, kind: input, shape index: {}]   ;;  %s4325_s17 = inlined_call_operand.vmem [shape: f32[1,128], index: 17, kind: input, shape index: {}]   ;;  %s4326_s18 = inlined_call_operand.vmem [shape: bf16[128,256], index: 18, kind: input, shape index: {}]   ;;  %s4327_s19 = inlined_call_operand.vmem [shape: f32[1,256], index: 19, kind: input, shape index: {}]   ;;  %s4328_s20 = inlined_call_operand.vmem [shape: bf16[256,128], index: 20, kind: input, shape index: {}]   ;;  %s4329_s21 = inlined_call_operand.vmem [shape: f32[1,128], index: 21, kind: input, shape index: {}]   ;;  %s4330_s22 = inlined_call_operand.vmem [shape: f32[1,128], index: 22, kind: input, shape index: {}]   ;;  %s4331_s23 = inlined_call_operand.vmem [shape: f32[1,128], index: 23, kind: input, shape index: {}]   ;;  %s4332_s24 = inlined_call_operand.vmem [shape: bf16[2,8,128], index: 24, kind: output, shape index: {}]  }
   0x1   :  { %4342 = sst [smem:[#allocation3_spill]] %s4308_s0 }
   0x2   :  { %4343 = sst [smem:[#allocation4_spill]] %s4309_s1 }
   0x3   :  { %4344 = sst [smem:[#allocation5_spill]] %s4310_s2 }
   0x4   :  { %4345 = sst [smem:[#allocation6_spill]] %s4311_s3 }
   0x5   :  { %4346 = sst [smem:[#allocation7_spill]] %s4312_s4 }
   0x6   :  { %4347 = sst [smem:[#allocation8_spill]] %s4313_s5  ;;  %s3717_s5 = smov 0  }
   0x7   :  { %4348 = sst [smem:[#allocation9_spill]] %s4314_s6 }
   0x8   :  { %4349 = sst [smem:[#allocation10_spill]] %s4315_s7 }
   0x9   :  { %4350 = sst [smem:[#allocation11_spill]] %s4316_s8 }
   0xa LB: > { %s2995_s26 = sadd.s32 4294967295, %s3584_s5   ;;  %p2999_p0 = scmp.ge.s32.totalorder %s3584_s5, 1  ;;  %s3584_s5 = sphi %s3717_s5, %s34_s5  }
   0xb   : > { %p687_p1 = scmp.lt.s32.totalorder %s3584_s5, 3 }
   0xd   : > { %p688_p2 = pnand %p2999_p0, %p687_p1 }
   0xe   : > { %s4351_s6 = sld [smem:[#allocation7_spill]] (!%p688_p2)  ;;  %v3586_v2 = vmov (!%p688_p2), 0   ;;  %v3587_v4 = vmov (!%p688_p2), 0.0   ;;  %p762_p3 = scmp.lt.s32.totalorder (!%p688_p2), %s2995_s26, 1  ;;  %vm3588_vm0 = vmmov (!%p688_p2), 0   ;;  %v822_v27 = vlaneseq (!%p688_p2) }
   0xf   : > { %691 = sbr.rel (%p688_p2) target bundleno = 5164 (0x142c), region = 116  ;;  %997 = vmatprep.mubr.bf16.mxu0 (!%p688_p2), %v3586_v2  ;;  %3230 = vmatprep.subr.bf16.mxu1 (!%p688_p2), %v3587_v4  ;;  %s4352_s1 = sld [smem:[#allocation3_spill]] (!%p688_p2)  ;;  %vm1049_vm1 = vcmask (!%p688_p2), 261120   ;;  %vm1114_vm2 = vcmask (!%p688_p2), 1043456   ;;  %vm1098_vm4 = vcmask (!%p688_p2), 64512   ;;  %vm1159_vm5 = vcmask (!%p688_p2), 257024  }
  0x10   : > { %3246 = vmatprep.mubr.msk.bf16.mxu1 (!%p688_p2), %vm3588_vm0, %v3587_v4  ;;  %v823_v28 = vshrl.u32 (!%p688_p2), %v822_v27, 7  ;;  %s4353_s8 = sld [smem:[#allocation8_spill]] (!%p688_p2)  ;;  %s4337_s28 = smov (!%p688_p2), 32   ;;  %vm1283_vm6 = vcmask (!%p688_p2), 519424   ;;  %vm1404_vm7 = vcmask (!%p688_p2), 781824   ;;  %vm1525_vm8 = vcmask (!%p688_p2), 1044224  }
  0x11   : > { %s4354_s7 = sld [smem:[#allocation5_spill]] (!%p688_p2)  ;;  %s4356_s3 = smov (!%p688_p2), 96  }
  0x12   : > { %v3827_v29 = vsub.s32 (!%p688_p2), 1, %v823_v28  ;;  %v3832_v31 = vsub.s32 (!%p688_p2), 0, %v823_v28  ;;  %v832_v43 = vsub.s32 (!%p688_p2), 2, %v823_v28  ;;  %s4357_s29 = sld [smem:[#allocation10_spill]] (!%p688_p2)  ;;  %s4364_s25 = smov (!%p688_p2), 32  }
  0x14   : > { %v3420_v0 = vld [vmem:[%s4351_s6 + $0x4] ss:$12 sps:$4 sm:$0xff] (!%p688_p2)   ;;  %v3422_v1 = vld [vmem:[%s4351_s6] ss:$12 sps:$4 sm:$0xff] (!%p688_p2)   ;;  %v3423_v3 = vld [vmem:[%s4351_s6 + $0x1c] ss:$12 sps:$4 sm:$0xff] (!%p688_p2)  }
  0x15   : > { %965 = vmatprep.subr.bf16.mxu0 (!%p688_p2), %v3420_v0  ;;  %v3425_v5 = vld [vmem:[%s4351_s6 + $0x18] ss:$12 sps:$4 sm:$0xff] (!%p688_p2)   ;;  %v3426_v6 = vld [vmem:[%s4351_s6 + $0x34] ss:$12 sps:$4 sm:$0xff] (!%p688_p2)   ;;  %v3428_v7 = vld [vmem:[%s4351_s6 + $0x30] ss:$12 sps:$4 sm:$0xff] (!%p688_p2)  }
  0x16   : > { %966 = vmatpush1.bf16.msra.mxu0 %v3422_v1  ;;  %v3429_v8 = vld [vmem:[%s4351_s6 + $0x4c] ss:$12 sps:$4 sm:$0xff]   ;;  %v3431_v9 = vld [vmem:[%s4351_s6 + $0x48] ss:$12 sps:$4 sm:$0xff]   ;;  %s4366_s26 = smov (!%p762_p3, %s2995_s26), 1 }
  0x17   : > { %967 = vmatprep.subr.bf16.mxu0 %v3423_v3  ;;  %v3444_v10 = vld [vmem:[%s4351_s6 + $0x8] ss:$12 sps:$4 sm:$0xff]   ;;  %v3432_v11 = vld [vmem:[%s4351_s6 + $0x64] ss:$12 sps:$4 sm:$0xff]   ;;  %v3445_v12 = vld [vmem:[%s4351_s6 + $0x20] ss:$12 sps:$4 sm:$0xff]  }
  0x18   : > { %3231 = vmatpush3.bf16.msra.mxu1 %v3444_v10  ;;  %s3763_s4 = sshll.u32 %s4366_s26, 2  ;;  %v3434_v13 = vld [vmem:[%s4351_s6 + $0x60] ss:$12 sps:$4 sm:$0xff]   ;;  %v3435_v14 = vld [vmem:[%s4351_s6 + $0x7c] ss:$12 sps:$4 sm:$0xff]   ;;  %s3002_s2 = sshll.u32 %s4366_s26, 3 }
  0x19   : > { %3232 = vmatprep.subr.bf16.mxu1 %v3587_v4  ;;  %v3437_v15 = vld [vmem:[%s4351_s6 + $0x78] ss:$12 sps:$4 sm:$0xff]   ;;  %v3438_v17 = vld [vmem:[%s4351_s6 + $0x94] ss:$12 sps:$4 sm:$0xff]   ;;  %v3447_v18 = vld [vmem:[%s4351_s6 + $0x50] ss:$12 sps:$4 sm:$0xff]   ;;  %s765_s27 = scalar_lea.vmem %s4352_s1, %s3763_s4  ;;  %s773_s30 = scalar_lea.vmem %s4354_s7, %s3002_s2 }
  0x1a   : > { %968 = vmatpush1.bf16.msra.mxu0 %v3425_v5  ;;  %v3446_v16 = vld [vmem:[%s4351_s6 + $0x38] ss:$12 sps:$4 sm:$0xff]   ;;  %v3440_v19 = vld [vmem:[%s4351_s6 + $0x90] ss:$12 sps:$4 sm:$0xff]   ;;  %v3448_v21 = vld [vmem:[%s4351_s6 + $0x68] ss:$12 sps:$4 sm:$0xff]  }
  0x1b   : > { %969 = vmatprep.subr.bf16.mxu0 %v3426_v6  ;;  %v3441_v20 = vld [vmem:[%s4351_s6 + $0xac] ss:$12 sps:$4 sm:$0xff]   ;;  %v3443_v22 = vld [vmem:[%s4351_s6 + $0xa8] ss:$12 sps:$4 sm:$0xff]   ;;  %v3806_v24 = vld [vmem:[%s765_s27] sm:$0xf] }
  0x1c   : > { %3233 = vmatpush3.bf16.msra.mxu1 %v3445_v12  ;;  %v3449_v23 = vld [vmem:[%s4351_s6 + $0x80] ss:$12 sps:$4 sm:$0xff]   ;;  %v3450_v25 = vld [vmem:[%s4351_s6 + $0x98] ss:$12 sps:$4 sm:$0xff]   ;;  %v3451_v26 = vld [vmem:[%s4351_s6 + $0xb0] ss:$12 sps:$4 sm:$0xff]  }
  0x1d   : > { %3234 = vmatprep.subr.bf16.mxu1 %v3587_v4  ;;  %v820_v30 = vld [vmem:[%s4353_s8] sm:$0x7]  ;;  %s4335_s1 = smov 96   ;;  %s4339_s27 = smov 64  }
  0x1e   : > { %970 = vmatpush1.bf16.msra.mxu0 %v3428_v7  ;;  %v829_v32 = vrot.slane %v820_v30, %v3827_v29  ;;  %v825_v33 = vrot.slane %v820_v30, %v3832_v31  ;;  %v833_v44 = vrot.slane %v820_v30, %v832_v43  ;;  %v3855_v52 = vld [vmem:[%s773_s30] sm:$0xff]  ;;  %s4355_s8 = sld [smem:[#allocation9_spill]]  ;;  %s4358_s6 = sld [smem:[#allocation4_spill]] }
  0x1f   : > { %971 = vmatprep.subr.bf16.mxu0 %v3429_v8  ;;  %vm785_vm3 = vcmp.gt.f32.partialorder %v3855_v52, 0.0  ;;  %s4360_s30 = sld [smem:[#allocation6_spill]] }
  0x20   : > { %3235 = vmatpush3.bf16.msra.mxu1 %v3446_v16 }
  0x21   : > { %3236 = vmatprep.subr.bf16.mxu1 %v3587_v4 }
  0x22   : > { %972 = vmatpush1.bf16.msra.mxu0 %v3431_v9 }
  0x23   : > { %973 = vmatprep.subr.bf16.mxu0 %v3432_v11 }
  0x24   : > { %3237 = vmatpush3.bf16.msra.mxu1 %v3447_v18 }
  0x25   : > { %3238 = vmatprep.subr.bf16.mxu1 %v3587_v4 }
  0x26   : > { %974 = vmatpush1.bf16.msra.mxu0 %v3434_v13 }
  0x27   : > { %975 = vmatprep.subr.bf16.mxu0 %v3435_v14 }
  0x28   : > { %3239 = vmatpush3.bf16.msra.mxu1 %v3448_v21 }
  0x29   : > { %3240 = vmatprep.subr.bf16.mxu1 %v3587_v4 }
  0x2a   : > { %976 = vmatpush1.bf16.msra.mxu0 %v3437_v15 }
  0x2b   : > { %977 = vmatprep.subr.bf16.mxu0 %v3438_v17 }
  0x2c   : > { %3241 = vmatpush3.bf16.msra.mxu1 %v3449_v23 }
  0x2d   : > { %3242 = vmatprep.subr.bf16.mxu1 %v3587_v4 }
  0x2e   : > { %978 = vmatpush1.bf16.msra.mxu0 %v3440_v19 }
  0x2f   : > { %979 = vmatprep.subr.bf16.mxu0 %v3441_v20 }
  0x30   : > { %3243 = vmatpush3.bf16.msra.mxu1 %v3450_v25 }
  0x31   : > { %3244 = vmatprep.subr.bf16.mxu1 %v3587_v4 }
  0x32   : > { %980 = vmatpush1.bf16.msra.mxu0 %v3443_v22 }
  0x33   : > { %3274 = vmatprep.subr.bf16.mxu0 %v3587_v4 }
  0x34   : > { %3245 = vmatpush3.bf16.msra.mxu1 %v3451_v26 }
  0x35   : > { %998 = vmatmul.mubr.bf16.vlgmr.msra.gmra.mrb[0].mxu0 %v3806_v24  ;;  %3250 = vmatprep.subr.bf16.mxu1 %v3587_v4 }
  0x36   : > { %3276 = vmatprep.mubr.msk.bf16.mxu0 %vm3588_vm0, %v3587_v4 }
  0x37   : > { %3247 = vmatmul.mubr.bf16.vlgmr.msra.gmra.mrb[0].mxu1 %v3806_v24 }
  0x38   : > { %3252 = vmatprep.mubr.msk.bf16.mxu1 %vm3588_vm0, %v3587_v4 }
 0x108   : > { %v999_v34 = vpop.f32.mrb[0].mxu0 }
 0x109   : > { %v1001_v35 = vpop.f32.mrb[1].mxu0  ;;  %v1000_v39 = vadd.f32 %v999_v34, %v825_v33 }
 0x10a   : > { %v1002_v36 = vadd.f32 %v1001_v35, %v829_v32  ;;  %v1003_v37 = vpop.f32.mrb[2].mxu0  ;;  %v1040_v45 = vpop.f32.mrb[0].mxu1 }
 0x10b   : > { %v1004_v38 = vpop.f32.mrb[3].mxu0  ;;  %v1046_v42 = vpack.c.bf16 %v1000_v39, %v1000_v39  ;;  %v1041_v46 = vadd.f32 %v1040_v45, %v833_v44  ;;  %v3248_v47 = vpop.f32.mrb[1].mxu1 }
 0x10c   : > { %v1047_v40 = vpack.c.bf16 %v1002_v36, %v1002_v36  ;;  %v1043_v48 = vpop.f32.mrb[2].mxu1 }
 0x10d   : > { %v3846_v49 = vpack.c.bf16 %v1041_v46, %v1041_v46  ;;  %v3249_v50 = vpop.f32.mrb[3].mxu1 }
 0x10e   : > { %1165 = vrot.lane.b32.xlu1 %v1047_v40, %s4335_s1  ;;  %v1054_v41 = vsel %vm1049_vm1, %v1047_v40, 0 }
 0x10f   : > { %3251 = vmatpush3.bf16.xpose.msra.mxu1 %v1054_v41  ;;  %v1116_v51 = vsel %vm1114_vm2, %v3846_v49, 0 }
 0x110   : > { %3256 = vmatprep.subr.bf16.mxu1 %v3587_v4 }
 0x112   : > { %1162 = vrot.lane.b32.xlu1 %v1046_v42, %s4335_s1 }
 0x116   : > { %1285 = vrot.lane.b32.xlu1 %v1046_v42, %s4339_s27  ;;  %3253 = vmatmul.mubr.msk.bf16.vlgmr.msra.gmra.mrb[4].mxu1 %vm1049_vm1, %v1046_v42 }
 0x117   : > { %3258 = vmatprep.mubr.msk.bf16.mxu1 %vm3588_vm0, %v3587_v4  ;;  %3257 = vmatpush3.bf16.msra.mxu1 %v1116_v51 }
 0x118   : > { %3262 = vmatprep.subr.bf16.mxu1 %v3587_v4 }
 0x11a   : > { %1408 = vrot.lane.b32.xlu1 %v1047_v40, %s4337_s28 }
 0x11e   : > { %1406 = vrot.lane.b32.xlu1 %v1046_v42, %s4337_s28 }
 0x180   : > { %v1166_v1 = vpop.permute.xlu1 %1165 }
 0x181   : > { %v1171_v14 = vsel %vm1049_vm1, %v1166_v1, 0 }
 0x184   : > { %v1163_v3 = vpop.permute.xlu1 %1162 }
 0x188   : > { %v1286_v6 = vpop.permute.xlu1 %1285 }
 0x18c   : > { %v1409_v9 = vpop.permute.xlu1 %1408 }
 0x18d   : > { %v1414_v12 = vsel %vm1049_vm1, %v1409_v9, 0 }
 0x190   : > { %v1407_v15 = vpop.permute.xlu1 %1406 }
 0x1e9   : > { %v1090_v53 = vpop.f32.mrb[4].mxu1 }
 0x1ea   : > { %v1096_v54 = vmul.f32 0.17677669, %v1090_v53  ;;  %v3254_v55 = vpop.f32.mrb[5].mxu1 }
 0x1eb   : > { %v1093_v56 = vpop.f32.mrb[6].mxu1 }
 0x1ec   : > { %v3255_v57 = vpop.f32.mrb[7].mxu1  ;;  %v1097_v58 = vsel %vm785_vm3, %v1096_v54, -1e+09 }
 0x1ed   : > { %v1099_v59 = vsel %vm1098_vm4, %v1097_v58, -inf }
 0x1ee   : > { %1100 = vmax.xlane.f32.xlu0 %v1099_v59 }
 0x27b   : > { %v1101_v60 = vpop.xlane.xlu0 %1100 }
 0x27c   : > { %v1102_v61 = vsub.f32 %v1097_v58, %v1101_v60 }
 0x27e   : > { %v1103_v62 = vmul.f32 1.442695, %v1102_v61 }
 0x280   : > { %3540 = vpow2.f32 %v1103_v62 }
 0x28a   : > { %v3541_v63 = vpop.eup %3540 }
 0x28b   : > { %v1105_v0 = vsel %vm1098_vm4, %v3541_v63, 0.0 }
 0x28c   : > { %1106 = vadd.xlane.f32.xlu0 %v1105_v0 }
 0x2a2   : > { %1287 = vrot.lane.b32.xlu0 %v1047_v40, %s4339_s27 }
 0x319   : > { %v1107_v5 = vpop.xlane.xlu0 %1106 }
 0x31a   : > { %3542 = vrcp.f32 %v1107_v5 }
 0x31d   : > { %v1288_v7 = vpop.permute.xlu0 %1287 }
 0x31e   : > { %v1293_v8 = vsel %vm1049_vm1, %v1288_v7, 0 }
 0x31f   : > { %3275 = vmatpush3.bf16.xpose.msra.mxu0 %v1293_v8 }
 0x320   : > { %3286 = vmatprep.subr.bf16.mxu0 %v3587_v4 }
 0x324   : > { %v3543_v10 = vpop.eup %3542 }
 0x325   : > { %v1109_v11 = vmul.f32 %v3543_v10, %v3541_v63 }
 0x326   : > { %3277 = vmatmul.mubr.msk.bf16.vlgmr.msra.gmra.mrb[4].mxu0 %vm1049_vm1, %v1286_v6 }
 0x327   : > { %3287 = vmatpush3.bf16.xpose.msra.mxu0 %v1414_v12  ;;  %v1110_v13 = vpack.c.bf16 %v1109_v11, %v1109_v11  ;;  %3288 = vmatprep.mubr.msk.bf16.mxu0 %vm3588_vm0, %v3587_v4 }
 0x328   : > { %3298 = vmatprep.subr.bf16.mxu0 %v3587_v4 }
 0x329   : > { %3259 = vmatmul.mubr.msk.bf16.vlgmr.msra.gmra.mrb[8].mxu1 %vm1098_vm4, %v1110_v13 }
 0x32a   : > { %3263 = vmatpush3.bf16.xpose.msra.mxu1 %v1171_v14  ;;  %3264 = vmatprep.mubr.msk.bf16.mxu1 %vm3588_vm0, %v3587_v4 }
 0x32b   : > { %3268 = vmatprep.subr.bf16.mxu1 %v3587_v4 }
 0x32e   : > { %3289 = vmatmul.mubr.msk.bf16.vlgmr.msra.gmra.mrb[8].mxu0 %vm1049_vm1, %v1407_v15 }
 0x32f   : > { %3314 = vmatprep.mubr.msk.bf16.mxu0 %vm3588_vm0, %v3587_v4 }
 0x331   : > { %3265 = vmatmul.mubr.msk.bf16.vlgmr.msra.gmra.mrb[12].mxu1 %vm1049_vm1, %v1163_v3 }
 0x332   : > { %3270 = vmatprep.mubr.msk.bf16.mxu1 %vm3588_vm0, %v3587_v4 }
 0x3f9   : > { %v1329_v16 = vpop.f32.mrb[4].mxu0 }
 0x3fa   : > { %v1335_v17 = vmul.f32 0.17677669, %v1329_v16  ;;  %v3278_v18 = vpop.f32.mrb[5].mxu0  ;;  %v3452_v16 = vld [vmem:[%s4355_s8] sm:$0xff]  }
 0x3fb   : > { %v1332_v19 = vpop.f32.mrb[6].mxu0  ;;  %3299 = vmatpush3.bf16.msra.mxu0 %v3452_v16  ;;  %v3454_v18 = vld [vmem:[%s4355_s8 + $0x10] sm:$0xff]   ;;  %v3489_v16 = vld [vmem:[%s4318_s10 + $0x28] sm:$0xff]  }
 0x3fc   : > { %v1152_v20 = vpop.f32.mrb[8].mxu1  ;;  %v3279_v21 = vpop.f32.mrb[7].mxu0  ;;  %v1336_v22 = vsel %vm785_vm3, %v1335_v17, -1e+09  ;;  %v3453_v17 = vld [vmem:[%s4355_s8 + $0x8] sm:$0xff]   ;;  %3300 = vmatprep.subr.bf16.mxu0 %v3587_v4  ;;  %v3455_v19 = vld [vmem:[%s4355_s8 + $0x18] sm:$0xff]  }
 0x3fd   : > { %v1158_v23 = vpack.c.bf16 %v1152_v20, %v1152_v20  ;;  %v3260_v25 = vpop.f32.mrb[9].mxu1  ;;  %v1337_v26 = vsel %vm1098_vm4, %v1336_v22, -inf  ;;  %v3456_v20 = vld [vmem:[%s4355_s8 + $0x20] sm:$0xff]  }
 0x3fe   : > { %1338 = vmax.xlane.f32.xlu0 %v1337_v26  ;;  %v1155_v27 = vpop.f32.mrb[10].mxu1 }
 0x3ff   : > { %1160 = vst.msk [vmem:[#allocation2] sm:$0xf] %vm1159_vm5, %v1158_v23  ;;  %v3261_v28 = vpop.f32.mrb[11].mxu1  ;;  %3301 = vmatpush3.bf16.msra.mxu0 %v3453_v17 }
 0x400   : > { %3302 = vmatprep.subr.bf16.mxu0 %v3587_v4  ;;  %v3458_v28 = vld [vmem:[%s4355_s8 + $0x30] sm:$0xff]  }
 0x401   : > { %v1450_v30 = vpop.f32.mrb[8].mxu0 }
 0x402   : > { %v3290_v32 = vpop.f32.mrb[9].mxu0  ;;  %v1456_v36 = vmul.f32 0.17677669, %v1450_v30 }
 0x403   : > { %v1453_v33 = vpop.f32.mrb[10].mxu0  ;;  %3303 = vmatpush3.bf16.msra.mxu0 %v3454_v18  ;;  %v3459_v32 = vld [vmem:[%s4355_s8 + $0x38] sm:$0xff]   ;;  %v3490_v18 = vld [vmem:[%s4318_s10 + $0x30] sm:$0xff]  }
 0x404   : > { %v1207_v34 = vpop.f32.mrb[12].mxu1  ;;  %v3291_v35 = vpop.f32.mrb[11].mxu0  ;;  %v1457_v43 = vsel %vm785_vm3, %v1456_v36, -1e+09  ;;  %3304 = vmatprep.subr.bf16.mxu0 %v3587_v4 }
 0x405   : > { %v1213_v37 = vmul.f32 0.17677669, %v1207_v34  ;;  %v3266_v38 = vpop.f32.mrb[13].mxu1  ;;  %v1458_v44 = vsel %vm1098_vm4, %v1457_v43, -inf }
 0x406   : > { %v1210_v39 = vpop.f32.mrb[14].mxu1 }
 0x407   : > { %v3267_v40 = vpop.f32.mrb[15].mxu1  ;;  %v1214_v41 = vsel %vm785_vm3, %v1213_v37, -1e+09  ;;  %3305 = vmatpush3.bf16.msra.mxu0 %v3455_v19  ;;  %v3491_v19 = vld [vmem:[%s4318_s10 + $0x38] sm:$0xff]  }
 0x408   : > { %v1215_v42 = vsel %vm1098_vm4, %v1214_v41, -inf  ;;  %3306 = vmatprep.subr.bf16.mxu0 %v3587_v4 }
 0x409   : > { %1216 = vmax.xlane.f32.xlu1 %v1215_v42 }
 0x40b   : > { %3307 = vmatpush3.bf16.msra.mxu0 %v3456_v20 }
 0x40c   : > { %3308 = vmatprep.subr.bf16.mxu0 %v3587_v4 }
 0x40d   : > { %1459 = vmax.xlane.f32.xlu1 %v1458_v44 }
 0x48b   : > { %v1339_v45 = vpop.xlane.xlu0 %1338 }
 0x48c   : > { %v1340_v46 = vsub.f32 %v1336_v22, %v1339_v45  ;;  %v3457_v22 = vld [vmem:[%s4355_s8 + $0x28] sm:$0xff]  }
 0x48d   : > { %3309 = vmatpush3.bf16.msra.mxu0 %v3457_v22 }
 0x48e   : > { %v1341_v47 = vmul.f32 1.442695, %v1340_v46  ;;  %3310 = vmatprep.subr.bf16.mxu0 %v3587_v4  ;;  %v3039_v46 = vld [vmem:[%s4357_s29] ss:$0 sm:$0xff]  ;;  %s780_s29 = scalar_lea.vmem %s4332_s24, %s3763_s4 }
 0x490   : > { %3544 = vpow2.f32 %v1341_v47  ;;  %v783_v47 = vunpack.c.l.bf16 %v3806_v24  ;;  %v3469_v24 = vld [vmem:[%s4318_s10] sm:$0xff]  }
 0x491   : > { %3311 = vmatpush3.bf16.msra.mxu0 %v3458_v28 }
 0x492   : > { %3312 = vmatprep.subr.bf16.mxu0 %v3587_v4 }
 0x495   : > { %3313 = vmatpush3.bf16.msra.mxu0 %v3459_v32 }
 0x496   : > { %v1217_v48 = vpop.xlane.xlu1 %1216 }
 0x497   : > { %v1218_v50 = vsub.f32 %v1214_v41, %v1217_v48 }
 0x499   : > { %v1219_v56 = vmul.f32 1.442695, %v1218_v50 }
 0x49a   : > { %v3545_v51 = vpop.eup %3544  ;;  %v1460_v53 = vpop.xlane.xlu1 %1459 }
 0x49b   : > { %v1461_v54 = vsub.f32 %v1457_v43, %v1460_v53  ;;  %v1343_v55 = vsel %vm1098_vm4, %v3545_v51, 0.0 }
 0x49c   : > { %1344 = vadd.xlane.f32.xlu0 %v1343_v55 }
 0x49d   : > { %v1462_v57 = vmul.f32 1.442695, %v1461_v54 }
 0x49f   : > { %3546 = vpow2.f32 %v1462_v57  ;;  %v3462_v57 = vld [vmem:[%s4320_s12 + $0x4] ss:$8 sps:$4 sm:$0xff]  }
 0x4a0   : > { %3548 = vpow2.f32 %v1219_v56  ;;  %v3460_v56 = vld [vmem:[%s4320_s12] ss:$8 sps:$4 sm:$0xff]   ;;  %1889 = vmatprep.subr.bf16.mxu0 %v3462_v57 }
 0x4a9   : > { %v3547_v52 = vpop.eup %3546 }
 0x4aa   : > { %v1464_v58 = vsel %vm1098_vm4, %v3547_v52, 0.0  ;;  %v3549_v59 = vpop.eup %3548 }
 0x4ab   : > { %1465 = vadd.xlane.f32.xlu1 %v1464_v58  ;;  %v1221_v60 = vsel %vm1098_vm4, %v3549_v59, 0.0  ;;  %v3463_v58 = vld [vmem:[%s4320_s12 + $0x10] ss:$8 sps:$4 sm:$0xff]  }
 0x4af   : > { %1222 = vadd.xlane.f32.xlu1 %v1221_v60  ;;  %v3473_v60 = vld [vmem:[%s4318_s10 + $0x8] sm:$0xff]  }
 0x4b2   : > { %1228 = vrot.lane.b32.xlu0 %v3846_v49, %s4335_s1 }
 0x4c0   : > { %1349 = vrot.lane.b32.xlu1 %v3846_v49, %s4339_s27 }
 0x4c4   : > { %1470 = vrot.lane.b32.xlu1 %v3846_v49, %s4337_s28 }
 0x529   : > { %v1345_v61 = vpop.xlane.xlu0 %1344 }
 0x52d   : > { %v1229_v62 = vpop.permute.xlu0 %1228 }
 0x52e   : > { %v1234_v63 = vsel %vm1114_vm2, %v1229_v62, 0  ;;  %v3472_v62 = vld [vmem:[%s4320_s12 + $0x34] ss:$8 sps:$4 sm:$0xff]  }
 0x52f   : > { %3269 = vmatpush3.bf16.msra.mxu1 %v1234_v63  ;;  %v3470_v63 = vld [vmem:[%s4320_s12 + $0x30] ss:$8 sps:$4 sm:$0xff]  }
 0x530   : > { %3280 = vmatprep.subr.bf16.mxu1 %v3587_v4 }
 0x538   : > { %v1466_v0 = vpop.xlane.xlu1 %1465 }
 0x53c   : > { %v1223_v1 = vpop.xlane.xlu1 %1222 }
 0x53d   : > { %3550 = vrcp.f32 %v1223_v1  ;;  %v3474_v1 = vld [vmem:[%s4320_s12 + $0x40] ss:$8 sps:$4 sm:$0xff]  }
 0x53e   : > { %3552 = vrcp.f32 %v1345_v61  ;;  %v3466_v61 = vld [vmem:[%s4320_s12 + $0x20] ss:$8 sps:$4 sm:$0xff]  }
 0x53f   : > { %3554 = vrcp.f32 %v1466_v0  ;;  %v3476_v0 = vld [vmem:[%s4320_s12 + $0x44] ss:$8 sps:$4 sm:$0xff]  }
 0x540   : > { %v1350_v6 = vpop.permute.xlu1 %1349 }
 0x541   : > { %v1355_v9 = vsel %vm1114_vm2, %v1350_v6, 0 }
 0x544   : > { %v1471_v10 = vpop.permute.xlu1 %1470 }
 0x545   : > { %v1476_v13 = vsel %vm1114_vm2, %v1471_v10, 0  ;;  %v3481_v10 = vld [vmem:[%s4318_s10 + $0x18] sm:$0xff]  }
 0x547   : > { %v3551_v3 = vpop.eup %3550 }
 0x548   : > { %v1225_v5 = vmul.f32 %v3551_v3, %v3549_v59  ;;  %v3553_v8 = vpop.eup %3552  ;;  %v3468_v59 = vld [vmem:[%s4320_s12 + $0x24] ss:$8 sps:$4 sm:$0xff]  }
 0x549   : > { %v1347_v49 = vmul.f32 %v3553_v8, %v3545_v51  ;;  %v3555_v12 = vpop.eup %3554  ;;  %v3477_v8 = vld [vmem:[%s4318_s10 + $0x10] sm:$0xff]  }
 0x54a   : > { %v1226_v7 = vpack.c.bf16 %v1225_v5, %v1225_v5  ;;  %v1468_v14 = vmul.f32 %v3555_v12, %v3547_v52  ;;  %v3465_v52 = vld [vmem:[%s4320_s12 + $0x14] ss:$8 sps:$4 sm:$0xff]   ;;  %v3482_v12 = vld [vmem:[%s4320_s12 + $0x60] ss:$8 sps:$4 sm:$0xff]  }
 0x54b   : > { %v1348_v11 = vpack.c.bf16 %v1347_v49, %v1347_v49  ;;  %v3478_v49 = vld [vmem:[%s4320_s12 + $0x50] ss:$8 sps:$4 sm:$0xff]  }
 0x54c   : > { %3271 = vmatmul.mubr.msk.bf16.vlgmr.msra.gmra.mrb[16].mxu1 %vm1098_vm4, %v1226_v7  ;;  %v1469_v15 = vpack.c.bf16 %v1468_v14, %v1468_v14  ;;  %v3488_v14 = vld [vmem:[%s4320_s12 + $0x74] ss:$8 sps:$4 sm:$0xff]  }
 0x54d   : > { %3281 = vmatpush3.bf16.msra.mxu1 %v1355_v9  ;;  %3282 = vmatprep.mubr.msk.bf16.mxu1 %vm3588_vm0, %v3587_v4  ;;  %v3480_v9 = vld [vmem:[%s4320_s12 + $0x54] ss:$8 sps:$4 sm:$0xff]  }
 0x54e   : > { %3292 = vmatprep.subr.bf16.mxu1 %v3587_v4 }
 0x554   : > { %3283 = vmatmul.mubr.msk.bf16.vlgmr.msra.gmra.mrb[20].mxu1 %vm1098_vm4, %v1348_v11  ;;  %v3484_v11 = vld [vmem:[%s4320_s12 + $0x64] ss:$8 sps:$4 sm:$0xff]  }
 0x555   : > { %3293 = vmatpush3.bf16.msra.mxu1 %v1476_v13  ;;  %3294 = vmatprep.mubr.msk.bf16.mxu1 %vm3588_vm0, %v3587_v4  ;;  %v3485_v13 = vld [vmem:[%s4318_s10 + $0x20] sm:$0xff]  }
 0x556   : > { %3318 = vmatprep.subr.bf16.mxu1 %v3587_v4 }
 0x55c   : > { %3295 = vmatmul.mubr.msk.bf16.vlgmr.msra.gmra.mrb[24].mxu1 %vm1098_vm4, %v1469_v15  ;;  %v3486_v15 = vld [vmem:[%s4320_s12 + $0x70] ss:$8 sps:$4 sm:$0xff]  }
 0x55d   : > { %3334 = vmatprep.mubr.msk.bf16.mxu1 %vm3588_vm0, %v3587_v4  ;;  %3319 = vmatpush3.bf16.msra.mxu1 %v3469_v24 }
 0x55e   : > { %3320 = vmatprep.subr.bf16.mxu1 %v3587_v4 }
 0x561   : > { %3321 = vmatpush3.bf16.msra.mxu1 %v3473_v60 }
 0x562   : > { %3322 = vmatprep.subr.bf16.mxu1 %v3587_v4 }
 0x565   : > { %3323 = vmatpush3.bf16.msra.mxu1 %v3477_v8 }
 0x566   : > { %3324 = vmatprep.subr.bf16.mxu1 %v3587_v4 }
 0x569   : > { %3325 = vmatpush3.bf16.msra.mxu1 %v3481_v10 }
 0x56a   : > { %3326 = vmatprep.subr.bf16.mxu1 %v3587_v4 }
 0x56d   : > { %3327 = vmatpush3.bf16.msra.mxu1 %v3485_v13 }
 0x56e   : > { %3328 = vmatprep.subr.bf16.mxu1 %v3587_v4 }
 0x571   : > { %3329 = vmatpush3.bf16.msra.mxu1 %v3489_v16 }
 0x572   : > { %3330 = vmatprep.subr.bf16.mxu1 %v3587_v4 }
 0x575   : > { %3331 = vmatpush3.bf16.msra.mxu1 %v3490_v18 }
 0x576   : > { %3332 = vmatprep.subr.bf16.mxu1 %v3587_v4 }
 0x579   : > { %3333 = vmatpush3.bf16.msra.mxu1 %v3491_v19 }
 0x57a   : > { %3338 = vmatprep.subr.bf16.mxu1 %v3587_v4 }
 0x61f   : > { %v1270_v21 = vpop.f32.mrb[16].mxu1 }
 0x620   : > { %v3134_v23 = vpack.c.bf16 %v1270_v21, %v1270_v21  ;;  %v3272_v25 = vpop.f32.mrb[17].mxu1 }
 0x621   : > { %v1273_v26 = vpop.f32.mrb[18].mxu1 }
 0x622   : > { %1280 = vrot.lane.b32.xlu0 %v3134_v23, %s4337_s28  ;;  %v3273_v27 = vpop.f32.mrb[19].mxu1  ;;  %s4359_s28 = sld [smem:[#allocation11_spill]] }
 0x623   : > { %v3049_v27 = vld [vmem:[%s4317_s9] ss:$0 sm:$0xff] }
 0x627   : > { %v1391_v30 = vpop.f32.mrb[20].mxu1 }
 0x628   : > { %v3135_v33 = vpack.c.bf16 %v1391_v30, %v1391_v30  ;;  %v3284_v34 = vpop.f32.mrb[21].mxu1  ;;  %v3048_v25 = vld [vmem:[%s4359_s28] ss:$0 sm:$0xff]  ;;  %s776_s28 = scalar_lea.vmem %s4360_s30, %s4366_s26  ;;  %s4363_s26 = smov 64  }
 0x629   : > { %v1394_v35 = vpop.f32.mrb[22].mxu1 }
 0x62a   : > { %1401 = vrot.lane.b32.xlu1 %v3135_v33, %s4339_s27  ;;  %v3285_v36 = vpop.f32.mrb[23].mxu1  ;;  %s769_s27 = scalar_lea.vmem %s4358_s6, %s3763_s4  ;;  %v1797_v33 = vld [vmem:[%s4321_s13] sm:$0x3] }
 0x62b   : > { %v1668_v17 = vld [vmem:[%s769_s27] sm:$0xf]  ;;  %v1802_v34 = vrot.slane %v1797_v33, %v3832_v31 }
 0x62f   : > { %v1512_v37 = vpop.f32.mrb[24].mxu1 }
 0x630   : > { %v3136_v38 = vpack.c.bf16 %v1512_v37, %v1512_v37  ;;  %v3296_v39 = vpop.f32.mrb[25].mxu1 }
 0x631   : > { %v1515_v40 = vpop.f32.mrb[26].mxu1 }
 0x632   : > { %1522 = vrot.lane.b32.xlu0 %v3136_v38, %s4356_s3  ;;  %v3297_v41 = vpop.f32.mrb[27].mxu1 }
 0x694   : > { %v1281_v42 = vpop.permute.xlu0 %1280 }
 0x695   : > { %1284 = vst.msk [vmem:[#allocation2] sm:$0xf] %vm1283_vm6, %v1281_v42  ;;  %v1806_v42 = vrot.slane %v1797_v33, %v3827_v29 }
 0x69c   : > { %v1402_v43 = vpop.permute.xlu1 %1401 }
 0x69d   : > { %1405 = vst.msk [vmem:[#allocation2] sm:$0xf] %vm1404_vm7, %v1402_v43 }
 0x6a4   : > { %v1523_v44 = vpop.permute.xlu0 %1522 }
 0x6a5   : > { %1526 = vst.msk [vmem:[#allocation2] sm:$0xf] %vm1525_vm8, %v1523_v44  ;;  %v3050_v44 = vld [vmem:[%s4319_s11] ss:$0 sm:$0xff] }
 0x6ac   : > { %v1527_v45 = vld [vmem:[#allocation2] sm:$0xf] }
 0x6ad   : > { %3315 = vmatmul.mubr.bf16.vlgmr.msra.gmra.mrb[12].mxu0 %v1527_v45 }
 0x6ae   : > { %1921 = vmatprep.mubr.bf16.mxu0 %v3586_v2  ;;  %1890 = vmatpush1.bf16.msra.mxu0 %v3460_v56 }
 0x6af   : > { %1891 = vmatprep.subr.bf16.mxu0 %v3465_v52 }
 0x6b2   : > { %1892 = vmatpush1.bf16.msra.mxu0 %v3463_v58 }
 0x6b3   : > { %1893 = vmatprep.subr.bf16.mxu0 %v3468_v59 }
 0x6b6   : > { %1894 = vmatpush1.bf16.msra.mxu0 %v3466_v61 }
 0x6b7   : > { %1895 = vmatprep.subr.bf16.mxu0 %v3472_v62 }
 0x6ba   : > { %1896 = vmatpush1.bf16.msra.mxu0 %v3470_v63 }
 0x6bb   : > { %1897 = vmatprep.subr.bf16.mxu0 %v3476_v0 }
 0x6be   : > { %1898 = vmatpush1.bf16.msra.mxu0 %v3474_v1 }
 0x6bf   : > { %1899 = vmatprep.subr.bf16.mxu0 %v3480_v9 }
 0x6c2   : > { %1900 = vmatpush1.bf16.msra.mxu0 %v3478_v49 }
 0x6c3   : > { %1901 = vmatprep.subr.bf16.mxu0 %v3484_v11 }
 0x6c6   : > { %1902 = vmatpush1.bf16.msra.mxu0 %v3482_v12 }
 0x6c7   : > { %1903 = vmatprep.subr.bf16.mxu0 %v3488_v14 }
 0x6ca   : > { %1904 = vmatpush1.bf16.msra.mxu0 %v3486_v15 }
 0x6cb   : > { %3362 = vmatprep.subr.bf16.mxu0 %v3587_v4 }
 0x6cd   : > { %1922 = vmatmul.mubr.bf16.vlgmr.msra.gmra.mrb[16].mxu0 %v1668_v17 }
 0x6ce   : > { %3364 = vmatprep.mubr.msk.bf16.mxu0 %vm3588_vm0, %v3587_v4 }
 0x780   : > { %v1633_v48 = vpop.f32.mrb[12].mxu0 }
 0x781   : > { %v1634_v50 = vadd.f32 %v3039_v46, %v1633_v48  ;;  %v3316_v51 = vpop.f32.mrb[13].mxu0 }
 0x782   : > { %v1636_v53 = vpop.f32.mrb[14].mxu0 }
 0x783   : > { %v3317_v54 = vpop.f32.mrb[15].mxu0  ;;  %v1639_v55 = vadd.f32 %v1634_v50, %v783_v47 }
 0x785   : > { %1642 = vadd.xlane.f32.xlu1 %v1639_v55 }
 0x7a0   : > { %v1923_v35 = vpop.f32.mrb[16].mxu0 }
 0x7a1   : > { %v1924_v36 = vadd.f32 %v1923_v35, %v1802_v34  ;;  %v1925_v37 = vpop.f32.mrb[17].mxu0 }
 0x7a2   : > { %v1927_v38 = vpop.f32.mrb[18].mxu0  ;;  %v1926_v43 = vadd.f32 %v1925_v37, %v1806_v42 }
 0x7a3   : > { %v1931_v39 = vpack.c.bf16 %v1924_v36, %v1924_v36  ;;  %v1928_v40 = vpop.f32.mrb[19].mxu0 }
 0x7a4   : > { %v4066_v46 = vpack.c.bf16 %v1926_v43, %v1926_v43 }
 0x7a5   : > { %v1937_v41 = vsel %vm1049_vm1, %v1931_v39, 0 }
 0x7a6   : > { %v2003_v54 = vsel %vm1114_vm2, %v4066_v46, 0 }
 0x812   : > { %v1643_v3 = vpop.xlane.xlu1 %1642 }
 0x813   : > { %v1645_v5 = vmul.f32 0.0078125, %v1643_v3 }
 0x815   : > { %v1646_v6 = vsub.f32 %v1639_v55, %v1645_v5  ;;  %v786_v55 = vld [vmem:[%s776_s28] sm:$0x1] }
 0x816   : > { %vm787_vm9 = vcmp.gt.f32.partialorder %v786_v55, 0.0 }
 0x817   : > { %v1647_v7 = vmul.f32 %v1646_v6, %v1646_v6  ;;  %v1980_v56 = vsel %vm787_vm9, 1, %v3586_v2 }
 0x818   : > { %v1984_v57 = vrot.slane %v1980_v56, %v3832_v31 }
 0x819   : > { %1648 = vadd.xlane.f32.xlu0 %v1647_v7 }
 0x81a   : > { %vm4080_vm10 = vcmp.eq.s32.totalorder %v1984_v57, 1 }
 0x8a6   : > { %v1649_v20 = vpop.xlane.xlu0 %1648 }
 0x8a7   : > { %v1650_v21 = vmul.f32 0.0078125, %v1649_v20 }
 0x8a9   : > { %v1651_v22 = vadd.f32 1e-06, %v1650_v21 }
 0x8ab   : > { %3556 = vrsqrt.f32 %v1651_v22 }
 0x8b5   : > { %v3557_v23 = vpop.eup %3556 }
 0x8b6   : > { %v1653_v26 = vmul.f32 %v3557_v23, %v1646_v6 }
 0x8b8   : > { %v1660_v28 = vmul.f32 %v3048_v25, %v1653_v26 }
 0x8ba   : > { %v4050_v30 = vadd.f32 %v3049_v27, %v1660_v28 }
 0x8bc   : > { %v1669_v32 = vpack.c.bf16 %v4050_v30, %v4050_v30 }
 0x8be   : > { %3335 = vmatmul.mubr.bf16.vlgmr.msra.gmra.mrb[28].mxu1 %v1669_v32 }
 0x8bf   : > { %3340 = vmatprep.mubr.msk.bf16.mxu1 %vm3588_vm0, %v3587_v4  ;;  %3339 = vmatpush3.bf16.xpose.msra.mxu1 %v1937_v41 }
 0x8c0   : > { %3344 = vmatprep.subr.bf16.mxu1 %v3587_v4 }
 0x991   : > { %v1775_v45 = vpop.f32.mrb[28].mxu1 }
 0x992   : > { %v1776_v47 = vadd.f32 %v3050_v44, %v1775_v45  ;;  %v3336_v48 = vpop.f32.mrb[29].mxu1 }
 0x993   : > { %v1778_v50 = vpop.f32.mrb[30].mxu1 }
 0x994   : > { %v1930_v51 = vpack.c.bf16 %v1776_v47, %v1776_v47  ;;  %v3337_v53 = vpop.f32.mrb[31].mxu1 }
 0x996   : > { %3341 = vmatmul.mubr.msk.bf16.vlgmr.msra.gmra.mrb[32].mxu1 %vm1049_vm1, %v1930_v51 }
 0x997   : > { %3345 = vmatpush3.bf16.msra.mxu1 %v2003_v54  ;;  %3346 = vmatprep.mubr.msk.bf16.mxu1 %vm3588_vm0, %v3587_v4 }
 0x998   : > { %3350 = vmatprep.subr.bf16.mxu1 %v3587_v4 }
 0xa69   : > { %v1973_v52 = vpop.f32.mrb[32].mxu1 }
 0xa6a   : > { %v1979_v58 = vmul.f32 0.17677669, %v1973_v52  ;;  %v3342_v59 = vpop.f32.mrb[33].mxu1 }
 0xa6b   : > { %v1976_v60 = vpop.f32.mrb[34].mxu1 }
 0xa6c   : > { %v3343_v61 = vpop.f32.mrb[35].mxu1  ;;  %v1986_v62 = vsel %vm4080_vm10, %v1979_v58, -1e+09 }
 0xa6d   : > { %v1987_v63 = vsel %vm1098_vm4, %v1986_v62, -inf }
 0xa6e   : > { %1988 = vmax.xlane.f32.xlu0 %v1987_v63 }
 0xa84   : > { %2051 = vrot.lane.b32.xlu0 %v1931_v39, %s4356_s3 }
 0xa88   : > { %2170 = vrot.lane.b32.xlu0 %v1930_v51, %s4363_s26 }
 0xa8c   : > { %2290 = vrot.lane.b32.xlu0 %v1930_v51, %s4364_s25 }
 0xafb   : > { %v1989_v0 = vpop.xlane.xlu0 %1988 }
 0xafc   : > { %v1990_v1 = vsub.f32 %v1986_v62, %v1989_v0 }
 0xafe   : > { %v1991_v3 = vmul.f32 1.442695, %v1990_v1 }
 0xaff   : > { %v2052_v10 = vpop.permute.xlu0 %2051 }
 0xb00   : > { %3558 = vpow2.f32 %v1991_v3  ;;  %v2057_v15 = vsel %vm1049_vm1, %v2052_v10, 0 }
 0xb03   : > { %v2171_v16 = vpop.permute.xlu0 %2170 }
 0xb07   : > { %v2291_v18 = vpop.permute.xlu0 %2290 }
 0xb0a   : > { %v3559_v5 = vpop.eup %3558 }
 0xb0b   : > { %v1993_v6 = vsel %vm1098_vm4, %v3559_v5, 0.0 }
 0xb0c   : > { %1994 = vadd.xlane.f32.xlu1 %v1993_v6 }
 0xb1d   : > { %2048 = vrot.lane.b32.xlu1 %v1930_v51, %s4356_s3 }
 0xb21   : > { %2172 = vrot.lane.b32.xlu1 %v1931_v39, %s4363_s26 }
 0xb25   : > { %2292 = vrot.lane.b32.xlu1 %v1931_v39, %s4364_s25 }
 0xb99   : > { %v1995_v7 = vpop.xlane.xlu1 %1994 }
 0xb9a   : > { %3560 = vrcp.f32 %v1995_v7 }
 0xb9d   : > { %v2049_v8 = vpop.permute.xlu1 %2048 }
 0xba1   : > { %v2173_v9 = vpop.permute.xlu1 %2172 }
 0xba2   : > { %v2178_v49 = vsel %vm1049_vm1, %v2173_v9, 0 }
 0xba3   : > { %3363 = vmatpush3.bf16.xpose.msra.mxu0 %v2178_v49 }
 0xba4   : > { %v3561_v11 = vpop.eup %3560  ;;  %3374 = vmatprep.subr.bf16.mxu0 %v3587_v4 }
 0xba5   : > { %v1997_v12 = vmul.f32 %v3561_v11, %v3559_v5  ;;  %v2293_v13 = vpop.permute.xlu1 %2292 }
 0xba6   : > { %v2298_v17 = vsel %vm1049_vm1, %v2293_v13, 0 }
 0xba7   : > { %v1998_v14 = vpack.c.bf16 %v1997_v12, %v1997_v12 }
 0xba9   : > { %3347 = vmatmul.mubr.msk.bf16.vlgmr.msra.gmra.mrb[36].mxu1 %vm1098_vm4, %v1998_v14 }
 0xbaa   : > { %3351 = vmatpush3.bf16.xpose.msra.mxu1 %v2057_v15  ;;  %3365 = vmatmul.mubr.msk.bf16.vlgmr.msra.gmra.mrb[20].mxu0 %vm1049_vm1, %v2171_v16 }
 0xbab   : > { %3375 = vmatpush3.bf16.xpose.msra.mxu0 %v2298_v17  ;;  %3352 = vmatprep.mubr.msk.bf16.mxu1 %vm3588_vm0, %v3587_v4 }
 0xbac   : > { %3376 = vmatprep.mubr.msk.bf16.mxu0 %vm3588_vm0, %v3587_v4  ;;  %3356 = vmatprep.subr.bf16.mxu1 %v3587_v4 }
 0xbad   : > { %3386 = vmatprep.subr.bf16.mxu0 %v3587_v4 }
 0xbb1   : > { %3353 = vmatmul.mubr.msk.bf16.vlgmr.msra.gmra.mrb[40].mxu1 %vm1049_vm1, %v2049_v8 }
 0xbb2   : > { %3377 = vmatmul.mubr.msk.bf16.vlgmr.msra.gmra.mrb[24].mxu0 %vm1049_vm1, %v2291_v18  ;;  %3358 = vmatprep.mubr.msk.bf16.mxu1 %vm3588_vm0, %v3587_v4 }
 0xbb3   : > { %3402 = vmatprep.mubr.msk.bf16.mxu0 %vm3588_vm0, %v3587_v4 }
 0xc7c   : > { %v2039_v19 = vpop.f32.mrb[36].mxu1 }
 0xc7d   : > { %v2045_v20 = vpack.c.bf16 %v2039_v19, %v2039_v19  ;;  %v3348_v21 = vpop.f32.mrb[37].mxu1  ;;  %v2214_v22 = vpop.f32.mrb[20].mxu0  ;;  %v3492_v19 = vld [vmem:[%s4322_s14] sm:$0xff]  }
 0xc7e   : > { %v2220_v23 = vmul.f32 0.17677669, %v2214_v22  ;;  %v2042_v25 = vpop.f32.mrb[38].mxu1  ;;  %v3366_v26 = vpop.f32.mrb[21].mxu0  ;;  %3387 = vmatpush3.bf16.msra.mxu0 %v3492_v19  ;;  %v3494_v21 = vld [vmem:[%s4322_s14 + $0x10] sm:$0xff]   ;;  %v3496_v22 = vld [vmem:[%s4322_s14 + $0x20] sm:$0xff]  }
 0xc7f   : > { %2046 = vst.msk [vmem:[#allocation2] sm:$0xf] %vm1159_vm5, %v2045_v20  ;;  %v3349_v27 = vpop.f32.mrb[39].mxu1  ;;  %v2217_v28 = vpop.f32.mrb[22].mxu0  ;;  %v3493_v20 = vld [vmem:[%s4322_s14 + $0x8] sm:$0xff]   ;;  %3388 = vmatprep.subr.bf16.mxu0 %v3587_v4  ;;  %v3532_v19 = vld [vmem:[%s4328_s20 + $0x60] sm:$0xff]  }
 0xc80   : > { %v3367_v32 = vpop.f32.mrb[23].mxu0  ;;  %v2221_v33 = vsel %vm4080_vm10, %v2220_v23, -1e+09  ;;  %v3497_v25 = vld [vmem:[%s4322_s14 + $0x28] sm:$0xff]  }
 0xc81   : > { %v2222_v34 = vsel %vm1098_vm4, %v2221_v33, -inf }
 0xc82   : > { %2223 = vmax.xlane.f32.xlu0 %v2222_v34  ;;  %3389 = vmatpush3.bf16.msra.mxu0 %v3493_v20  ;;  %v3533_v20 = vld [vmem:[%s4328_s20 + $0x20] sm:$0xff]  }
 0xc83   : > { %3390 = vmatprep.subr.bf16.mxu0 %v3587_v4 }
 0xc84   : > { %v2093_v35 = vpop.f32.mrb[40].mxu1 }
 0xc85   : > { %v2099_v36 = vmul.f32 0.17677669, %v2093_v35  ;;  %v3354_v37 = vpop.f32.mrb[41].mxu1  ;;  %v2334_v38 = vpop.f32.mrb[24].mxu0  ;;  %v3499_v35 = vld [vmem:[%s4322_s14 + $0x38] sm:$0xff]  }
 0xc86   : > { %v2340_v39 = vmul.f32 0.17677669, %v2334_v38  ;;  %v2096_v40 = vpop.f32.mrb[42].mxu1  ;;  %v3378_v41 = vpop.f32.mrb[25].mxu0  ;;  %3391 = vmatpush3.bf16.msra.mxu0 %v3494_v21  ;;  %v3534_v21 = vld [vmem:[%s4328_s20 + $0x68] sm:$0xff]  }
 0xc87   : > { %v3355_v42 = vpop.f32.mrb[43].mxu1  ;;  %v2337_v43 = vpop.f32.mrb[26].mxu0  ;;  %v2100_v44 = vsel %vm4080_vm10, %v2099_v36, -1e+09  ;;  %3392 = vmatprep.subr.bf16.mxu0 %v3587_v4 }
 0xc88   : > { %v3379_v45 = vpop.f32.mrb[27].mxu0  ;;  %v2101_v47 = vsel %vm1098_vm4, %v2100_v44, -inf  ;;  %v2341_v48 = vsel %vm4080_vm10, %v2340_v39, -1e+09 }
 0xc89   : > { %2102 = vmax.xlane.f32.xlu1 %v2101_v47  ;;  %v2342_v50 = vsel %vm1098_vm4, %v2341_v48, -inf }
 0xc8a   : > { %2343 = vmax.xlane.f32.xlu0 %v2342_v50  ;;  %v3086_v50 = vld [vmem:[%s4323_s15] ss:$0 sm:$0xff] }
 0xd0f   : > { %v2224_v51 = vpop.xlane.xlu0 %2223 }
 0xd10   : > { %v2225_v53 = vsub.f32 %v2221_v33, %v2224_v51  ;;  %v3498_v33 = vld [vmem:[%s4322_s14 + $0x30] sm:$0xff]  }
 0xd12   : > { %v2226_v54 = vmul.f32 1.442695, %v2225_v53 }
 0xd14   : > { %3562 = vpow2.f32 %v2226_v54 }
 0xd16   : > { %v2103_v55 = vpop.xlane.xlu1 %2102 }
 0xd17   : > { %v2104_v56 = vsub.f32 %v2100_v44, %v2103_v55  ;;  %v2344_v57 = vpop.xlane.xlu0 %2343 }
 0xd18   : > { %v2345_v52 = vsub.f32 %v2341_v48, %v2344_v57 }
 0xd19   : > { %v2105_v58 = vmul.f32 1.442695, %v2104_v56 }
 0xd1a   : > { %v2346_v59 = vmul.f32 1.442695, %v2345_v52  ;;  %v3500_v52 = vld [vmem:[%s4326_s18] ss:$8 sps:$4 sm:$0xff]  }
 0xd1c   : > { %3564 = vpow2.f32 %v2346_v59  ;;  %v3505_v59 = vld [vmem:[%s4326_s18 + $0x14] ss:$8 sps:$4 sm:$0xff]  }
 0xd1d   : > { %3566 = vpow2.f32 %v2105_v58  ;;  %v3502_v58 = vld [vmem:[%s4326_s18 + $0x4] ss:$8 sps:$4 sm:$0xff]  }
 0xd1e   : > { %v3563_v60 = vpop.eup %3562 }
 0xd1f   : > { %v2228_v24 = vsel %vm1098_vm4, %v3563_v60, 0.0 }
 0xd20   : > { %2229 = vadd.xlane.f32.xlu0 %v2228_v24  ;;  %v3506_v24 = vld [vmem:[%s4326_s18 + $0x20] ss:$8 sps:$4 sm:$0xff]  }
 0xd26   : > { %v3565_v61 = vpop.eup %3564 }
 0xd27   : > { %v2348_v62 = vsel %vm1098_vm4, %v3565_v61, 0.0  ;;  %v3567_v63 = vpop.eup %3566 }
 0xd28   : > { %2349 = vadd.xlane.f32.xlu1 %v2348_v62  ;;  %v2107_v0 = vsel %vm1098_vm4, %v3567_v63, 0.0 }
 0xd2c   : > { %2108 = vadd.xlane.f32.xlu1 %v2107_v0 }
 0xd36   : > { %2114 = vrot.lane.b32.xlu0 %v4066_v46, %s4356_s3 }
 0xd3d   : > { %2234 = vrot.lane.b32.xlu1 %v4066_v46, %s4363_s26 }
 0xd41   : > { %2354 = vrot.lane.b32.xlu1 %v4066_v46, %s4364_s25 }
 0xdad   : > { %v2230_v1 = vpop.xlane.xlu0 %2229 }
 0xdb1   : > { %v2115_v3 = vpop.permute.xlu0 %2114 }
 0xdb2   : > { %v2120_v5 = vsel %vm1114_vm2, %v2115_v3, 0  ;;  %v3509_v3 = vld [vmem:[%s4326_s18 + $0x30] ss:$8 sps:$4 sm:$0xff]  }
 0xdb3   : > { %3357 = vmatpush3.bf16.msra.mxu1 %v2120_v5  ;;  %v3514_v5 = vld [vmem:[%s4326_s18 + $0x44] ss:$8 sps:$4 sm:$0xff]  }
 0xdb4   : > { %3368 = vmatprep.subr.bf16.mxu1 %v3587_v4 }
 0xdb5   : > { %v2350_v6 = vpop.xlane.xlu1 %2349 }
 0xdb9   : > { %v2109_v7 = vpop.xlane.xlu1 %2108 }
 0xdba   : > { %3568 = vrcp.f32 %v2109_v7  ;;  %v3517_v7 = vld [vmem:[%s4326_s18 + $0x54] ss:$8 sps:$4 sm:$0xff]  }
 0xdbb   : > { %3570 = vrcp.f32 %v2230_v1  ;;  %v3511_v1 = vld [vmem:[%s4326_s18 + $0x34] ss:$8 sps:$4 sm:$0xff]  }
 0xdbc   : > { %3572 = vrcp.f32 %v2350_v6  ;;  %v3512_v6 = vld [vmem:[%s4326_s18 + $0x40] ss:$8 sps:$4 sm:$0xff]  }
 0xdbd   : > { %v2235_v49 = vpop.permute.xlu1 %2234 }
 0xdbe   : > { %v2240_v12 = vsel %vm1114_vm2, %v2235_v49, 0  ;;  %v3518_v49 = vld [vmem:[%s4326_s18 + $0x60] ss:$8 sps:$4 sm:$0xff]  }
 0xdc1   : > { %v2355_v13 = vpop.permute.xlu1 %2354 }
 0xdc2   : > { %v2360_v16 = vsel %vm1114_vm2, %v2355_v13, 0  ;;  %v3526_v13 = vld [vmem:[%s4328_s20 + $0x48] sm:$0xff]  }
 0xdc4   : > { %v3569_v8 = vpop.eup %3568 }
 0xdc5   : > { %v2111_v9 = vmul.f32 %v3569_v8, %v3567_v63  ;;  %v3571_v11 = vpop.eup %3570  ;;  %v3515_v8 = vld [vmem:[%s4326_s18 + $0x50] ss:$8 sps:$4 sm:$0xff]  }
 0xdc6   : > { %v2232_v46 = vmul.f32 %v3571_v11, %v3563_v60  ;;  %v3573_v15 = vpop.eup %3572  ;;  %v3503_v60 = vld [vmem:[%s4326_s18 + $0x10] ss:$8 sps:$4 sm:$0xff]  }
 0xdc7   : > { %v2112_v10 = vpack.c.bf16 %v2111_v9, %v2111_v9  ;;  %v2352_v17 = vmul.f32 %v3573_v15, %v3565_v61  ;;  %v3520_v9 = vld [vmem:[%s4326_s18 + $0x64] ss:$8 sps:$4 sm:$0xff]   ;;  %v3521_v11 = vld [vmem:[%s4326_s18 + $0x70] ss:$8 sps:$4 sm:$0xff]  }
 0xdc8   : > { %v2233_v14 = vpack.c.bf16 %v2232_v46, %v2232_v46  ;;  %v3525_v46 = vld [vmem:[%s4328_s20] sm:$0xff]   ;;  %v3528_v15 = vld [vmem:[%s4328_s20 + $0x50] sm:$0xff]  }
 0xdc9   : > { %3359 = vmatmul.mubr.msk.bf16.vlgmr.msra.gmra.mrb[44].mxu1 %vm1098_vm4, %v2112_v10  ;;  %v2353_v18 = vpack.c.bf16 %v2352_v17, %v2352_v17  ;;  %v3523_v10 = vld [vmem:[%s4326_s18 + $0x74] ss:$8 sps:$4 sm:$0xff]  }
 0xdca   : > { %3369 = vmatpush3.bf16.msra.mxu1 %v2240_v12  ;;  %3370 = vmatprep.mubr.msk.bf16.mxu1 %vm3588_vm0, %v3587_v4  ;;  %v3524_v12 = vld [vmem:[%s4328_s20 + $0x40] sm:$0xff]   ;;  %v3530_v17 = vld [vmem:[%s4328_s20 + $0x58] sm:$0xff]  }
 0xdcb   : > { %3380 = vmatprep.subr.bf16.mxu1 %v3587_v4 }
 0xdd1   : > { %3371 = vmatmul.mubr.msk.bf16.vlgmr.msra.gmra.mrb[48].mxu1 %vm1098_vm4, %v2233_v14  ;;  %v3527_v14 = vld [vmem:[%s4328_s20 + $0x8] sm:$0xff]  }
 0xdd2   : > { %3381 = vmatpush3.bf16.msra.mxu1 %v2360_v16  ;;  %3382 = vmatprep.mubr.msk.bf16.mxu1 %vm3588_vm0, %v3587_v4  ;;  %v3529_v16 = vld [vmem:[%s4328_s20 + $0x10] sm:$0xff]  }
 0xdd3   : > { %2659 = vmatprep.subr.bf16.mxu1 %v3502_v58 }
 0xdd9   : > { %3383 = vmatmul.mubr.msk.bf16.vlgmr.msra.gmra.mrb[52].mxu1 %vm1098_vm4, %v2353_v18  ;;  %v3531_v18 = vld [vmem:[%s4328_s20 + $0x18] sm:$0xff]  }
 0xdda   : > { %2691 = vmatprep.mubr.bf16.mxu1 %v3586_v2  ;;  %v3495_v2 = vld [vmem:[%s4322_s14 + $0x18] sm:$0xff]   ;;  %2660 = vmatpush1.bf16.msra.mxu1 %v3500_v52 }
 0xddb   : > { %3393 = vmatpush3.bf16.msra.mxu0 %v3495_v2  ;;  %2661 = vmatprep.subr.bf16.mxu1 %v3505_v59  ;;  %v3535_v2 = vld [vmem:[%s4328_s20 + $0x28] sm:$0xff]  }
 0xddc   : > { %3394 = vmatprep.subr.bf16.mxu0 %v3587_v4 }
 0xdde   : > { %2662 = vmatpush1.bf16.msra.mxu1 %v3503_v60 }
 0xddf   : > { %3395 = vmatpush3.bf16.msra.mxu0 %v3496_v22 }
 0xde0   : > { %3396 = vmatprep.subr.bf16.mxu0 %v3587_v4 }
 0xde3   : > { %3397 = vmatpush3.bf16.msra.mxu0 %v3497_v25 }
 0xde4   : > { %3398 = vmatprep.subr.bf16.mxu0 %v3587_v4 }
 0xde7   : > { %3399 = vmatpush3.bf16.msra.mxu0 %v3498_v33 }
 0xde8   : > { %3400 = vmatprep.subr.bf16.mxu0 %v3587_v4 }
 0xdeb   : > { %3401 = vmatpush3.bf16.msra.mxu0 %v3499_v35 }
 0xdec   : > { %3208 = vmatprep.subr.bf16.mxu0 %v3524_v12 }
 0xe9c   : > { %v2156_v23 = vpop.f32.mrb[44].mxu1 }
 0xe9d   : > { %v3137_v26 = vpack.c.bf16 %v2156_v23, %v2156_v23  ;;  %v3360_v27 = vpop.f32.mrb[45].mxu1 }
 0xe9e   : > { %v2159_v28 = vpop.f32.mrb[46].mxu1  ;;  %v3095_v27 = vld [vmem:[%s4324_s16] ss:$0 sm:$0xff] }
 0xe9f   : > { %2166 = vrot.lane.b32.xlu0 %v3137_v26, %s4364_s25  ;;  %v3361_v32 = vpop.f32.mrb[47].mxu1 }
 0xea0   : > { %v3096_v32 = vld [vmem:[%s4325_s17] ss:$0 sm:$0xff] }
 0xea4   : > { %v2276_v34 = vpop.f32.mrb[48].mxu1 }
 0xea5   : > { %v3138_v36 = vpack.c.bf16 %v2276_v34, %v2276_v34  ;;  %v3372_v37 = vpop.f32.mrb[49].mxu1 }
 0xea6   : > { %v2279_v38 = vpop.f32.mrb[50].mxu1  ;;  %v3537_v37 = vld [vmem:[%s4328_s20 + $0x30] sm:$0xff]  }
 0xea7   : > { %2286 = vrot.lane.b32.xlu1 %v3138_v36, %s4363_s26  ;;  %v3373_v39 = vpop.f32.mrb[51].mxu1  ;;  %v3536_v36 = vld [vmem:[%s4328_s20 + $0x70] sm:$0xff]   ;;  %v3538_v38 = vld [vmem:[%s4328_s20 + $0x78] sm:$0xff]  }
 0xea8   : > { %v3539_v39 = vld [vmem:[%s4328_s20 + $0x38] sm:$0xff]  }
 0xeac   : > { %v2396_v40 = vpop.f32.mrb[52].mxu1 }
 0xead   : > { %v3139_v41 = vpack.c.bf16 %v2396_v40, %v2396_v40  ;;  %v3384_v42 = vpop.f32.mrb[53].mxu1  ;;  %v2567_v40 = vld [vmem:[%s4327_s19] sm:$0x3] }
 0xeae   : > { %v2399_v43 = vpop.f32.mrb[54].mxu1  ;;  %v2576_v42 = vrot.slane %v2567_v40, %v3827_v29 }
 0xeaf   : > { %2406 = vrot.lane.b32.xlu0 %v3139_v41, %s4356_s3  ;;  %v3385_v44 = vpop.f32.mrb[55].mxu1  ;;  %v2572_v41 = vrot.slane %v2567_v40, %v3832_v31 }
 0xf11   : > { %v2167_v45 = vpop.permute.xlu0 %2166 }
 0xf12   : > { %2169 = vst.msk [vmem:[#allocation2] sm:$0xf] %vm1283_vm6, %v2167_v45 }
 0xf19   : > { %v2287_v47 = vpop.permute.xlu1 %2286 }
 0xf1a   : > { %2289 = vst.msk [vmem:[#allocation2] sm:$0xf] %vm1404_vm7, %v2287_v47 }
 0xf21   : > { %v2407_v48 = vpop.permute.xlu0 %2406 }
 0xf22   : > { %2409 = vst.msk [vmem:[#allocation2] sm:$0xf] %vm1525_vm8, %v2407_v48 }
 0xf29   : > { %v2410_v4 = vld [vmem:[#allocation2] sm:$0xf] }
 0xf2a   : > { %3403 = vmatmul.mubr.bf16.vlgmr.msra.gmra.mrb[28].mxu0 %v2410_v4 }
 0xf2b   : > { %3209 = vmatpush3.bf16.msra.mxu0 %v3525_v46 }
 0xf2c   : > { %3210 = vmatprep.subr.bf16.mxu0 %v3526_v13 }
 0xf2f   : > { %3211 = vmatpush3.bf16.msra.mxu0 %v3527_v14 }
 0xf30   : > { %3212 = vmatprep.subr.bf16.mxu0 %v3528_v15 }
 0xf33   : > { %3213 = vmatpush3.bf16.msra.mxu0 %v3529_v16 }
 0xf34   : > { %3214 = vmatprep.subr.bf16.mxu0 %v3530_v17 }
 0xf37   : > { %3215 = vmatpush3.bf16.msra.mxu0 %v3531_v18 }
 0xf38   : > { %3216 = vmatprep.subr.bf16.mxu0 %v3532_v19 }
 0xf3b   : > { %3217 = vmatpush3.bf16.msra.mxu0 %v3533_v20 }
 0xf3c   : > { %3218 = vmatprep.subr.bf16.mxu0 %v3534_v21 }
 0xf3f   : > { %3219 = vmatpush3.bf16.msra.mxu0 %v3535_v2 }
 0xf40   : > { %3220 = vmatprep.subr.bf16.mxu0 %v3536_v36 }
 0xf43   : > { %3221 = vmatpush3.bf16.msra.mxu0 %v3537_v37 }
 0xf44   : > { %3222 = vmatprep.subr.bf16.mxu0 %v3538_v38 }
 0xf47   : > { %3223 = vmatpush3.bf16.msra.mxu0 %v3539_v39 }
 0xffd   : > { %v2516_v51 = vpop.f32.mrb[28].mxu0 }
 0xffe   : > { %v2517_v53 = vadd.f32 %v3086_v50, %v2516_v51  ;;  %v3404_v54 = vpop.f32.mrb[29].mxu0 }
 0xfff   : > { %v2519_v55 = vpop.f32.mrb[30].mxu0 }
0x1000   : > { %v3405_v56 = vpop.f32.mrb[31].mxu0  ;;  %v2522_v57 = vadd.f32 %v2517_v53, %v4050_v30  ;;  %v3508_v30 = vld [vmem:[%s4326_s18 + $0x24] ss:$8 sps:$4 sm:$0xff]  }
0x1001   : > { %2663 = vmatprep.subr.bf16.mxu1 %v3508_v30  ;;  %v3113_v56 = vld [vmem:[%s4329_s21] ss:$0 sm:$0xff] }
0x1002   : > { %2525 = vadd.xlane.f32.xlu1 %v2522_v57  ;;  %2664 = vmatpush1.bf16.msra.mxu1 %v3506_v24 }
0x1003   : > { %2665 = vmatprep.subr.bf16.mxu1 %v3511_v1 }
0x1006   : > { %2666 = vmatpush1.bf16.msra.mxu1 %v3509_v3  ;;  %v3130_v3 = vld [vmem:[%s4330_s22] ss:$0 sm:$0xff] }
0x1007   : > { %2667 = vmatprep.subr.bf16.mxu1 %v3514_v5 }
0x100a   : > { %2668 = vmatpush1.bf16.msra.mxu1 %v3512_v6  ;;  %v3131_v6 = vld [vmem:[%s4331_s23] ss:$0 sm:$0xff] }
0x100b   : > { %2669 = vmatprep.subr.bf16.mxu1 %v3517_v7 }
0x100e   : > { %2670 = vmatpush1.bf16.msra.mxu1 %v3515_v8 }
0x100f   : > { %2671 = vmatprep.subr.bf16.mxu1 %v3520_v9 }
0x1012   : > { %2672 = vmatpush1.bf16.msra.mxu1 %v3518_v49 }
0x1013   : > { %2673 = vmatprep.subr.bf16.mxu1 %v3523_v10 }
0x1016   : > { %2674 = vmatpush1.bf16.msra.mxu1 %v3521_v11 }
0x108f   : > { %v2526_v61 = vpop.xlane.xlu1 %2525 }
0x1090   : > { %v2527_v62 = vmul.f32 0.0078125, %v2526_v61 }
0x1092   : > { %v2528_v63 = vsub.f32 %v2522_v57, %v2527_v62 }
0x1094   : > { %v2529_v0 = vmul.f32 %v2528_v63, %v2528_v63 }
0x1096   : > { %2530 = vadd.xlane.f32.xlu0 %v2529_v0 }
0x1123   : > { %v2531_v22 = vpop.xlane.xlu0 %2530 }
0x1124   : > { %v2532_v23 = vmul.f32 0.0078125, %v2531_v22 }
0x1126   : > { %v2533_v25 = vadd.f32 1e-05, %v2532_v23 }
0x1128   : > { %3574 = vrsqrt.f32 %v2533_v25 }
0x1132   : > { %v3575_v26 = vpop.eup %3574 }
0x1133   : > { %v2535_v28 = vmul.f32 %v3575_v26, %v2528_v63 }
0x1135   : > { %v2542_v33 = vmul.f32 %v3095_v27, %v2535_v28 }
0x1137   : > { %v2549_v34 = vadd.f32 %v3096_v32, %v2542_v33 }
0x1139   : > { %v2550_v35 = vpack.c.bf16 %v2549_v34, %v2549_v34 }
0x113b   : > { %2692 = vmatmul.mubr.bf16.vlgmr.msra.gmra.mrb[56].mxu1 %v2550_v35 }
0x120e   : > { %v2693_v43 = vpop.f32.mrb[56].mxu1 }
0x120f   : > { %v2694_v44 = vadd.f32 %v2693_v43, %v2572_v41  ;;  %v2695_v45 = vpop.f32.mrb[57].mxu1 }
0x1210   : > { %v2696_v47 = vadd.f32 %v2695_v45, %v2576_v42  ;;  %v2697_v48 = vpop.f32.mrb[58].mxu1 }
0x1211   : > { %v2700_v4 = vmax.f32 %v2694_v44, 0.0  ;;  %v2698_v50 = vpop.f32.mrb[59].mxu1 }
0x1212   : > { %v2701_v51 = vmax.f32 %v2696_v47, 0.0 }
0x1213   : > { %v2702_v54 = vpack.c.bf16 %v2700_v4, %v2700_v4 }
0x1214   : > { %v2703_v53 = vpack.c.bf16 %v2701_v51, %v2701_v51 }
0x1216   : > { %2871 = vmatprep.mubr.bf16.mxu0 %v2703_v53 }
0x1217   : > { %2872 = vmatmul.mubr.bf16.vlgmr.msra.gmra.mrb[32].mxu0 %v2702_v54 }
0x12ea   : > { %v3224_v55 = vpop.f32.mrb[32].mxu0 }
0x12eb   : > { %v3225_v31 = vpop.f32.mrb[33].mxu0 }
0x12ec   : > { %v3226_v57 = vadd.f32 %v3225_v31, %v3224_v55  ;;  %v3227_v29 = vpop.f32.mrb[34].mxu0 }
0x12ed   : > { %v3228_v52 = vpop.f32.mrb[35].mxu0 }
0x12ee   : > { %v2874_v58 = vadd.f32 %v3226_v57, %v3113_v56 }
0x12f0   : > { %v2879_v59 = vadd.f32 %v2874_v58, %v2549_v34 }
0x12f2   : > { %2882 = vadd.xlane.f32.xlu0 %v2879_v59 }
0x137f   : > { %v2883_v60 = vpop.xlane.xlu0 %2882 }
0x1380   : > { %v2884_v30 = vmul.f32 0.0078125, %v2883_v60 }
0x1382   : > { %v2885_v24 = vsub.f32 %v2879_v59, %v2884_v30 }
0x1384   : > { %v2886_v61 = vmul.f32 %v2885_v24, %v2885_v24 }
0x1386   : > { %2887 = vadd.xlane.f32.xlu1 %v2886_v61 }
0x1413   : > { %v2888_v62 = vpop.xlane.xlu1 %2887 }
0x1414   : > { %v2889_v63 = vmul.f32 0.0078125, %v2888_v62 }
0x1416   : > { %v2890_v0 = vadd.f32 1e-05, %v2889_v63 }
0x1418   : > { %3576 = vrsqrt.f32 %v2890_v0 }
0x1422   : > { %v3577_v1 = vpop.eup %3576 }
0x1423   : > { %v2892_v5 = vmul.f32 %v3577_v1, %v2885_v24 }
0x1425   : > { %v2899_v7 = vmul.f32 %v3130_v3, %v2892_v5 }
0x1427   : > { %v2906_v8 = vadd.f32 %v3131_v6, %v2899_v7 }
0x1429   : > { %v2907_v9 = vpack.c.bf16 %v2906_v8, %v2906_v8 }
0x142b   : > { %2908 = vst [vmem:[%s780_s29] sm:$0xf] %v2907_v9 }
0x142c PF: > { %s34_s5 = sadd.s32 1, %s3584_s5  }
0x142d   : > { %p31_p4 = scmp.ge.s32.totalorder %s34_s5, 4  }
0x142f   :  { %33 = sbr.rel (!%p31_p4) target bundleno = 10 (0xa), region = 155 }

</bundles_post_ra>
